<compile_context>
chip_gen: v7x
topology: tpu7x:2x2x1
jax: 0.10.0
libtpu: 0.0.40
codegen_flags: <defaults>
</compile_context>

<pallas_src>
import math

import jax
import jax.numpy as jnp
from jax.experimental import pallas as pl
from jax.experimental.pallas import tpu as pltpu


# ----------------------------------------------------------------------------
# Fused kernel: full encoder->decoder forward for one batch element.
# ----------------------------------------------------------------------------
def _fused_encoder_kernel(
        x_ref,
        wc256, bc256, wc128, bc128, wc64, bc64, wc32, bc32, wc1, bc1,
        wu32, bu32, wu64, bu64, wu128, bu128, wu256, bu256,
        wdn, bdn,
        a256, a128, a64, a32,
        enc_ref, recon_ref):
    L = x_ref.shape[1]

    def conv3(h, w_ref, b_ref, residual=None):
        """Conv1d(k=3, stride=1, pad=1) + bias (+ residual), channels-last.

        h     : (L, Cin)
        w_ref : (3, Cin, Cout)  taps (tap k multiplies x[l-1+k])
        b_ref : (1, Cout)
        """
        Cin = h.shape[-1]
        row = jax.lax.broadcasted_iota(jnp.int32, (L, Cin), 0)
        # h_prev[l] = h[l-1] (0 at l=0); h_next[l] = h[l+1] (0 at l=L-1).
        h_prev = jnp.where(row == 0, 0.0, pltpu.roll(h, shift=1, axis=0))
        h_next = jnp.where(row == L - 1, 0.0,
                           pltpu.roll(h, shift=L - 1, axis=0))
        acc = jnp.dot(h_prev, w_ref[0], preferred_element_type=jnp.float32)
        acc = acc + jnp.dot(h, w_ref[1], preferred_element_type=jnp.float32)
        acc = acc + jnp.dot(h_next, w_ref[2],
                            preferred_element_type=jnp.float32)
        pre = acc + b_ref[...]
        if residual is not None:
            pre = pre + residual
        return pre

    def prelu(v, a_ref):
        a = a_ref[...]
        return jnp.where(v >= 0, v, a * v)

    x = x_ref[0]                                       # (L, 22)

    # ----- encoder (keep pre-activations as skip connections) --------------
    pre256 = conv3(x, wc256, bc256)
    h = prelu(pre256, a256)
    pre128 = conv3(h, wc128, bc128)
    h = prelu(pre128, a128)
    pre64 = conv3(h, wc64, bc64)
    h = prelu(pre64, a64)
    pre32 = conv3(h, wc32, bc32)
    h = prelu(pre32, a32)
    encoded = conv3(h, wc1, bc1)                       # (L, 1), no PReLU

    # ----- decoder ----------------------------------------------------------
    h = prelu(conv3(encoded, wu32, bu32, residual=pre32), a32)
    h = prelu(conv3(h, wu64, bu64, residual=pre64), a64)
    h = prelu(conv3(h, wu128, bu128, residual=pre128), a128)
    d256 = conv3(h, wu256, bu256, residual=pre256)     # no PReLU

    # downsample: true 1x1 conv (single matmul, no halo, no zero taps)
    recon = (jnp.dot(d256, wdn[...], preferred_element_type=jnp.float32)
             + bdn[...] + x)

    enc_ref[0] = encoded.astype(enc_ref.dtype)
    recon_ref[0] = recon.astype(recon_ref.dtype)


# ----------------------------------------------------------------------------
# Wrapper: one pallas_call for the whole network.
# ----------------------------------------------------------------------------
_WEIGHT_NAMES = ["conv256", "conv128", "conv64", "conv32", "conv1",
                 "up32", "up64", "up128", "up256"]


def encoder_forward(x_ncl, params):
    """x_ncl: (B, 22, L) -> (encoded (B,1,L), recon (B,22,L))."""
    x = jnp.transpose(x_ncl, (0, 2, 1)).astype(jnp.float32)   # (B, L, 22)
    B, L, C0 = x.shape

    inputs = [x]
    in_specs = [pl.BlockSpec((1, L, C0), lambda b: (b, 0, 0))]

    for name in _WEIGHT_NAMES:
        w = params[f"w_{name}"].astype(jnp.float32)            # (3, Cin, Cout)
        bvec = params[f"b_{name}"].astype(jnp.float32)
        K, Ci, Co = w.shape
        inputs += [w, bvec.reshape(1, Co)]
        in_specs += [pl.BlockSpec((K, Ci, Co), lambda b: (0, 0, 0)),
                     pl.BlockSpec((1, Co), lambda b: (0, 0))]

    wdn = params["w_down"].astype(jnp.float32)                 # (256, 22)
    bdn = params["b_down"].astype(jnp.float32).reshape(1, -1)  # (1, 22)
    inputs += [wdn, bdn]
    in_specs += [pl.BlockSpec(wdn.shape, lambda b: (0, 0)),
                 pl.BlockSpec(bdn.shape, lambda b: (0, 0))]

    for aname in ["a256", "a128", "a64", "a32"]:
        a = params[aname].astype(jnp.float32).reshape(1, -1)
        inputs.append(a)
        in_specs.append(pl.BlockSpec(a.shape, lambda b: (0, 0)))

    out_shape = (jax.ShapeDtypeStruct((B, L, 1), jnp.float32),
                 jax.ShapeDtypeStruct((B, L, C0), jnp.float32))
    out_specs = [pl.BlockSpec((1, L, 1), lambda b: (b, 0, 0)),
                 pl.BlockSpec((1, L, C0), lambda b: (b, 0, 0))]

    encoded, recon = pl.pallas_call(
        _fused_encoder_kernel,
        out_shape=out_shape,
        grid_spec=pltpu.PrefetchScalarGridSpec(
            num_scalar_prefetch=0,
            grid=(B,),
            in_specs=in_specs,
            out_specs=out_specs),
        compiler_params=pltpu.CompilerParams(
            dimension_semantics=("parallel",)),
    )(*inputs)

    encoded_ncl = jnp.transpose(encoded, (0, 2, 1))    # (B, 1, L)
    recon_ncl = jnp.transpose(recon, (0, 2, 1))        # (B, 22, L)
    return encoded_ncl, recon_ncl


# ----------------------------------------------------------------------------
# Pure-JAX reference (identical math) for the numerical sanity check.
# ----------------------------------------------------------------------------
def reference_forward(x_ncl, p):
    x = jnp.transpose(x_ncl, (0, 2, 1)).astype(jnp.float32)   # (B, L, 22)

    def conv3(h, w, b, residual=None):
        L = h.shape[1]
        hp = jnp.pad(h, ((0, 0), (1, 1), (0, 0)))
        pre = (jnp.einsum('bli,io->blo', hp[:, 0:L], w[0]) +
               jnp.einsum('bli,io->blo', hp[:, 1:L + 1], w[1]) +
               jnp.einsum('bli,io->blo', hp[:, 2:L + 2], w[2]) +
               b[None, None, :])
        if residual is not None:
            pre = pre + residual
        return pre

    def prelu(v, a):
        return jnp.where(v >= 0, v, a[None, None, :] * v)

    pre256 = conv3(x, p["w_conv256"], p["b_conv256"])
    h = prelu(pre256, p["a256"])
    pre128 = conv3(h, p["w_conv128"], p["b_conv128"])
    h = prelu(pre128, p["a128"])
    pre64 = conv3(h, p["w_conv64"], p["b_conv64"])
    h = prelu(pre64, p["a64"])
    pre32 = conv3(h, p["w_conv32"], p["b_conv32"])
    h = prelu(pre32, p["a32"])
    encoded = conv3(h, p["w_conv1"], p["b_conv1"])

    h = prelu(conv3(encoded, p["w_up32"], p["b_up32"], pre32), p["a32"])
    h = prelu(conv3(h, p["w_up64"], p["b_up64"], pre64), p["a64"])
    h = prelu(conv3(h, p["w_up128"], p["b_up128"], pre128), p["a128"])
    d256 = conv3(h, p["w_up256"], p["b_up256"], pre256)
    recon = (jnp.einsum('bli,io->blo', d256, p["w_down"]) +
             p["b_down"][None, None, :] + x)

    return jnp.transpose(encoded, (0, 2, 1)), jnp.transpose(recon, (0, 2, 1))


# ----------------------------------------------------------------------------
# Deterministic synthetic parameters (PyTorch-default-style uniform init).
# ----------------------------------------------------------------------------
def init_params(seed=0):
    key = jax.random.PRNGKey(seed)
    ks = iter(jax.random.split(key, 32))

    def uni(shape, fan):
        bound = 1.0 / math.sqrt(fan)
        return jax.random.uniform(next(ks), shape, jnp.float32, -bound, bound)

    p = {}
    # Conv1d: torch weight (Cout, Cin, 3) -> taps (3, Cin, Cout)
    for name, cin, cout in [("conv256", 22, 256), ("conv128", 256, 128),
                            ("conv64", 128, 64), ("conv32", 64, 32),
                            ("conv1", 32, 1)]:
        w = uni((cout, cin, 3), cin * 3)
        p[f"w_{name}"] = jnp.transpose(w, (2, 1, 0))
        p[f"b_{name}"] = uni((cout,), cin * 3)

    # ConvTranspose1d (k=3, stride=1, pad=1): torch weight (Cin, Cout, 3).
    # Equivalent forward-conv taps: flip along K, layout (3, Cin, Cout).
    for name, cin, cout in [("up32", 1, 32), ("up64", 32, 64),
                            ("up128", 64, 128), ("up256", 128, 256)]:
        w = uni((cin, cout, 3), cin * 3)
        p[f"w_{name}"] = jnp.transpose(jnp.flip(w, axis=2), (2, 0, 1))
        p[f"b_{name}"] = uni((cout,), cin * 3)

    # downsample: ConvTranspose1d(256 -> 22, k=1, stride=1) == 1x1 conv.
    wds = uni((256, 22, 1), 256)
    p["w_down"] = wds[:, :, 0]                      # (256, 22)
    p["b_down"] = uni((22,), 256)

    # PReLU slopes (PyTorch default init = 0.25, one per channel)
    p["a256"] = jnp.full((256,), 0.25, jnp.float32)
    p["a128"] = jnp.full((128,), 0.25, jnp.float32)
    p["a64"] = jnp.full((64,), 0.25, jnp.float32)
    p["a32"] = jnp.full((32,), 0.25, jnp.float32)
    return p


# TODO(synk): train_model (optimizer / checkpointing loop) is host-side
# training code, not part of the forward pass, and is not translated.

if __name__ == "__main__":
    B, C, L = 2, 22, 16                      # channel count fixed by module
    x = jax.random.normal(jax.random.PRNGKey(0), (B, C, L), jnp.float32)
    params = init_params(seed=0)

    encoded, recon = jax.jit(encoder_forward)(x, params)
    jax.block_until_ready((encoded, recon))

    assert encoded.shape == (B, 1, L), encoded.shape
    assert recon.shape == (B, C, L), recon.shape

    enc_ref, rec_ref = reference_forward(x, params)
    assert jnp.allclose(encoded, enc_ref, atol=1e-4, rtol=1e-4)
    assert jnp.allclose(recon, rec_ref, atol=1e-4, rtol=1e-4)

    print("KERNEL_OK")
</pallas_src>

<mosaic_0001>
module attributes {stable_mosaic.version = 11 : i64} {
  func.func @_fused_encoder_kernel(%arg0: i32, %arg1: memref<1x16x22xf32, #tpu.memory_space<vmem>>, %arg2: memref<3x22x256xf32, #tpu.memory_space<vmem>>, %arg3: memref<1x256xf32, #tpu.memory_space<vmem>>, %arg4: memref<3x256x128xf32, #tpu.memory_space<vmem>>, %arg5: memref<1x128xf32, #tpu.memory_space<vmem>>, %arg6: memref<3x128x64xf32, #tpu.memory_space<vmem>>, %arg7: memref<1x64xf32, #tpu.memory_space<vmem>>, %arg8: memref<3x64x32xf32, #tpu.memory_space<vmem>>, %arg9: memref<1x32xf32, #tpu.memory_space<vmem>>, %arg10: memref<3x32x1xf32, #tpu.memory_space<vmem>>, %arg11: memref<1x1xf32, #tpu.memory_space<vmem>>, %arg12: memref<3x1x32xf32, #tpu.memory_space<vmem>>, %arg13: memref<1x32xf32, #tpu.memory_space<vmem>>, %arg14: memref<3x32x64xf32, #tpu.memory_space<vmem>>, %arg15: memref<1x64xf32, #tpu.memory_space<vmem>>, %arg16: memref<3x64x128xf32, #tpu.memory_space<vmem>>, %arg17: memref<1x128xf32, #tpu.memory_space<vmem>>, %arg18: memref<3x128x256xf32, #tpu.memory_space<vmem>>, %arg19: memref<1x256xf32, #tpu.memory_space<vmem>>, %arg20: memref<256x22xf32, #tpu.memory_space<vmem>>, %arg21: memref<1x22xf32, #tpu.memory_space<vmem>>, %arg22: memref<1x256xf32, #tpu.memory_space<vmem>>, %arg23: memref<1x128xf32, #tpu.memory_space<vmem>>, %arg24: memref<1x64xf32, #tpu.memory_space<vmem>>, %arg25: memref<1x32xf32, #tpu.memory_space<vmem>>, %arg26: memref<1x16x1xf32, #tpu.memory_space<vmem>>, %arg27: memref<1x16x22xf32, #tpu.memory_space<vmem>>) attributes {dimension_semantics = [#tpu.dimension_semantics<parallel>], iteration_bounds = array<i64: 2>, scalar_prefetch = 0 : i64, scratch_operands = 0 : i64, tpu.core_type = #tpu.core_type<tc>, window_params = [{transform_indices = @transform_0, window_bounds = array<i64: 1, 16, 22>}, {pipeline_mode = #tpu.pipeline_mode<synchronous>, transform_indices = @transform_1, window_bounds = array<i64: 3, 22, 256>}, {pipeline_mode = #tpu.pipeline_mode<synchronous>, transform_indices = @transform_2, window_bounds = array<i64: 1, 256>}, {pipeline_mode = #tpu.pipeline_mode<synchronous>, transform_indices = @transform_3, window_bounds = array<i64: 3, 256, 128>}, {pipeline_mode = #tpu.pipeline_mode<synchronous>, transform_indices = @transform_4, window_bounds = array<i64: 1, 128>}, {pipeline_mode = #tpu.pipeline_mode<synchronous>, transform_indices = @transform_5, window_bounds = array<i64: 3, 128, 64>}, {pipeline_mode = #tpu.pipeline_mode<synchronous>, transform_indices = @transform_6, window_bounds = array<i64: 1, 64>}, {pipeline_mode = #tpu.pipeline_mode<synchronous>, transform_indices = @transform_7, window_bounds = array<i64: 3, 64, 32>}, {pipeline_mode = #tpu.pipeline_mode<synchronous>, transform_indices = @transform_8, window_bounds = array<i64: 1, 32>}, {pipeline_mode = #tpu.pipeline_mode<synchronous>, transform_indices = @transform_9, window_bounds = array<i64: 3, 32, 1>}, {pipeline_mode = #tpu.pipeline_mode<synchronous>, transform_indices = @transform_10, window_bounds = array<i64: 1, 1>}, {pipeline_mode = #tpu.pipeline_mode<synchronous>, transform_indices = @transform_11, window_bounds = array<i64: 3, 1, 32>}, {pipeline_mode = #tpu.pipeline_mode<synchronous>, transform_indices = @transform_12, window_bounds = array<i64: 1, 32>}, {pipeline_mode = #tpu.pipeline_mode<synchronous>, transform_indices = @transform_13, window_bounds = array<i64: 3, 32, 64>}, {pipeline_mode = #tpu.pipeline_mode<synchronous>, transform_indices = @transform_14, window_bounds = array<i64: 1, 64>}, {pipeline_mode = #tpu.pipeline_mode<synchronous>, transform_indices = @transform_15, window_bounds = array<i64: 3, 64, 128>}, {pipeline_mode = #tpu.pipeline_mode<synchronous>, transform_indices = @transform_16, window_bounds = array<i64: 1, 128>}, {pipeline_mode = #tpu.pipeline_mode<synchronous>, transform_indices = @transform_17, window_bounds = array<i64: 3, 128, 256>}, {pipeline_mode = #tpu.pipeline_mode<synchronous>, transform_indices = @transform_18, window_bounds = array<i64: 1, 256>}, {pipeline_mode = #tpu.pipeline_mode<synchronous>, transform_indices = @transform_19, window_bounds = array<i64: 256, 22>}, {pipeline_mode = #tpu.pipeline_mode<synchronous>, transform_indices = @transform_20, window_bounds = array<i64: 1, 22>}, {pipeline_mode = #tpu.pipeline_mode<synchronous>, transform_indices = @transform_21, window_bounds = array<i64: 1, 256>}, {pipeline_mode = #tpu.pipeline_mode<synchronous>, transform_indices = @transform_22, window_bounds = array<i64: 1, 128>}, {pipeline_mode = #tpu.pipeline_mode<synchronous>, transform_indices = @transform_23, window_bounds = array<i64: 1, 64>}, {pipeline_mode = #tpu.pipeline_mode<synchronous>, transform_indices = @transform_24, window_bounds = array<i64: 1, 32>}, {transform_indices = @transform_25, window_bounds = array<i64: 1, 16, 1>}, {transform_indices = @transform_26, window_bounds = array<i64: 1, 16, 22>}]} {
    %c0 = arith.constant 0 : index
    %c0_0 = arith.constant 0 : index
    %c0_1 = arith.constant 0 : index
    %0 = vector.load %arg1[%c0, %c0_0, %c0_1] : memref<1x16x22xf32, #tpu.memory_space<vmem>>, vector<1x16x22xf32>
    %1 = vector.shape_cast %0 : vector<1x16x22xf32> to vector<16x22xf32>
    %2 = tpu.iota {dimensions = array<i32: 0>} : vector<16x22xi32>
    %c0_i32 = arith.constant 0 : i32
    %3 = vector.broadcast %c0_i32 : i32 to vector<16x22xi32>
    %4 = arith.cmpi eq, %2, %3 : vector<16x22xi32>
    %c1_i32 = arith.constant 1 : i32
    %5 = tpu.dynamic_rotate %1 by %c1_i32 dim 0 : vector<16x22xf32>, i32 -> vector<16x22xf32>
    %cst = arith.constant 0.000000e+00 : f32
    %6 = vector.broadcast %cst : f32 to vector<16x22xf32>
    %7 = arith.select %4, %6, %5 : vector<16x22xi1>, vector<16x22xf32>
    %c15_i32 = arith.constant 15 : i32
    %8 = vector.broadcast %c15_i32 : i32 to vector<16x22xi32>
    %9 = arith.cmpi eq, %2, %8 : vector<16x22xi32>
    %c15_i32_2 = arith.constant 15 : i32
    %10 = tpu.dynamic_rotate %1 by %c15_i32_2 dim 0 : vector<16x22xf32>, i32 -> vector<16x22xf32>
    %cst_3 = arith.constant 0.000000e+00 : f32
    %11 = vector.broadcast %cst_3 : f32 to vector<16x22xf32>
    %12 = arith.select %9, %11, %10 : vector<16x22xi1>, vector<16x22xf32>
    %c0_4 = arith.constant 0 : index
    %c0_5 = arith.constant 0 : index
    %c0_6 = arith.constant 0 : index
    %13 = vector.load %arg2[%c0_4, %c0_5, %c0_6] : memref<3x22x256xf32, #tpu.memory_space<vmem>>, vector<1x22x256xf32>
    %14 = vector.shape_cast %13 : vector<1x22x256xf32> to vector<22x256xf32>
    %cst_7 = arith.constant dense<0.000000e+00> : vector<16x256xf32>
    %15 = tpu.matmul %7, %14, %cst_7 {dimension_numbers = #tpu.dot_dimension_numbers<[1], [0], [0], [1], [0, 0, 1, 1], [], []>} : vector<16x22xf32>, vector<22x256xf32>, vector<16x256xf32> -> vector<16x256xf32>
    %c1 = arith.constant 1 : index
    %c0_8 = arith.constant 0 : index
    %c0_9 = arith.constant 0 : index
    %16 = vector.load %arg2[%c1, %c0_8, %c0_9] : memref<3x22x256xf32, #tpu.memory_space<vmem>>, vector<1x22x256xf32>
    %17 = vector.shape_cast %16 : vector<1x22x256xf32> to vector<22x256xf32>
    %cst_10 = arith.constant dense<0.000000e+00> : vector<16x256xf32>
    %18 = tpu.matmul %1, %17, %cst_10 {dimension_numbers = #tpu.dot_dimension_numbers<[1], [0], [0], [1], [0, 0, 1, 1], [], []>} : vector<16x22xf32>, vector<22x256xf32>, vector<16x256xf32> -> vector<16x256xf32>
    %19 = arith.addf %15, %18 : vector<16x256xf32>
    %c2 = arith.constant 2 : index
    %c0_11 = arith.constant 0 : index
    %c0_12 = arith.constant 0 : index
    %20 = vector.load %arg2[%c2, %c0_11, %c0_12] : memref<3x22x256xf32, #tpu.memory_space<vmem>>, vector<1x22x256xf32>
    %21 = vector.shape_cast %20 : vector<1x22x256xf32> to vector<22x256xf32>
    %cst_13 = arith.constant dense<0.000000e+00> : vector<16x256xf32>
    %22 = tpu.matmul %12, %21, %cst_13 {dimension_numbers = #tpu.dot_dimension_numbers<[1], [0], [0], [1], [0, 0, 1, 1], [], []>} : vector<16x22xf32>, vector<22x256xf32>, vector<16x256xf32> -> vector<16x256xf32>
    %23 = arith.addf %19, %22 : vector<16x256xf32>
    %c0_14 = arith.constant 0 : index
    %c0_15 = arith.constant 0 : index
    %24 = vector.load %arg3[%c0_14, %c0_15] : memref<1x256xf32, #tpu.memory_space<vmem>>, vector<1x256xf32>
    %25 = vector.broadcast %24 : vector<1x256xf32> to vector<16x256xf32>
    %26 = arith.addf %23, %25 : vector<16x256xf32>
    %c0_16 = arith.constant 0 : index
    %c0_17 = arith.constant 0 : index
    %27 = vector.load %arg22[%c0_16, %c0_17] : memref<1x256xf32, #tpu.memory_space<vmem>>, vector<1x256xf32>
    %cst_18 = arith.constant 0.000000e+00 : f32
    %28 = vector.broadcast %cst_18 : f32 to vector<16x256xf32>
    %29 = arith.cmpf oge, %26, %28 : vector<16x256xf32>
    %30 = vector.broadcast %27 : vector<1x256xf32> to vector<16x256xf32>
    %31 = arith.mulf %30, %26 : vector<16x256xf32>
    %32 = arith.select %29, %26, %31 : vector<16x256xi1>, vector<16x256xf32>
    %33 = tpu.iota {dimensions = array<i32: 0>} : vector<16x256xi32>
    %c0_i32_19 = arith.constant 0 : i32
    %34 = vector.broadcast %c0_i32_19 : i32 to vector<16x256xi32>
    %35 = arith.cmpi eq, %33, %34 : vector<16x256xi32>
    %c1_i32_20 = arith.constant 1 : i32
    %36 = tpu.dynamic_rotate %32 by %c1_i32_20 dim 0 : vector<16x256xf32>, i32 -> vector<16x256xf32>
    %cst_21 = arith.constant 0.000000e+00 : f32
    %37 = vector.broadcast %cst_21 : f32 to vector<16x256xf32>
    %38 = arith.select %35, %37, %36 : vector<16x256xi1>, vector<16x256xf32>
    %c15_i32_22 = arith.constant 15 : i32
    %39 = vector.broadcast %c15_i32_22 : i32 to vector<16x256xi32>
    %40 = arith.cmpi eq, %33, %39 : vector<16x256xi32>
    %c15_i32_23 = arith.constant 15 : i32
    %41 = tpu.dynamic_rotate %32 by %c15_i32_23 dim 0 : vector<16x256xf32>, i32 -> vector<16x256xf32>
    %cst_24 = arith.constant 0.000000e+00 : f32
    %42 = vector.broadcast %cst_24 : f32 to vector<16x256xf32>
    %43 = arith.select %40, %42, %41 : vector<16x256xi1>, vector<16x256xf32>
    %c0_25 = arith.constant 0 : index
    %c0_26 = arith.constant 0 : index
    %c0_27 = arith.constant 0 : index
    %44 = vector.load %arg4[%c0_25, %c0_26, %c0_27] : memref<3x256x128xf32, #tpu.memory_space<vmem>>, vector<1x256x128xf32>
    %45 = vector.shape_cast %44 : vector<1x256x128xf32> to vector<256x128xf32>
    %cst_28 = arith.constant dense<0.000000e+00> : vector<16x128xf32>
    %46 = tpu.matmul %38, %45, %cst_28 {dimension_numbers = #tpu.dot_dimension_numbers<[1], [0], [0], [1], [0, 0, 1, 1], [], []>} : vector<16x256xf32>, vector<256x128xf32>, vector<16x128xf32> -> vector<16x128xf32>
    %c1_29 = arith.constant 1 : index
    %c0_30 = arith.constant 0 : index
    %c0_31 = arith.constant 0 : index
    %47 = vector.load %arg4[%c1_29, %c0_30, %c0_31] : memref<3x256x128xf32, #tpu.memory_space<vmem>>, vector<1x256x128xf32>
    %48 = vector.shape_cast %47 : vector<1x256x128xf32> to vector<256x128xf32>
    %cst_32 = arith.constant dense<0.000000e+00> : vector<16x128xf32>
    %49 = tpu.matmul %32, %48, %cst_32 {dimension_numbers = #tpu.dot_dimension_numbers<[1], [0], [0], [1], [0, 0, 1, 1], [], []>} : vector<16x256xf32>, vector<256x128xf32>, vector<16x128xf32> -> vector<16x128xf32>
    %50 = arith.addf %46, %49 : vector<16x128xf32>
    %c2_33 = arith.constant 2 : index
    %c0_34 = arith.constant 0 : index
    %c0_35 = arith.constant 0 : index
    %51 = vector.load %arg4[%c2_33, %c0_34, %c0_35] : memref<3x256x128xf32, #tpu.memory_space<vmem>>, vector<1x256x128xf32>
    %52 = vector.shape_cast %51 : vector<1x256x128xf32> to vector<256x128xf32>
    %cst_36 = arith.constant dense<0.000000e+00> : vector<16x128xf32>
    %53 = tpu.matmul %43, %52, %cst_36 {dimension_numbers = #tpu.dot_dimension_numbers<[1], [0], [0], [1], [0, 0, 1, 1], [], []>} : vector<16x256xf32>, vector<256x128xf32>, vector<16x128xf32> -> vector<16x128xf32>
    %54 = arith.addf %50, %53 : vector<16x128xf32>
    %c0_37 = arith.constant 0 : index
    %c0_38 = arith.constant 0 : index
    %55 = vector.load %arg5[%c0_37, %c0_38] : memref<1x128xf32, #tpu.memory_space<vmem>>, vector<1x128xf32>
    %56 = vector.broadcast %55 : vector<1x128xf32> to vector<16x128xf32>
    %57 = arith.addf %54, %56 : vector<16x128xf32>
    %c0_39 = arith.constant 0 : index
    %c0_40 = arith.constant 0 : index
    %58 = vector.load %arg23[%c0_39, %c0_40] : memref<1x128xf32, #tpu.memory_space<vmem>>, vector<1x128xf32>
    %cst_41 = arith.constant 0.000000e+00 : f32
    %59 = vector.broadcast %cst_41 : f32 to vector<16x128xf32>
    %60 = arith.cmpf oge, %57, %59 : vector<16x128xf32>
    %61 = vector.broadcast %58 : vector<1x128xf32> to vector<16x128xf32>
    %62 = arith.mulf %61, %57 : vector<16x128xf32>
    %63 = arith.select %60, %57, %62 : vector<16x128xi1>, vector<16x128xf32>
    %64 = tpu.iota {dimensions = array<i32: 0>} : vector<16x128xi32>
    %c0_i32_42 = arith.constant 0 : i32
    %65 = vector.broadcast %c0_i32_42 : i32 to vector<16x128xi32>
    %66 = arith.cmpi eq, %64, %65 : vector<16x128xi32>
    %c1_i32_43 = arith.constant 1 : i32
    %67 = tpu.dynamic_rotate %63 by %c1_i32_43 dim 0 : vector<16x128xf32>, i32 -> vector<16x128xf32>
    %cst_44 = arith.constant 0.000000e+00 : f32
    %68 = vector.broadcast %cst_44 : f32 to vector<16x128xf32>
    %69 = arith.select %66, %68, %67 : vector<16x128xi1>, vector<16x128xf32>
    %c15_i32_45 = arith.constant 15 : i32
    %70 = vector.broadcast %c15_i32_45 : i32 to vector<16x128xi32>
    %71 = arith.cmpi eq, %64, %70 : vector<16x128xi32>
    %c15_i32_46 = arith.constant 15 : i32
    %72 = tpu.dynamic_rotate %63 by %c15_i32_46 dim 0 : vector<16x128xf32>, i32 -> vector<16x128xf32>
    %cst_47 = arith.constant 0.000000e+00 : f32
    %73 = vector.broadcast %cst_47 : f32 to vector<16x128xf32>
    %74 = arith.select %71, %73, %72 : vector<16x128xi1>, vector<16x128xf32>
    %c0_48 = arith.constant 0 : index
    %c0_49 = arith.constant 0 : index
    %c0_50 = arith.constant 0 : index
    %75 = vector.load %arg6[%c0_48, %c0_49, %c0_50] : memref<3x128x64xf32, #tpu.memory_space<vmem>>, vector<1x128x64xf32>
    %76 = vector.shape_cast %75 : vector<1x128x64xf32> to vector<128x64xf32>
    %cst_51 = arith.constant dense<0.000000e+00> : vector<16x64xf32>
    %77 = tpu.matmul %69, %76, %cst_51 {dimension_numbers = #tpu.dot_dimension_numbers<[1], [0], [0], [1], [0, 0, 1, 1], [], []>} : vector<16x128xf32>, vector<128x64xf32>, vector<16x64xf32> -> vector<16x64xf32>
    %c1_52 = arith.constant 1 : index
    %c0_53 = arith.constant 0 : index
    %c0_54 = arith.constant 0 : index
    %78 = vector.load %arg6[%c1_52, %c0_53, %c0_54] : memref<3x128x64xf32, #tpu.memory_space<vmem>>, vector<1x128x64xf32>
    %79 = vector.shape_cast %78 : vector<1x128x64xf32> to vector<128x64xf32>
    %cst_55 = arith.constant dense<0.000000e+00> : vector<16x64xf32>
    %80 = tpu.matmul %63, %79, %cst_55 {dimension_numbers = #tpu.dot_dimension_numbers<[1], [0], [0], [1], [0, 0, 1, 1], [], []>} : vector<16x128xf32>, vector<128x64xf32>, vector<16x64xf32> -> vector<16x64xf32>
    %81 = arith.addf %77, %80 : vector<16x64xf32>
    %c2_56 = arith.constant 2 : index
    %c0_57 = arith.constant 0 : index
    %c0_58 = arith.constant 0 : index
    %82 = vector.load %arg6[%c2_56, %c0_57, %c0_58] : memref<3x128x64xf32, #tpu.memory_space<vmem>>, vector<1x128x64xf32>
    %83 = vector.shape_cast %82 : vector<1x128x64xf32> to vector<128x64xf32>
    %cst_59 = arith.constant dense<0.000000e+00> : vector<16x64xf32>
    %84 = tpu.matmul %74, %83, %cst_59 {dimension_numbers = #tpu.dot_dimension_numbers<[1], [0], [0], [1], [0, 0, 1, 1], [], []>} : vector<16x128xf32>, vector<128x64xf32>, vector<16x64xf32> -> vector<16x64xf32>
    %85 = arith.addf %81, %84 : vector<16x64xf32>
    %c0_60 = arith.constant 0 : index
    %c0_61 = arith.constant 0 : index
    %86 = vector.load %arg7[%c0_60, %c0_61] : memref<1x64xf32, #tpu.memory_space<vmem>>, vector<1x64xf32>
    %87 = vector.broadcast %86 : vector<1x64xf32> to vector<16x64xf32>
    %88 = arith.addf %85, %87 : vector<16x64xf32>
    %c0_62 = arith.constant 0 : index
    %c0_63 = arith.constant 0 : index
    %89 = vector.load %arg24[%c0_62, %c0_63] : memref<1x64xf32, #tpu.memory_space<vmem>>, vector<1x64xf32>
    %cst_64 = arith.constant 0.000000e+00 : f32
    %90 = vector.broadcast %cst_64 : f32 to vector<16x64xf32>
    %91 = arith.cmpf oge, %88, %90 : vector<16x64xf32>
    %92 = vector.broadcast %89 : vector<1x64xf32> to vector<16x64xf32>
    %93 = arith.mulf %92, %88 : vector<16x64xf32>
    %94 = arith.select %91, %88, %93 : vector<16x64xi1>, vector<16x64xf32>
    %95 = tpu.iota {dimensions = array<i32: 0>} : vector<16x64xi32>
    %c0_i32_65 = arith.constant 0 : i32
    %96 = vector.broadcast %c0_i32_65 : i32 to vector<16x64xi32>
    %97 = arith.cmpi eq, %95, %96 : vector<16x64xi32>
    %c1_i32_66 = arith.constant 1 : i32
    %98 = tpu.dynamic_rotate %94 by %c1_i32_66 dim 0 : vector<16x64xf32>, i32 -> vector<16x64xf32>
    %cst_67 = arith.constant 0.000000e+00 : f32
    %99 = vector.broadcast %cst_67 : f32 to vector<16x64xf32>
    %100 = arith.select %97, %99, %98 : vector<16x64xi1>, vector<16x64xf32>
    %c15_i32_68 = arith.constant 15 : i32
    %101 = vector.broadcast %c15_i32_68 : i32 to vector<16x64xi32>
    %102 = arith.cmpi eq, %95, %101 : vector<16x64xi32>
    %c15_i32_69 = arith.constant 15 : i32
    %103 = tpu.dynamic_rotate %94 by %c15_i32_69 dim 0 : vector<16x64xf32>, i32 -> vector<16x64xf32>
    %cst_70 = arith.constant 0.000000e+00 : f32
    %104 = vector.broadcast %cst_70 : f32 to vector<16x64xf32>
    %105 = arith.select %102, %104, %103 : vector<16x64xi1>, vector<16x64xf32>
    %c0_71 = arith.constant 0 : index
    %c0_72 = arith.constant 0 : index
    %c0_73 = arith.constant 0 : index
    %106 = vector.load %arg8[%c0_71, %c0_72, %c0_73] : memref<3x64x32xf32, #tpu.memory_space<vmem>>, vector<1x64x32xf32>
    %107 = vector.shape_cast %106 : vector<1x64x32xf32> to vector<64x32xf32>
    %cst_74 = arith.constant dense<0.000000e+00> : vector<16x32xf32>
    %108 = tpu.matmul %100, %107, %cst_74 {dimension_numbers = #tpu.dot_dimension_numbers<[1], [0], [0], [1], [0, 0, 1, 1], [], []>} : vector<16x64xf32>, vector<64x32xf32>, vector<16x32xf32> -> vector<16x32xf32>
    %c1_75 = arith.constant 1 : index
    %c0_76 = arith.constant 0 : index
    %c0_77 = arith.constant 0 : index
    %109 = vector.load %arg8[%c1_75, %c0_76, %c0_77] : memref<3x64x32xf32, #tpu.memory_space<vmem>>, vector<1x64x32xf32>
    %110 = vector.shape_cast %109 : vector<1x64x32xf32> to vector<64x32xf32>
    %cst_78 = arith.constant dense<0.000000e+00> : vector<16x32xf32>
    %111 = tpu.matmul %94, %110, %cst_78 {dimension_numbers = #tpu.dot_dimension_numbers<[1], [0], [0], [1], [0, 0, 1, 1], [], []>} : vector<16x64xf32>, vector<64x32xf32>, vector<16x32xf32> -> vector<16x32xf32>
    %112 = arith.addf %108, %111 : vector<16x32xf32>
    %c2_79 = arith.constant 2 : index
    %c0_80 = arith.constant 0 : index
    %c0_81 = arith.constant 0 : index
    %113 = vector.load %arg8[%c2_79, %c0_80, %c0_81] : memref<3x64x32xf32, #tpu.memory_space<vmem>>, vector<1x64x32xf32>
    %114 = vector.shape_cast %113 : vector<1x64x32xf32> to vector<64x32xf32>
    %cst_82 = arith.constant dense<0.000000e+00> : vector<16x32xf32>
    %115 = tpu.matmul %105, %114, %cst_82 {dimension_numbers = #tpu.dot_dimension_numbers<[1], [0], [0], [1], [0, 0, 1, 1], [], []>} : vector<16x64xf32>, vector<64x32xf32>, vector<16x32xf32> -> vector<16x32xf32>
    %116 = arith.addf %112, %115 : vector<16x32xf32>
    %c0_83 = arith.constant 0 : index
    %c0_84 = arith.constant 0 : index
    %117 = vector.load %arg9[%c0_83, %c0_84] : memref<1x32xf32, #tpu.memory_space<vmem>>, vector<1x32xf32>
    %118 = vector.broadcast %117 : vector<1x32xf32> to vector<16x32xf32>
    %119 = arith.addf %116, %118 : vector<16x32xf32>
    %c0_85 = arith.constant 0 : index
    %c0_86 = arith.constant 0 : index
    %120 = vector.load %arg25[%c0_85, %c0_86] : memref<1x32xf32, #tpu.memory_space<vmem>>, vector<1x32xf32>
    %cst_87 = arith.constant 0.000000e+00 : f32
    %121 = vector.broadcast %cst_87 : f32 to vector<16x32xf32>
    %122 = arith.cmpf oge, %119, %121 : vector<16x32xf32>
    %123 = vector.broadcast %120 : vector<1x32xf32> to vector<16x32xf32>
    %124 = arith.mulf %123, %119 : vector<16x32xf32>
    %125 = arith.select %122, %119, %124 : vector<16x32xi1>, vector<16x32xf32>
    %126 = tpu.iota {dimensions = array<i32: 0>} : vector<16x32xi32>
    %c0_i32_88 = arith.constant 0 : i32
    %127 = vector.broadcast %c0_i32_88 : i32 to vector<16x32xi32>
    %128 = arith.cmpi eq, %126, %127 : vector<16x32xi32>
    %c1_i32_89 = arith.constant 1 : i32
    %129 = tpu.dynamic_rotate %125 by %c1_i32_89 dim 0 : vector<16x32xf32>, i32 -> vector<16x32xf32>
    %cst_90 = arith.constant 0.000000e+00 : f32
    %130 = vector.broadcast %cst_90 : f32 to vector<16x32xf32>
    %131 = arith.select %128, %130, %129 : vector<16x32xi1>, vector<16x32xf32>
    %c15_i32_91 = arith.constant 15 : i32
    %132 = vector.broadcast %c15_i32_91 : i32 to vector<16x32xi32>
    %133 = arith.cmpi eq, %126, %132 : vector<16x32xi32>
    %c15_i32_92 = arith.constant 15 : i32
    %134 = tpu.dynamic_rotate %125 by %c15_i32_92 dim 0 : vector<16x32xf32>, i32 -> vector<16x32xf32>
    %cst_93 = arith.constant 0.000000e+00 : f32
    %135 = vector.broadcast %cst_93 : f32 to vector<16x32xf32>
    %136 = arith.select %133, %135, %134 : vector<16x32xi1>, vector<16x32xf32>
    %c0_94 = arith.constant 0 : index
    %c0_95 = arith.constant 0 : index
    %c0_96 = arith.constant 0 : index
    %137 = vector.load %arg10[%c0_94, %c0_95, %c0_96] : memref<3x32x1xf32, #tpu.memory_space<vmem>>, vector<1x32x1xf32>
    %138 = vector.shape_cast %137 : vector<1x32x1xf32> to vector<32x1xf32>
    %cst_97 = arith.constant dense<0.000000e+00> : vector<16x1xf32>
    %139 = tpu.matmul %131, %138, %cst_97 {dimension_numbers = #tpu.dot_dimension_numbers<[1], [0], [0], [1], [0, 0, 1, 1], [], []>} : vector<16x32xf32>, vector<32x1xf32>, vector<16x1xf32> -> vector<16x1xf32>
    %c1_98 = arith.constant 1 : index
    %c0_99 = arith.constant 0 : index
    %c0_100 = arith.constant 0 : index
    %140 = vector.load %arg10[%c1_98, %c0_99, %c0_100] : memref<3x32x1xf32, #tpu.memory_space<vmem>>, vector<1x32x1xf32>
    %141 = vector.shape_cast %140 : vector<1x32x1xf32> to vector<32x1xf32>
    %cst_101 = arith.constant dense<0.000000e+00> : vector<16x1xf32>
    %142 = tpu.matmul %125, %141, %cst_101 {dimension_numbers = #tpu.dot_dimension_numbers<[1], [0], [0], [1], [0, 0, 1, 1], [], []>} : vector<16x32xf32>, vector<32x1xf32>, vector<16x1xf32> -> vector<16x1xf32>
    %143 = arith.addf %139, %142 : vector<16x1xf32>
    %c2_102 = arith.constant 2 : index
    %c0_103 = arith.constant 0 : index
    %c0_104 = arith.constant 0 : index
    %144 = vector.load %arg10[%c2_102, %c0_103, %c0_104] : memref<3x32x1xf32, #tpu.memory_space<vmem>>, vector<1x32x1xf32>
    %145 = vector.shape_cast %144 : vector<1x32x1xf32> to vector<32x1xf32>
    %cst_105 = arith.constant dense<0.000000e+00> : vector<16x1xf32>
    %146 = tpu.matmul %136, %145, %cst_105 {dimension_numbers = #tpu.dot_dimension_numbers<[1], [0], [0], [1], [0, 0, 1, 1], [], []>} : vector<16x32xf32>, vector<32x1xf32>, vector<16x1xf32> -> vector<16x1xf32>
    %147 = arith.addf %143, %146 : vector<16x1xf32>
    %c0_106 = arith.constant 0 : index
    %c0_107 = arith.constant 0 : index
    %148 = vector.load %arg11[%c0_106, %c0_107] : memref<1x1xf32, #tpu.memory_space<vmem>>, vector<1x1xf32>
    %149 = vector.broadcast %148 : vector<1x1xf32> to vector<16x1xf32>
    %150 = arith.addf %147, %149 : vector<16x1xf32>
    %151 = tpu.iota {dimensions = array<i32: 0>} : vector<16x1xi32>
    %c0_i32_108 = arith.constant 0 : i32
    %152 = vector.broadcast %c0_i32_108 : i32 to vector<16x1xi32>
    %153 = arith.cmpi eq, %151, %152 : vector<16x1xi32>
    %c1_i32_109 = arith.constant 1 : i32
    %154 = tpu.dynamic_rotate %150 by %c1_i32_109 dim 0 : vector<16x1xf32>, i32 -> vector<16x1xf32>
    %cst_110 = arith.constant 0.000000e+00 : f32
    %155 = vector.broadcast %cst_110 : f32 to vector<16x1xf32>
    %156 = arith.select %153, %155, %154 : vector<16x1xi1>, vector<16x1xf32>
    %c15_i32_111 = arith.constant 15 : i32
    %157 = vector.broadcast %c15_i32_111 : i32 to vector<16x1xi32>
    %158 = arith.cmpi eq, %151, %157 : vector<16x1xi32>
    %c15_i32_112 = arith.constant 15 : i32
    %159 = tpu.dynamic_rotate %150 by %c15_i32_112 dim 0 : vector<16x1xf32>, i32 -> vector<16x1xf32>
    %cst_113 = arith.constant 0.000000e+00 : f32
    %160 = vector.broadcast %cst_113 : f32 to vector<16x1xf32>
    %161 = arith.select %158, %160, %159 : vector<16x1xi1>, vector<16x1xf32>
    %c0_114 = arith.constant 0 : index
    %c0_115 = arith.constant 0 : index
    %c0_116 = arith.constant 0 : index
    %162 = vector.load %arg12[%c0_114, %c0_115, %c0_116] : memref<3x1x32xf32, #tpu.memory_space<vmem>>, vector<1x1x32xf32>
    %163 = vector.shape_cast %162 : vector<1x1x32xf32> to vector<1x32xf32>
    %cst_117 = arith.constant dense<0.000000e+00> : vector<16x32xf32>
    %164 = tpu.matmul %156, %163, %cst_117 {dimension_numbers = #tpu.dot_dimension_numbers<[1], [0], [0], [1], [0, 0, 1, 1], [], []>} : vector<16x1xf32>, vector<1x32xf32>, vector<16x32xf32> -> vector<16x32xf32>
    %c1_118 = arith.constant 1 : index
    %c0_119 = arith.constant 0 : index
    %c0_120 = arith.constant 0 : index
    %165 = vector.load %arg12[%c1_118, %c0_119, %c0_120] : memref<3x1x32xf32, #tpu.memory_space<vmem>>, vector<1x1x32xf32>
    %166 = vector.shape_cast %165 : vector<1x1x32xf32> to vector<1x32xf32>
    %cst_121 = arith.constant dense<0.000000e+00> : vector<16x32xf32>
    %167 = tpu.matmul %150, %166, %cst_121 {dimension_numbers = #tpu.dot_dimension_numbers<[1], [0], [0], [1], [0, 0, 1, 1], [], []>} : vector<16x1xf32>, vector<1x32xf32>, vector<16x32xf32> -> vector<16x32xf32>
    %168 = arith.addf %164, %167 : vector<16x32xf32>
    %c2_122 = arith.constant 2 : index
    %c0_123 = arith.constant 0 : index
    %c0_124 = arith.constant 0 : index
    %169 = vector.load %arg12[%c2_122, %c0_123, %c0_124] : memref<3x1x32xf32, #tpu.memory_space<vmem>>, vector<1x1x32xf32>
    %170 = vector.shape_cast %169 : vector<1x1x32xf32> to vector<1x32xf32>
    %cst_125 = arith.constant dense<0.000000e+00> : vector<16x32xf32>
    %171 = tpu.matmul %161, %170, %cst_125 {dimension_numbers = #tpu.dot_dimension_numbers<[1], [0], [0], [1], [0, 0, 1, 1], [], []>} : vector<16x1xf32>, vector<1x32xf32>, vector<16x32xf32> -> vector<16x32xf32>
    %172 = arith.addf %168, %171 : vector<16x32xf32>
    %c0_126 = arith.constant 0 : index
    %c0_127 = arith.constant 0 : index
    %173 = vector.load %arg13[%c0_126, %c0_127] : memref<1x32xf32, #tpu.memory_space<vmem>>, vector<1x32xf32>
    %174 = vector.broadcast %173 : vector<1x32xf32> to vector<16x32xf32>
    %175 = arith.addf %172, %174 : vector<16x32xf32>
    %176 = arith.addf %175, %119 : vector<16x32xf32>
    %c0_128 = arith.constant 0 : index
    %c0_129 = arith.constant 0 : index
    %177 = vector.load %arg25[%c0_128, %c0_129] : memref<1x32xf32, #tpu.memory_space<vmem>>, vector<1x32xf32>
    %cst_130 = arith.constant 0.000000e+00 : f32
    %178 = vector.broadcast %cst_130 : f32 to vector<16x32xf32>
    %179 = arith.cmpf oge, %176, %178 : vector<16x32xf32>
    %180 = vector.broadcast %177 : vector<1x32xf32> to vector<16x32xf32>
    %181 = arith.mulf %180, %176 : vector<16x32xf32>
    %182 = arith.select %179, %176, %181 : vector<16x32xi1>, vector<16x32xf32>
    %183 = tpu.iota {dimensions = array<i32: 0>} : vector<16x32xi32>
    %c0_i32_131 = arith.constant 0 : i32
    %184 = vector.broadcast %c0_i32_131 : i32 to vector<16x32xi32>
    %185 = arith.cmpi eq, %183, %184 : vector<16x32xi32>
    %c1_i32_132 = arith.constant 1 : i32
    %186 = tpu.dynamic_rotate %182 by %c1_i32_132 dim 0 : vector<16x32xf32>, i32 -> vector<16x32xf32>
    %cst_133 = arith.constant 0.000000e+00 : f32
    %187 = vector.broadcast %cst_133 : f32 to vector<16x32xf32>
    %188 = arith.select %185, %187, %186 : vector<16x32xi1>, vector<16x32xf32>
    %c15_i32_134 = arith.constant 15 : i32
    %189 = vector.broadcast %c15_i32_134 : i32 to vector<16x32xi32>
    %190 = arith.cmpi eq, %183, %189 : vector<16x32xi32>
    %c15_i32_135 = arith.constant 15 : i32
    %191 = tpu.dynamic_rotate %182 by %c15_i32_135 dim 0 : vector<16x32xf32>, i32 -> vector<16x32xf32>
    %cst_136 = arith.constant 0.000000e+00 : f32
    %192 = vector.broadcast %cst_136 : f32 to vector<16x32xf32>
    %193 = arith.select %190, %192, %191 : vector<16x32xi1>, vector<16x32xf32>
    %c0_137 = arith.constant 0 : index
    %c0_138 = arith.constant 0 : index
    %c0_139 = arith.constant 0 : index
    %194 = vector.load %arg14[%c0_137, %c0_138, %c0_139] : memref<3x32x64xf32, #tpu.memory_space<vmem>>, vector<1x32x64xf32>
    %195 = vector.shape_cast %194 : vector<1x32x64xf32> to vector<32x64xf32>
    %cst_140 = arith.constant dense<0.000000e+00> : vector<16x64xf32>
    %196 = tpu.matmul %188, %195, %cst_140 {dimension_numbers = #tpu.dot_dimension_numbers<[1], [0], [0], [1], [0, 0, 1, 1], [], []>} : vector<16x32xf32>, vector<32x64xf32>, vector<16x64xf32> -> vector<16x64xf32>
    %c1_141 = arith.constant 1 : index
    %c0_142 = arith.constant 0 : index
    %c0_143 = arith.constant 0 : index
    %197 = vector.load %arg14[%c1_141, %c0_142, %c0_143] : memref<3x32x64xf32, #tpu.memory_space<vmem>>, vector<1x32x64xf32>
    %198 = vector.shape_cast %197 : vector<1x32x64xf32> to vector<32x64xf32>
    %cst_144 = arith.constant dense<0.000000e+00> : vector<16x64xf32>
    %199 = tpu.matmul %182, %198, %cst_144 {dimension_numbers = #tpu.dot_dimension_numbers<[1], [0], [0], [1], [0, 0, 1, 1], [], []>} : vector<16x32xf32>, vector<32x64xf32>, vector<16x64xf32> -> vector<16x64xf32>
    %200 = arith.addf %196, %199 : vector<16x64xf32>
    %c2_145 = arith.constant 2 : index
    %c0_146 = arith.constant 0 : index
    %c0_147 = arith.constant 0 : index
    %201 = vector.load %arg14[%c2_145, %c0_146, %c0_147] : memref<3x32x64xf32, #tpu.memory_space<vmem>>, vector<1x32x64xf32>
    %202 = vector.shape_cast %201 : vector<1x32x64xf32> to vector<32x64xf32>
    %cst_148 = arith.constant dense<0.000000e+00> : vector<16x64xf32>
    %203 = tpu.matmul %193, %202, %cst_148 {dimension_numbers = #tpu.dot_dimension_numbers<[1], [0], [0], [1], [0, 0, 1, 1], [], []>} : vector<16x32xf32>, vector<32x64xf32>, vector<16x64xf32> -> vector<16x64xf32>
    %204 = arith.addf %200, %203 : vector<16x64xf32>
    %c0_149 = arith.constant 0 : index
    %c0_150 = arith.constant 0 : index
    %205 = vector.load %arg15[%c0_149, %c0_150] : memref<1x64xf32, #tpu.memory_space<vmem>>, vector<1x64xf32>
    %206 = vector.broadcast %205 : vector<1x64xf32> to vector<16x64xf32>
    %207 = arith.addf %204, %206 : vector<16x64xf32>
    %208 = arith.addf %207, %88 : vector<16x64xf32>
    %c0_151 = arith.constant 0 : index
    %c0_152 = arith.constant 0 : index
    %209 = vector.load %arg24[%c0_151, %c0_152] : memref<1x64xf32, #tpu.memory_space<vmem>>, vector<1x64xf32>
    %cst_153 = arith.constant 0.000000e+00 : f32
    %210 = vector.broadcast %cst_153 : f32 to vector<16x64xf32>
    %211 = arith.cmpf oge, %208, %210 : vector<16x64xf32>
    %212 = vector.broadcast %209 : vector<1x64xf32> to vector<16x64xf32>
    %213 = arith.mulf %212, %208 : vector<16x64xf32>
    %214 = arith.select %211, %208, %213 : vector<16x64xi1>, vector<16x64xf32>
    %215 = tpu.iota {dimensions = array<i32: 0>} : vector<16x64xi32>
    %c0_i32_154 = arith.constant 0 : i32
    %216 = vector.broadcast %c0_i32_154 : i32 to vector<16x64xi32>
    %217 = arith.cmpi eq, %215, %216 : vector<16x64xi32>
    %c1_i32_155 = arith.constant 1 : i32
    %218 = tpu.dynamic_rotate %214 by %c1_i32_155 dim 0 : vector<16x64xf32>, i32 -> vector<16x64xf32>
    %cst_156 = arith.constant 0.000000e+00 : f32
    %219 = vector.broadcast %cst_156 : f32 to vector<16x64xf32>
    %220 = arith.select %217, %219, %218 : vector<16x64xi1>, vector<16x64xf32>
    %c15_i32_157 = arith.constant 15 : i32
    %221 = vector.broadcast %c15_i32_157 : i32 to vector<16x64xi32>
    %222 = arith.cmpi eq, %215, %221 : vector<16x64xi32>
    %c15_i32_158 = arith.constant 15 : i32
    %223 = tpu.dynamic_rotate %214 by %c15_i32_158 dim 0 : vector<16x64xf32>, i32 -> vector<16x64xf32>
    %cst_159 = arith.constant 0.000000e+00 : f32
    %224 = vector.broadcast %cst_159 : f32 to vector<16x64xf32>
    %225 = arith.select %222, %224, %223 : vector<16x64xi1>, vector<16x64xf32>
    %c0_160 = arith.constant 0 : index
    %c0_161 = arith.constant 0 : index
    %c0_162 = arith.constant 0 : index
    %226 = vector.load %arg16[%c0_160, %c0_161, %c0_162] : memref<3x64x128xf32, #tpu.memory_space<vmem>>, vector<1x64x128xf32>
    %227 = vector.shape_cast %226 : vector<1x64x128xf32> to vector<64x128xf32>
    %cst_163 = arith.constant dense<0.000000e+00> : vector<16x128xf32>
    %228 = tpu.matmul %220, %227, %cst_163 {dimension_numbers = #tpu.dot_dimension_numbers<[1], [0], [0], [1], [0, 0, 1, 1], [], []>} : vector<16x64xf32>, vector<64x128xf32>, vector<16x128xf32> -> vector<16x128xf32>
    %c1_164 = arith.constant 1 : index
    %c0_165 = arith.constant 0 : index
    %c0_166 = arith.constant 0 : index
    %229 = vector.load %arg16[%c1_164, %c0_165, %c0_166] : memref<3x64x128xf32, #tpu.memory_space<vmem>>, vector<1x64x128xf32>
    %230 = vector.shape_cast %229 : vector<1x64x128xf32> to vector<64x128xf32>
    %cst_167 = arith.constant dense<0.000000e+00> : vector<16x128xf32>
    %231 = tpu.matmul %214, %230, %cst_167 {dimension_numbers = #tpu.dot_dimension_numbers<[1], [0], [0], [1], [0, 0, 1, 1], [], []>} : vector<16x64xf32>, vector<64x128xf32>, vector<16x128xf32> -> vector<16x128xf32>
    %232 = arith.addf %228, %231 : vector<16x128xf32>
    %c2_168 = arith.constant 2 : index
    %c0_169 = arith.constant 0 : index
    %c0_170 = arith.constant 0 : index
    %233 = vector.load %arg16[%c2_168, %c0_169, %c0_170] : memref<3x64x128xf32, #tpu.memory_space<vmem>>, vector<1x64x128xf32>
    %234 = vector.shape_cast %233 : vector<1x64x128xf32> to vector<64x128xf32>
    %cst_171 = arith.constant dense<0.000000e+00> : vector<16x128xf32>
    %235 = tpu.matmul %225, %234, %cst_171 {dimension_numbers = #tpu.dot_dimension_numbers<[1], [0], [0], [1], [0, 0, 1, 1], [], []>} : vector<16x64xf32>, vector<64x128xf32>, vector<16x128xf32> -> vector<16x128xf32>
    %236 = arith.addf %232, %235 : vector<16x128xf32>
    %c0_172 = arith.constant 0 : index
    %c0_173 = arith.constant 0 : index
    %237 = vector.load %arg17[%c0_172, %c0_173] : memref<1x128xf32, #tpu.memory_space<vmem>>, vector<1x128xf32>
    %238 = vector.broadcast %237 : vector<1x128xf32> to vector<16x128xf32>
    %239 = arith.addf %236, %238 : vector<16x128xf32>
    %240 = arith.addf %239, %57 : vector<16x128xf32>
    %c0_174 = arith.constant 0 : index
    %c0_175 = arith.constant 0 : index
    %241 = vector.load %arg23[%c0_174, %c0_175] : memref<1x128xf32, #tpu.memory_space<vmem>>, vector<1x128xf32>
    %cst_176 = arith.constant 0.000000e+00 : f32
    %242 = vector.broadcast %cst_176 : f32 to vector<16x128xf32>
    %243 = arith.cmpf oge, %240, %242 : vector<16x128xf32>
    %244 = vector.broadcast %241 : vector<1x128xf32> to vector<16x128xf32>
    %245 = arith.mulf %244, %240 : vector<16x128xf32>
    %246 = arith.select %243, %240, %245 : vector<16x128xi1>, vector<16x128xf32>
    %247 = tpu.iota {dimensions = array<i32: 0>} : vector<16x128xi32>
    %c0_i32_177 = arith.constant 0 : i32
    %248 = vector.broadcast %c0_i32_177 : i32 to vector<16x128xi32>
    %249 = arith.cmpi eq, %247, %248 : vector<16x128xi32>
    %c1_i32_178 = arith.constant 1 : i32
    %250 = tpu.dynamic_rotate %246 by %c1_i32_178 dim 0 : vector<16x128xf32>, i32 -> vector<16x128xf32>
    %cst_179 = arith.constant 0.000000e+00 : f32
    %251 = vector.broadcast %cst_179 : f32 to vector<16x128xf32>
    %252 = arith.select %249, %251, %250 : vector<16x128xi1>, vector<16x128xf32>
    %c15_i32_180 = arith.constant 15 : i32
    %253 = vector.broadcast %c15_i32_180 : i32 to vector<16x128xi32>
    %254 = arith.cmpi eq, %247, %253 : vector<16x128xi32>
    %c15_i32_181 = arith.constant 15 : i32
    %255 = tpu.dynamic_rotate %246 by %c15_i32_181 dim 0 : vector<16x128xf32>, i32 -> vector<16x128xf32>
    %cst_182 = arith.constant 0.000000e+00 : f32
    %256 = vector.broadcast %cst_182 : f32 to vector<16x128xf32>
    %257 = arith.select %254, %256, %255 : vector<16x128xi1>, vector<16x128xf32>
    %c0_183 = arith.constant 0 : index
    %c0_184 = arith.constant 0 : index
    %c0_185 = arith.constant 0 : index
    %258 = vector.load %arg18[%c0_183, %c0_184, %c0_185] : memref<3x128x256xf32, #tpu.memory_space<vmem>>, vector<1x128x256xf32>
    %259 = vector.shape_cast %258 : vector<1x128x256xf32> to vector<128x256xf32>
    %cst_186 = arith.constant dense<0.000000e+00> : vector<16x256xf32>
    %260 = tpu.matmul %252, %259, %cst_186 {dimension_numbers = #tpu.dot_dimension_numbers<[1], [0], [0], [1], [0, 0, 1, 1], [], []>} : vector<16x128xf32>, vector<128x256xf32>, vector<16x256xf32> -> vector<16x256xf32>
    %c1_187 = arith.constant 1 : index
    %c0_188 = arith.constant 0 : index
    %c0_189 = arith.constant 0 : index
    %261 = vector.load %arg18[%c1_187, %c0_188, %c0_189] : memref<3x128x256xf32, #tpu.memory_space<vmem>>, vector<1x128x256xf32>
    %262 = vector.shape_cast %261 : vector<1x128x256xf32> to vector<128x256xf32>
    %cst_190 = arith.constant dense<0.000000e+00> : vector<16x256xf32>
    %263 = tpu.matmul %246, %262, %cst_190 {dimension_numbers = #tpu.dot_dimension_numbers<[1], [0], [0], [1], [0, 0, 1, 1], [], []>} : vector<16x128xf32>, vector<128x256xf32>, vector<16x256xf32> -> vector<16x256xf32>
    %264 = arith.addf %260, %263 : vector<16x256xf32>
    %c2_191 = arith.constant 2 : index
    %c0_192 = arith.constant 0 : index
    %c0_193 = arith.constant 0 : index
    %265 = vector.load %arg18[%c2_191, %c0_192, %c0_193] : memref<3x128x256xf32, #tpu.memory_space<vmem>>, vector<1x128x256xf32>
    %266 = vector.shape_cast %265 : vector<1x128x256xf32> to vector<128x256xf32>
    %cst_194 = arith.constant dense<0.000000e+00> : vector<16x256xf32>
    %267 = tpu.matmul %257, %266, %cst_194 {dimension_numbers = #tpu.dot_dimension_numbers<[1], [0], [0], [1], [0, 0, 1, 1], [], []>} : vector<16x128xf32>, vector<128x256xf32>, vector<16x256xf32> -> vector<16x256xf32>
    %268 = arith.addf %264, %267 : vector<16x256xf32>
    %c0_195 = arith.constant 0 : index
    %c0_196 = arith.constant 0 : index
    %269 = vector.load %arg19[%c0_195, %c0_196] : memref<1x256xf32, #tpu.memory_space<vmem>>, vector<1x256xf32>
    %270 = vector.broadcast %269 : vector<1x256xf32> to vector<16x256xf32>
    %271 = arith.addf %268, %270 : vector<16x256xf32>
    %272 = arith.addf %271, %26 : vector<16x256xf32>
    %c0_197 = arith.constant 0 : index
    %c0_198 = arith.constant 0 : index
    %273 = vector.load %arg20[%c0_197, %c0_198] : memref<256x22xf32, #tpu.memory_space<vmem>>, vector<256x22xf32>
    %cst_199 = arith.constant dense<0.000000e+00> : vector<16x22xf32>
    %274 = tpu.matmul %272, %273, %cst_199 {dimension_numbers = #tpu.dot_dimension_numbers<[1], [0], [0], [1], [0, 0, 1, 1], [], []>} : vector<16x256xf32>, vector<256x22xf32>, vector<16x22xf32> -> vector<16x22xf32>
    %c0_200 = arith.constant 0 : index
    %c0_201 = arith.constant 0 : index
    %275 = vector.load %arg21[%c0_200, %c0_201] : memref<1x22xf32, #tpu.memory_space<vmem>>, vector<1x22xf32>
    %276 = vector.broadcast %275 : vector<1x22xf32> to vector<16x22xf32>
    %277 = arith.addf %274, %276 : vector<16x22xf32>
    %278 = arith.addf %277, %1 : vector<16x22xf32>
    %c0_202 = arith.constant 0 : index
    %c0_203 = arith.constant 0 : index
    %c0_204 = arith.constant 0 : index
    %279 = vector.load %arg26[%c0_202, %c0_203, %c0_204] : memref<1x16x1xf32, #tpu.memory_space<vmem>>, vector<1x16x1xf32>
    %280 = vector.shape_cast %279 : vector<1x16x1xf32> to vector<16x1xf32>
    %281 = vector.shape_cast %150 : vector<16x1xf32> to vector<1x16x1xf32>
    tpu.vector_store %arg26[%c0_202, %c0_203, %c0_204], %281 {strides = array<i32>} : memref<1x16x1xf32, #tpu.memory_space<vmem>>, vector<1x16x1xf32>,
    %c0_205 = arith.constant 0 : index
    %c0_206 = arith.constant 0 : index
    %c0_207 = arith.constant 0 : index
    %282 = vector.load %arg27[%c0_205, %c0_206, %c0_207] : memref<1x16x22xf32, #tpu.memory_space<vmem>>, vector<1x16x22xf32>
    %283 = vector.shape_cast %282 : vector<1x16x22xf32> to vector<16x22xf32>
    %284 = vector.shape_cast %278 : vector<16x22xf32> to vector<1x16x22xf32>
    tpu.vector_store %arg27[%c0_205, %c0_206, %c0_207], %284 {strides = array<i32>} : memref<1x16x22xf32, #tpu.memory_space<vmem>>, vector<1x16x22xf32>,
    return
  }
  func.func @transform_0(%arg0: i32) -> (i32, i32, i32) {
    %c0_i32 = arith.constant 0 : i32
    %c0_i32_0 = arith.constant 0 : i32
    %c0_i32_1 = arith.constant 0 : i32
    return %arg0, %c0_i32, %c0_i32_0 : i32, i32, i32
  }
  func.func @transform_1(%arg0: i32) -> (i32, i32, i32) {
    %c0_i32 = arith.constant 0 : i32
    %c0_i32_0 = arith.constant 0 : i32
    %c0_i32_1 = arith.constant 0 : i32
    %c0_i32_2 = arith.constant 0 : i32
    return %c0_i32, %c0_i32_0, %c0_i32_1 : i32, i32, i32
  }
  func.func @transform_2(%arg0: i32) -> (i32, i32) {
    %c0_i32 = arith.constant 0 : i32
    %c0_i32_0 = arith.constant 0 : i32
    %c0_i32_1 = arith.constant 0 : i32
    return %c0_i32, %c0_i32_0 : i32, i32
  }
  func.func @transform_3(%arg0: i32) -> (i32, i32, i32) {
    %c0_i32 = arith.constant 0 : i32
    %c0_i32_0 = arith.constant 0 : i32
    %c0_i32_1 = arith.constant 0 : i32
    %c0_i32_2 = arith.constant 0 : i32
    return %c0_i32, %c0_i32_0, %c0_i32_1 : i32, i32, i32
  }
  func.func @transform_4(%arg0: i32) -> (i32, i32) {
    %c0_i32 = arith.constant 0 : i32
    %c0_i32_0 = arith.constant 0 : i32
    %c0_i32_1 = arith.constant 0 : i32
    return %c0_i32, %c0_i32_0 : i32, i32
  }
  func.func @transform_5(%arg0: i32) -> (i32, i32, i32) {
    %c0_i32 = arith.constant 0 : i32
    %c0_i32_0 = arith.constant 0 : i32
    %c0_i32_1 = arith.constant 0 : i32
    %c0_i32_2 = arith.constant 0 : i32
    return %c0_i32, %c0_i32_0, %c0_i32_1 : i32, i32, i32
  }
  func.func @transform_6(%arg0: i32) -> (i32, i32) {
    %c0_i32 = arith.constant 0 : i32
    %c0_i32_0 = arith.constant 0 : i32
    %c0_i32_1 = arith.constant 0 : i32
    return %c0_i32, %c0_i32_0 : i32, i32
  }
  func.func @transform_7(%arg0: i32) -> (i32, i32, i32) {
    %c0_i32 = arith.constant 0 : i32
    %c0_i32_0 = arith.constant 0 : i32
    %c0_i32_1 = arith.constant 0 : i32
    %c0_i32_2 = arith.constant 0 : i32
    return %c0_i32, %c0_i32_0, %c0_i32_1 : i32, i32, i32
  }
  func.func @transform_8(%arg0: i32) -> (i32, i32) {
    %c0_i32 = arith.constant 0 : i32
    %c0_i32_0 = arith.constant 0 : i32
    %c0_i32_1 = arith.constant 0 : i32
    return %c0_i32, %c0_i32_0 : i32, i32
  }
  func.func @transform_9(%arg0: i32) -> (i32, i32, i32) {
    %c0_i32 = arith.constant 0 : i32
    %c0_i32_0 = arith.constant 0 : i32
    %c0_i32_1 = arith.constant 0 : i32
    %c0_i32_2 = arith.constant 0 : i32
    return %c0_i32, %c0_i32_0, %c0_i32_1 : i32, i32, i32
  }
  func.func @transform_10(%arg0: i32) -> (i32, i32) {
    %c0_i32 = arith.constant 0 : i32
    %c0_i32_0 = arith.constant 0 : i32
    %c0_i32_1 = arith.constant 0 : i32
    return %c0_i32, %c0_i32_0 : i32, i32
  }
  func.func @transform_11(%arg0: i32) -> (i32, i32, i32) {
    %c0_i32 = arith.constant 0 : i32
    %c0_i32_0 = arith.constant 0 : i32
    %c0_i32_1 = arith.constant 0 : i32
    %c0_i32_2 = arith.constant 0 : i32
    return %c0_i32, %c0_i32_0, %c0_i32_1 : i32, i32, i32
  }
  func.func @transform_12(%arg0: i32) -> (i32, i32) {
    %c0_i32 = arith.constant 0 : i32
    %c0_i32_0 = arith.constant 0 : i32
    %c0_i32_1 = arith.constant 0 : i32
    return %c0_i32, %c0_i32_0 : i32, i32
  }
  func.func @transform_13(%arg0: i32) -> (i32, i32, i32) {
    %c0_i32 = arith.constant 0 : i32
    %c0_i32_0 = arith.constant 0 : i32
    %c0_i32_1 = arith.constant 0 : i32
    %c0_i32_2 = arith.constant 0 : i32
    return %c0_i32, %c0_i32_0, %c0_i32_1 : i32, i32, i32
  }
  func.func @transform_14(%arg0: i32) -> (i32, i32) {
    %c0_i32 = arith.constant 0 : i32
    %c0_i32_0 = arith.constant 0 : i32
    %c0_i32_1 = arith.constant 0 : i32
    return %c0_i32, %c0_i32_0 : i32, i32
  }
  func.func @transform_15(%arg0: i32) -> (i32, i32, i32) {
    %c0_i32 = arith.constant 0 : i32
    %c0_i32_0 = arith.constant 0 : i32
    %c0_i32_1 = arith.constant 0 : i32
    %c0_i32_2 = arith.constant 0 : i32
    return %c0_i32, %c0_i32_0, %c0_i32_1 : i32, i32, i32
  }
  func.func @transform_16(%arg0: i32) -> (i32, i32) {
    %c0_i32 = arith.constant 0 : i32
    %c0_i32_0 = arith.constant 0 : i32
    %c0_i32_1 = arith.constant 0 : i32
    return %c0_i32, %c0_i32_0 : i32, i32
  }
  func.func @transform_17(%arg0: i32) -> (i32, i32, i32) {
    %c0_i32 = arith.constant 0 : i32
    %c0_i32_0 = arith.constant 0 : i32
    %c0_i32_1 = arith.constant 0 : i32
    %c0_i32_2 = arith.constant 0 : i32
    return %c0_i32, %c0_i32_0, %c0_i32_1 : i32, i32, i32
  }
  func.func @transform_18(%arg0: i32) -> (i32, i32) {
    %c0_i32 = arith.constant 0 : i32
    %c0_i32_0 = arith.constant 0 : i32
    %c0_i32_1 = arith.constant 0 : i32
    return %c0_i32, %c0_i32_0 : i32, i32
  }
  func.func @transform_19(%arg0: i32) -> (i32, i32) {
    %c0_i32 = arith.constant 0 : i32
    %c0_i32_0 = arith.constant 0 : i32
    %c0_i32_1 = arith.constant 0 : i32
    return %c0_i32, %c0_i32_0 : i32, i32
  }
  func.func @transform_20(%arg0: i32) -> (i32, i32) {
    %c0_i32 = arith.constant 0 : i32
    %c0_i32_0 = arith.constant 0 : i32
    %c0_i32_1 = arith.constant 0 : i32
    return %c0_i32, %c0_i32_0 : i32, i32
  }
  func.func @transform_21(%arg0: i32) -> (i32, i32) {
    %c0_i32 = arith.constant 0 : i32
    %c0_i32_0 = arith.constant 0 : i32
    %c0_i32_1 = arith.constant 0 : i32
    return %c0_i32, %c0_i32_0 : i32, i32
  }
  func.func @transform_22(%arg0: i32) -> (i32, i32) {
    %c0_i32 = arith.constant 0 : i32
    %c0_i32_0 = arith.constant 0 : i32
    %c0_i32_1 = arith.constant 0 : i32
    return %c0_i32, %c0_i32_0 : i32, i32
  }
  func.func @transform_23(%arg0: i32) -> (i32, i32) {
    %c0_i32 = arith.constant 0 : i32
    %c0_i32_0 = arith.constant 0 : i32
    %c0_i32_1 = arith.constant 0 : i32
    return %c0_i32, %c0_i32_0 : i32, i32
  }
  func.func @transform_24(%arg0: i32) -> (i32, i32) {
    %c0_i32 = arith.constant 0 : i32
    %c0_i32_0 = arith.constant 0 : i32
    %c0_i32_1 = arith.constant 0 : i32
    return %c0_i32, %c0_i32_0 : i32, i32
  }
  func.func @transform_25(%arg0: i32) -> (i32, i32, i32) {
    %c0_i32 = arith.constant 0 : i32
    %c0_i32_0 = arith.constant 0 : i32
    %c0_i32_1 = arith.constant 0 : i32
    return %arg0, %c0_i32, %c0_i32_0 : i32, i32, i32
  }
  func.func @transform_26(%arg0: i32) -> (i32, i32, i32) {
    %c0_i32 = arith.constant 0 : i32
    %c0_i32_0 = arith.constant 0 : i32
    %c0_i32_1 = arith.constant 0 : i32
    return %arg0, %c0_i32, %c0_i32_0 : i32, i32, i32
  }
}

</mosaic_0001>

<bundles_post_ra>
// kernel: encoder_forward.1
= control target key start
LH: loop header
LB: loop body
LE: loop exit
PB: predicated region body
PF: predicated region fallthrough
CT: control target
= control target key end

     0   :  { %s7774_s0 = inlined_call_operand.hbm [shape: f32[2,16,22], index: 0, kind: input, shape index: {}]   ;;  %s7775_s1 = inlined_call_operand.vmem [shape: f32[3,22,256], index: 1, kind: input, shape index: {}]   ;;  %s7776_s2 = inlined_call_operand.vmem [shape: f32[1,256], index: 2, kind: input, shape index: {}]   ;;  %s7777_s3 = inlined_call_operand.vmem [shape: f32[3,256,128], index: 3, kind: input, shape index: {}]   ;;  %s7778_s4 = inlined_call_operand.vmem [shape: f32[1,128], index: 4, kind: input, shape index: {}]   ;;  %s7779_s5 = inlined_call_operand.vmem [shape: f32[3,128,64], index: 5, kind: input, shape index: {}]   ;;  %s7780_s6 = inlined_call_operand.vmem [shape: f32[1,64], index: 6, kind: input, shape index: {}]   ;;  %s7781_s7 = inlined_call_operand.vmem [shape: f32[3,64,32], index: 7, kind: input, shape index: {}]   ;;  %s7782_s8 = inlined_call_operand.hbm [shape: f32[1,32], index: 8, kind: input, shape index: {}]   ;;  %s7783_s9 = inlined_call_operand.vmem [shape: f32[3,32,1], index: 9, kind: input, shape index: {}]   ;;  %s7784_s10 = inlined_call_operand.<no memory space> [shape: f32[1,1], index: 10, kind: input, shape index: {}]   ;;  %s7785_s11 = inlined_call_operand.vmem [shape: f32[3,1,32], index: 11, kind: input, shape index: {}]   ;;  %s7786_s12 = inlined_call_operand.hbm [shape: f32[1,32], index: 12, kind: input, shape index: {}]   ;;  %s7787_s13 = inlined_call_operand.vmem [shape: f32[3,32,64], index: 13, kind: input, shape index: {}]   ;;  %s7788_s14 = inlined_call_operand.hbm [shape: f32[1,64], index: 14, kind: input, shape index: {}]   ;;  %s7789_s15 = inlined_call_operand.vmem [shape: f32[3,64,128], index: 15, kind: input, shape index: {}]   ;;  %s7790_s16 = inlined_call_operand.hbm [shape: f32[1,128], index: 16, kind: input, shape index: {}]   ;;  %s7791_s17 = inlined_call_operand.hbm [shape: f32[3,128,256], index: 17, kind: input, shape index: {}]   ;;  %s7792_s18 = inlined_call_operand.vmem [shape: f32[1,256], index: 18, kind: input, shape index: {}]   ;;  %s7793_s19 = inlined_call_operand.vmem [shape: f32[256,22], index: 19, kind: input, shape index: {}]   ;;  %s7794_s20 = inlined_call_operand.hbm [shape: f32[1,22], index: 20, kind: input, shape index: {}]   ;;  %s7795_s21 = inlined_call_operand.vmem [shape: f32[1,256], index: 21, kind: input, shape index: {}]   ;;  %s7796_s22 = inlined_call_operand.hbm [shape: f32[1,128], index: 22, kind: input, shape index: {}]   ;;  %s7797_s23 = inlined_call_operand.hbm [shape: f32[1,64], index: 23, kind: input, shape index: {}]   ;;  %s7798_s24 = inlined_call_operand.hbm [shape: f32[1,32], index: 24, kind: input, shape index: {}]   ;;  %s7799_s25 = inlined_call_operand.vmem [shape: f32[2,16,1], index: 25, kind: output, shape index: {0}]   ;;  %s7800_s26 = inlined_call_operand.hbm [shape: f32[2,16,22], index: 26, kind: output, shape index: {1}]  }
   0x1   :  { %7824 = sst [smem:[#allocation28_spill]] %s7774_s0 }
   0x2   :  { %7825 = sst [smem:[#allocation29_spill]] %s7775_s1 }
   0x3   :  { %7826 = sst [smem:[#allocation30_spill]] %s7776_s2 }
   0x4   :  { %7827 = sst [smem:[#allocation31_spill]] %s7777_s3 }
   0x5   :  { %7828 = sst [smem:[#allocation32_spill]] %s7778_s4 }
   0x6   :  { %7829 = sst [smem:[#allocation33_spill]] %s7779_s5 }
   0x7   :  { %7830 = sst [smem:[#allocation34_spill]] %s7780_s6 }
   0x8   :  { %7831 = sst [smem:[#allocation35_spill]] %s7781_s7 }
   0x9   :  { %7832 = sst [smem:[#allocation36_spill]] %s7782_s8 }
   0xa   :  { %7833 = sst [smem:[#allocation37_spill]] %s7783_s9 }
   0xb   :  { %7834 = sst [smem:[#allocation38_spill]] %s7784_s10 }
   0xc   :  { %7835 = sst [smem:[#allocation39_spill]] %s7785_s11  ;;  %s7846_s7 = sld [smem:[#allocation38_spill]] }
   0xd   :  { %7836 = sst [smem:[#allocation40_spill]] %s7786_s12 }
   0xe   :  { %7837 = sst [smem:[#allocation41_spill]] %s7787_s13 }
   0xf   :  { %7838 = sst [smem:[#allocation42_spill]] %s7788_s14 }
  0x10   :  { %7839 = sst [smem:[#allocation43_spill]] %s7789_s15 }
  0x11   :  { %7840 = sst [smem:[#allocation44_spill]] %s7790_s16 }
  0x12   :  { %7841 = sst [smem:[#allocation45_spill]] %s7792_s18  ;;  %v32_v0 = vstv %s7846_s7 }
  0x13   :  { %7842 = sst [smem:[#allocation46_spill]] %s7793_s19  ;;  %33 = vst [vmem:[#allocation2] sm:$0x1] %v32_v0 }
  0x14   :  { %7843 = sst [smem:[#allocation47_spill]] %s7795_s21 }
  0x15   :  { %7844 = sst [smem:[#allocation48_spill]] %s7799_s25 }
  0x16   :  { %7845 = sst [smem:[#allocation49_spill]] %s7800_s26 }
  0x17   :  { %34 = vsyncpa [#allocation4], 0 }
  0x18   :  { %36 = vsyncpa [#allocation4 + $0x1], 0 }
  0x19   :  { %37 = vsyncpa [#allocation7], 0 }
  0x1a   :  { %38 = vsyncpa [#allocation10], 0 }
  0x1b   :  { %39 = vsyncpa [#allocation13], 0 }
  0x1c   :  { %40 = vsyncpa [#allocation16], 0 }
  0x1d   :  { %41 = vsyncpa [#allocation19], 0 }
  0x1e   :  { %42 = vsyncpa [#allocation5], 0 }
  0x1f   :  { %44 = vsyncpa [#allocation5 + $0x1], 0  ;;  %s6201_s28 = smov 0   ;;  %s6203_s8 = smov 0  }
  0x20   :  { %s6205_s4 = smov 0   ;;  %s6207_s29 = smov 0  }
  0x21 LB: > { %s6045_s0 = smov [#allocation6]   ;;  %s6222_s30 = sadd.s32 4294967295, %s6043_s29   ;;  %s6043_s29 = sphi %s6207_s29, %s7898_s29   ;;  %s6039_s4 = sphi %s6205_s4, %s7897_s4   ;;  %s6035_s8 = sphi %s6203_s8, %s7896_s8   ;;  %s6031_s28 = sphi %s6201_s28, %s7895_s28  }
  0x22   : > { %s671_s9 = sshll.u32 %s6045_s0, 4  ;;  %p4135_p0 = scmp.ge.s32.totalorder %s6043_s29, 1  ;;  %s6227_s9 = int_to_ptr.vmem [resolvable:$true] %s671_s9 }
  0x23   : > { %p7814_p1 = scmp.eq.s32.totalorder %s6222_s30, 0  ;;  %p637_p2 = scmp.lt.s32.totalorder %s6043_s29, 3 }
  0x24   : > { %s6046_s5 = smov [#allocation9]   ;;  %s6047_s6 = smov [#allocation12]  }
  0x25   : > { %p6229_p3 = pnand %p4135_p0, %p637_p2  ;;  %s705_s10 = sshll.u32 %s6046_s5, 4  ;;  %s6236_s10 = int_to_ptr.vmem [resolvable:$true] %s705_s10 }
  0x26   : > { %s729_s1 = sshll.u32 %s6047_s6, 4  ;;  %s7849_s0 = sld [smem:[#allocation36_spill]]  ;;  %s6244_s1 = int_to_ptr.vmem [resolvable:$true] %s729_s1 }
  0x27   : > { %s7847_s2 = scalar_select %p6229_p3, 1, 0 }
  0x28   : > { %p5568_p5 = pneg %p6229_p3 }
  0x2a   : > { %p6240_p6 = pnand %p5568_p5, %p7814_p1 }
  0x2c   : > { %s5675_s26 = scalar_lea.hbm %s7849_s0, 16  ;;  %p6254_p8 = pneg %p6240_p6 }
  0x2d   : > { %p5676_p7 = scmp.ne.s32.totalorder %s7849_s0, %s5675_s26  ;;  %p5682_p11 = scmp.lt.u32.totalorder %s5675_s26, %s7849_s0 }
  0x2f   : > { %p5678_p9 = pnand %p6254_p8, %p5676_p7 }
  0x31   : > { %p5679_p10 = pneg %p5678_p9 }
  0x33   : > { %p5684_p12 = pnand %p5682_p11, %p5679_p10 }
  0x35   : > { %5687 = shalt.err (!%p5684_p12)
}
  0x36   : > { %s5688_s18 = scalar_lea.vmem %s6227_s9, 16  ;;  %s5695_s19 = scalar_lea.vmem %s6227_s9, 32 }
  0x37   : > { %p5689_p13 = scmp.ne.s32.totalorder %s6227_s9, %s5688_s18  ;;  %p5696_p5 = scmp.lt.s32.totalorder %s6227_s9, %s6227_s9 }
  0x38   : > { %p5697_p7 = scmp.lt.s32.totalorder %s5695_s19, %s5688_s18 }
  0x39   : > { %p5691_p0 = pnand %p5689_p13, %p6254_p8 }
  0x3a   : > { %p5698_p9 = por %p5697_p7, %p5696_p5 }
  0x3b   : > { %p5692_p2 = pneg %p5691_p0 }
  0x3d   : > { %p5699_p4 = pnand %p5698_p9, %p5692_p2 }
  0x3f   : > { %5702 = shalt.err (!%p5699_p4)
}
  0x40   : > { %5571 = dma.hbm_to_vmem [thread:$0]  (!%p6240_p6), %s7849_s0, 16, %s6227_s9, [#allocation7]  }
  0x41   : > { %s7851_s14 = sld [smem:[#allocation42_spill]] }
  0x47   : > { %s5703_s6 = scalar_lea.hbm %s7851_s14, 16 }
  0x48   : > { %p5704_p10 = scmp.ne.s32.totalorder %s7851_s14, %s5703_s6  ;;  %p5710_p4 = scmp.lt.u32.totalorder %s5703_s6, %s7851_s14 }
  0x4a   : > { %p5706_p11 = pnand %p5704_p10, %p6254_p8 }
  0x4c   : > { %p5707_p12 = pneg %p5706_p11 }
  0x4e   : > { %p5712_p13 = pnand %p5710_p4, %p5707_p12 }
  0x50   : > { %5715 = shalt.err (!%p5712_p13)
}
  0x51   : > { %s5716_s9 = scalar_lea.vmem %s6236_s10, 16  ;;  %s5723_s13 = scalar_lea.vmem %s6236_s10, 32 }
  0x52   : > { %p5717_p0 = scmp.ne.s32.totalorder %s6236_s10, %s5716_s9  ;;  %p5724_p7 = scmp.lt.s32.totalorder %s6236_s10, %s6236_s10 }
  0x53   : > { %p5725_p9 = scmp.lt.s32.totalorder %s5723_s13, %s5716_s9 }
  0x54   : > { %p5719_p2 = pnand %p5717_p0, %p6254_p8 }
  0x55   : > { %p5726_p10 = por %p5725_p9, %p5724_p7 }
  0x56   : > { %p5720_p5 = pneg %p5719_p2 }
  0x58   : > { %p5727_p11 = pnand %p5726_p10, %p5720_p5 }
  0x5a   : > { %5730 = shalt.err (!%p5727_p11)
}
  0x5b   : > { %5577 = dma.hbm_to_vmem [thread:$0]  (!%p6240_p6), %s7851_s14, 16, %s6236_s10, [#allocation10]  }
  0x5c   : > { %s5731_s7 = scalar_lea.hbm %s7791_s17, 12288 }
  0x5d   : > { %p5732_p12 = scmp.ne.s32.totalorder %s7791_s17, %s5731_s7  ;;  %p5738_p0 = scmp.lt.u32.totalorder %s5731_s7, %s7791_s17 }
  0x5f   : > { %p5734_p4 = pnand %p5732_p12, %p6254_p8 }
  0x61   : > { %p5735_p13 = pneg %p5734_p4 }
  0x63   : > { %p5740_p2 = pnand %p5738_p0, %p5735_p13 }
  0x65   : > { %5743 = shalt.err (!%p5740_p2)
}
  0x66   : > { %s5744_s10 = scalar_lea.vmem %s6244_s1, 12288  ;;  %p5752_p10 = scmp.lt.s32.totalorder %s6244_s1, %s6244_s1 }
  0x67   : > { %p5745_p5 = scmp.ne.s32.totalorder %s6244_s1, %s5744_s10  ;;  %p5753_p11 = scmp.lt.s32.totalorder %s5744_s10, %s5744_s10 }
  0x69   : > { %p5747_p7 = pnand %p5745_p5, %p6254_p8  ;;  %p5754_p12 = por %p5753_p11, %p5752_p10 }
  0x6b   : > { %p5748_p9 = pneg %p5747_p7 }
  0x6d   : > { %p5755_p4 = pnand %p5754_p12, %p5748_p9 }
  0x6f   : > { %5758 = shalt.err (!%p5755_p4)
}
  0x70   : > { %s6048_s13 = smov 256   ;;  %s6049_s25 = smov 16  }
  0x71   : > { %5583 = dma.hbm_to_vmem [thread:$0]  (!%p6240_p6), %s7791_s17, 12288, %s6244_s1, [#allocation13], %s6048_s13, %s6048_s13, %s6049_s25  }
  0x72   : > { %s6050_s3 = smov [#allocation15]   ;;  %s6051_s6 = smov [#allocation8]  }
  0x73   : > { %s763_s7 = sshll.u32 %s6050_s3, 4  ;;  %s691_s18 = sshll.u32 %s6051_s6, 4  ;;  %s764_s7 = int_to_ptr.vmem [resolvable:$true] %s763_s7  ;;  %s692_s18 = int_to_ptr.vmem [resolvable:$true] %s691_s18 }
  0x74   : > { %s5759_s10 = scalar_lea.hbm %s7796_s22, 16 }
  0x75   : > { %p5760_p13 = scmp.ne.s32.totalorder %s7796_s22, %s5759_s10  ;;  %p5766_p5 = scmp.lt.u32.totalorder %s5759_s10, %s7796_s22 }
  0x77   : > { %p5762_p0 = pnand %p5760_p13, %p6254_p8 }
  0x79   : > { %p5763_p2 = pneg %p5762_p0 }
  0x7b   : > { %p5768_p7 = pnand %p5766_p5, %p5763_p2 }
  0x7d   : > { %5771 = shalt.err (!%p5768_p7)
}
  0x7e   : > { %s5772_s1 = scalar_lea.vmem %s764_s7, 16  ;;  %s5779_s13 = scalar_lea.vmem %s764_s7, 32 }
  0x7f   : > { %p5773_p9 = scmp.ne.s32.totalorder %s764_s7, %s5772_s1  ;;  %p5780_p12 = scmp.lt.s32.totalorder %s764_s7, %s764_s7 }
  0x80   : > { %p5781_p4 = scmp.lt.s32.totalorder %s5779_s13, %s5772_s1 }
  0x81   : > { %p5775_p10 = pnand %p5773_p9, %p6254_p8 }
  0x82   : > { %p5782_p1 = por %p5781_p4, %p5780_p12 }
  0x83   : > { %p5776_p11 = pneg %p5775_p10 }
  0x85   : > { %p5783_p3 = pnand %p5782_p1, %p5776_p11 }
  0x87   : > { %5786 = shalt.err (!%p5783_p3)
}
  0x88   : > { %5589 = dma.hbm_to_vmem [thread:$0]  (!%p6240_p6), %s7796_s22, 16, %s764_s7, [#allocation16]  }
  0x89   : > { %s7852_s12 = sld [smem:[#allocation40_spill]] }
  0x8f   : > { %s5787_s25 = scalar_lea.hbm %s7852_s12, 16 }
  0x90   : > { %p5788_p13 = scmp.ne.s32.totalorder %s7852_s12, %s5787_s25  ;;  %p5794_p3 = scmp.lt.u32.totalorder %s5787_s25, %s7852_s12 }
  0x92   : > { %p5790_p0 = pnand %p5788_p13, %p6254_p8 }
  0x94   : > { %p5791_p1 = pneg %p5790_p0 }
  0x96   : > { %p5796_p2 = pnand %p5794_p3, %p5791_p1 }
  0x98   : > { %5799 = shalt.err (!%p5796_p2)
}
  0x99   : > { %s5800_s19 = scalar_lea.vmem %s692_s18, 16  ;;  %s5807_s7 = scalar_lea.vmem %s692_s18, 32 }
  0x9a   : > { %p5801_p5 = scmp.ne.s32.totalorder %s692_s18, %s5800_s19  ;;  %p5808_p10 = scmp.lt.s32.totalorder %s692_s18, %s692_s18 }
  0x9b   : > { %p5809_p11 = scmp.lt.s32.totalorder %s5807_s7, %s5800_s19 }
  0x9c   : > { %p5803_p7 = pnand %p5801_p5, %p6254_p8 }
  0x9d   : > { %p5810_p12 = por %p5809_p11, %p5808_p10 }
  0x9e   : > { %p5804_p9 = pneg %p5803_p7 }
  0xa0   : > { %p5811_p4 = pnand %p5810_p12, %p5804_p9 }
  0xa2   : > { %5814 = shalt.err (!%p5811_p4)
}
  0xa3   : > { %5574 = dma.hbm_to_vmem [thread:$0]  (!%p6240_p6), %s7852_s12, 16, %s692_s18, [#allocation7]  }
  0xa4   : > { %s6052_s1 = smov [#allocation11]   ;;  %s6053_s14 = smov [#allocation14]  }
  0xa5   : > { %s719_s13 = sshll.u32 %s6052_s1, 4  ;;  %s749_s0 = sshll.u32 %s6053_s14, 4  ;;  %s720_s13 = int_to_ptr.vmem [resolvable:$true] %s719_s13  ;;  %s750_s0 = int_to_ptr.vmem [resolvable:$true] %s749_s0 }
  0xa6   : > { %s7853_s16 = sld [smem:[#allocation44_spill]] }
  0xac   : > { %s5815_s25 = scalar_lea.hbm %s7853_s16, 16 }
  0xad   : > { %p5816_p13 = scmp.ne.s32.totalorder %s7853_s16, %s5815_s25  ;;  %p5822_p3 = scmp.lt.u32.totalorder %s5815_s25, %s7853_s16 }
  0xaf   : > { %p5818_p0 = pnand %p5816_p13, %p6254_p8 }
  0xb1   : > { %p5819_p1 = pneg %p5818_p0 }
  0xb3   : > { %p5824_p2 = pnand %p5822_p3, %p5819_p1 }
  0xb5   : > { %5827 = shalt.err (!%p5824_p2)
}
  0xb6   : > { %s5828_s18 = scalar_lea.vmem %s720_s13, 16  ;;  %s5835_s19 = scalar_lea.vmem %s720_s13, 32 }
  0xb7   : > { %p5829_p5 = scmp.ne.s32.totalorder %s720_s13, %s5828_s18  ;;  %p5836_p10 = scmp.lt.s32.totalorder %s720_s13, %s720_s13 }
  0xb8   : > { %p5837_p11 = scmp.lt.s32.totalorder %s5835_s19, %s5828_s18 }
  0xb9   : > { %p5831_p7 = pnand %p5829_p5, %p6254_p8 }
  0xba   : > { %p5838_p12 = por %p5837_p11, %p5836_p10 }
  0xbb   : > { %p5832_p9 = pneg %p5831_p7 }
  0xbd   : > { %p5839_p4 = pnand %p5838_p12, %p5832_p9 }
  0xbf   : > { %5842 = shalt.err (!%p5839_p4)
}
  0xc0   : > { %5580 = dma.hbm_to_vmem [thread:$0]  (!%p6240_p6), %s7853_s16, 16, %s720_s13, [#allocation10]  }
  0xc1   : > { %s5843_s14 = scalar_lea.hbm %s7794_s20, 16 }
  0xc2   : > { %p5844_p13 = scmp.ne.s32.totalorder %s7794_s20, %s5843_s14  ;;  %p5850_p3 = scmp.lt.u32.totalorder %s5843_s14, %s7794_s20 }
  0xc4   : > { %p5846_p0 = pnand %p5844_p13, %p6254_p8 }
  0xc6   : > { %p5847_p1 = pneg %p5846_p0 }
  0xc8   : > { %p5852_p2 = pnand %p5850_p3, %p5847_p1 }
  0xca   : > { %5855 = shalt.err (!%p5852_p2)
}
  0xcb   : > { %s5856_s26 = scalar_lea.vmem %s750_s0, 16  ;;  %s5863_s13 = scalar_lea.vmem %s750_s0, 32 }
  0xcc   : > { %p5857_p5 = scmp.ne.s32.totalorder %s750_s0, %s5856_s26  ;;  %p5864_p10 = scmp.lt.s32.totalorder %s750_s0, %s750_s0 }
  0xcd   : > { %p5865_p11 = scmp.lt.s32.totalorder %s5863_s13, %s5856_s26 }
  0xce   : > { %p5859_p7 = pnand %p5857_p5, %p6254_p8 }
  0xcf   : > { %p5866_p12 = por %p5865_p11, %p5864_p10 }
  0xd0   : > { %p5860_p9 = pneg %p5859_p7 }
  0xd2   : > { %p5867_p4 = pnand %p5866_p12, %p5860_p9 }
  0xd4   : > { %5870 = shalt.err (!%p5867_p4)
}
  0xd5   : > { %5586 = dma.hbm_to_vmem [thread:$0]  (!%p6240_p6), %s7794_s20, 16, %s750_s0, [#allocation13]  }
  0xd6   : > { %s6054_s18 = smov [#allocation17]   ;;  %s6055_s7 = smov [#allocation18]  }
  0xd7   : > { %s774_s19 = sshll.u32 %s6054_s18, 4  ;;  %s785_s9 = sshll.u32 %s6055_s7, 4  ;;  %s775_s19 = int_to_ptr.vmem [resolvable:$true] %s774_s19  ;;  %s786_s9 = int_to_ptr.vmem [resolvable:$true] %s785_s9 }
  0xd8   : > { %s5871_s14 = scalar_lea.hbm %s7797_s23, 16 }
  0xd9   : > { %p5872_p13 = scmp.ne.s32.totalorder %s7797_s23, %s5871_s14  ;;  %p5878_p3 = scmp.lt.u32.totalorder %s5871_s14, %s7797_s23 }
  0xdb   : > { %p5874_p0 = pnand %p5872_p13, %p6254_p8 }
  0xdd   : > { %p5875_p1 = pneg %p5874_p0 }
  0xdf   : > { %p5880_p2 = pnand %p5878_p3, %p5875_p1 }
  0xe1   : > { %5883 = shalt.err (!%p5880_p2)
}
  0xe2   : > { %s5884_s0 = scalar_lea.vmem %s775_s19, 16  ;;  %s5891_s26 = scalar_lea.vmem %s775_s19, 32 }
  0xe3   : > { %p5885_p5 = scmp.ne.s32.totalorder %s775_s19, %s5884_s0  ;;  %p5892_p10 = scmp.lt.s32.totalorder %s775_s19, %s775_s19 }
  0xe4   : > { %p5893_p11 = scmp.lt.s32.totalorder %s5891_s26, %s5884_s0 }
  0xe5   : > { %p5887_p7 = pnand %p5885_p5, %p6254_p8 }
  0xe6   : > { %p5894_p12 = por %p5893_p11, %p5892_p10 }
  0xe7   : > { %p5888_p9 = pneg %p5887_p7 }
  0xe9   : > { %p5895_p4 = pnand %p5894_p12, %p5888_p9 }
  0xeb   : > { %5898 = shalt.err (!%p5895_p4)
}
  0xec   : > { %5592 = dma.hbm_to_vmem [thread:$0]  (!%p6240_p6), %s7797_s23, 16, %s775_s19, [#allocation16]  }
  0xed   : > { %s5899_s7 = scalar_lea.hbm %s7798_s24, 16 }
  0xee   : > { %p5900_p13 = scmp.ne.s32.totalorder %s7798_s24, %s5899_s7  ;;  %p5906_p3 = scmp.lt.u32.totalorder %s5899_s7, %s7798_s24 }
  0xf0   : > { %p5902_p0 = pnand %p5900_p13, %p6254_p8 }
  0xf2   : > { %p5903_p1 = pneg %p5902_p0 }
  0xf4   : > { %p5908_p2 = pnand %p5906_p3, %p5903_p1 }
  0xf6   : > { %5911 = shalt.err (!%p5908_p2)
}
  0xf7   : > { %s5912_s21 = scalar_lea.vmem %s786_s9, 16  ;;  %s5919_s19 = scalar_lea.vmem %s786_s9, 32 }
  0xf8   : > { %p5913_p5 = scmp.ne.s32.totalorder %s786_s9, %s5912_s21  ;;  %p5920_p10 = scmp.lt.s32.totalorder %s786_s9, %s786_s9 }
  0xf9   : > { %p5921_p11 = scmp.lt.s32.totalorder %s5919_s19, %s5912_s21 }
  0xfa   : > { %p5915_p7 = pnand %p5913_p5, %p6254_p8 }
  0xfb   : > { %p5922_p12 = por %p5921_p11, %p5920_p10 }
  0xfc   : > { %p5916_p9 = pneg %p5915_p7 }
  0xfe   : > { %p5923_p4 = pnand %p5922_p12, %p5916_p9 }
 0x100   : > { %5926 = shalt.err (!%p5923_p4)
}
 0x101   : > { %5595 = dma.hbm_to_vmem [thread:$0]  (!%p6240_p6), %s7798_s24, 16, %s786_s9, [#allocation19]  }
 0x102   : > { %s4134_s5 = sadd.s32 4294967294, %s6043_s29   ;;  %s6433_s27 = sadd.s32 1, %s6043_s29  }
 0x103   : > { %s57_s0 = sadd.s32 1, %s6039_s4  ;;  %s54_s26 = ssub.s32 %s6043_s29, %s6433_s27 }
 0x104   : > { %p64_p8 = scmp.ne.s32.totalorder %s6039_s4, %s6035_s8  ;;  %p55_p13 = scmp.eq.s32.totalorder %s54_s26, 0 }
 0x105   : > { %p65_p0 = scmp.eq.s32.totalorder %s6043_s29, 0  ;;  %p70_p1 = scmp.ne.s32.totalorder %s6035_s8, %s6031_s28 }
 0x106   : > { %p624_p3 = scmp.eq.s32.totalorder %s6222_s30, 1  ;;  %p7854_p5 = scmp.eq.s32.totalorder %s6222_s30, 0 }
 0x107   : > { %s6445_s13 = scalar_select %p55_p13, %s6039_s4, %s57_s0  }
 0x108   : > { %p66_p2 = por %p65_p0, %p64_p8  ;;  %p6449_p7 = por %p7854_p5, %p70_p1 }
 0x109   : > { %p6453_p6 = por %p624_p3, %p64_p8  ;;  %p630_p9 = scmp.eq.s32.totalorder %s4134_s5, 1 }
 0x10a   : > { %p5613_p10 = scmp.lt.s32.totalorder %s6043_s29, 2  ;;  %s796_s6 = sand.u32 1, %s6039_s4  }
 0x10b   : > { %s7856_s9 = scalar_select %p6453_p6, 1, 0 }
 0x10c   : > { %p6459_p11 = por %p630_p9, %p70_p1  ;;  %s4146_s7 = sshll.u32 %s796_s6, 4 }
 0x10d   : > { %s4398_s10 = sshll.u32 %s6043_s29, 8  ;;  %s7858_s11 = sld [smem:[#allocation28_spill]] }
 0x10e   : > { %s7857_s18 = scalar_select %p6459_p11, 1, 0 }
 0x10f   : > { %s800_s19 = scalar_lea.vmem [#allocation3], %s4146_s7  ;;  %p6469_p12 = pnand %p5613_p10, %p66_p2 }
 0x110   : > { %s807_s25 = sshll.u32 %s800_s19, 4  ;;  %s6475_s5 = scalar_lea.sflag [#allocation4], %s796_s6  ;;  %s6473_s25 = int_to_ptr.vmem [resolvable:$true] %s807_s25 }
 0x111   : > { %p5929_p8 = pneg %p6469_p12 }
 0x113   : > { %s6467_s21 = scalar_lea.hbm %s7858_s11, %s4398_s10  ;;  %s5932_s10 = scalar_lea.hbm %s7858_s11, 512 }
 0x114   : > { %s5927_s0 = scalar_lea.hbm %s6467_s21, 256  ;;  %p5933_p1 = scmp.lt.u32.totalorder %s6467_s21, %s7858_s11 }
 0x115   : > { %p5928_p4 = scmp.ne.s32.totalorder %s6467_s21, %s5927_s0  ;;  %p5934_p3 = scmp.lt.u32.totalorder %s5932_s10, %s5927_s0 }
 0x116   : > { %p5936_p5 = scmp.lt.u32.totalorder %s5927_s0, %s6467_s21 }
 0x117   : > { %p5930_p13 = pnand %p5929_p8, %p5928_p4  ;;  %p5935_p2 = por %p5934_p3, %p5933_p1 }
 0x119   : > { %p5931_p0 = pneg %p5930_p13  ;;  %p5937_p9 = por %p5936_p5, %p5935_p2 }
 0x11b   : > { %p5938_p10 = pnand %p5937_p9, %p5931_p0 }
 0x11d   : > { %5941 = shalt.err (!%p5938_p10)
}
 0x11e   : > { %s5942_s6 = scalar_lea.vmem %s6473_s25, 256  ;;  %s6056_s19 = smov [#allocation3]  }
 0x11f   : > { %p5943_p4 = scmp.ne.s32.totalorder %s6473_s25, %s5942_s6  ;;  %s5947_s26 = sshll.u32 %s6056_s19, 4  ;;  %s5948_s26 = int_to_ptr.vmem [resolvable:$false] %s5947_s26 }
 0x120   : > { %s5949_s7 = scalar_lea.vmem %s5948_s26, 512  ;;  %p5950_p6 = scmp.lt.s32.totalorder %s6473_s25, %s5948_s26 }
 0x121   : > { %p5945_p13 = pnand %p5943_p4, %p5929_p8  ;;  %p5951_p1 = scmp.lt.s32.totalorder %s5949_s7, %s5942_s6 }
 0x123   : > { %p5946_p11 = pneg %p5945_p13  ;;  %p5952_p3 = por %p5951_p1, %p5950_p6 }
 0x125   : > { %p5953_p2 = pnand %p5952_p3, %p5946_p11 }
 0x127   : > { %5956 = shalt.err (!%p5953_p2)
}
 0x128   : > { %s6057_s0 = smov 128   ;;  %s6058_s10 = smov 8  }
 0x129   : > { %5599 = dma.hbm_to_vmem [thread:$0]  (!%p6469_p12), %s6467_s21, 256, %s6473_s25, %s6475_s5, %s6057_s0, %s6057_s0, %s6058_s10  }
 0x12a   : > { %p7860_p8 = scmp.ne.s32.totalorder %s7847_s2, 0 }
 0x12b   : > { %s6506_s1 = sand.u32 (!%p7860_p8), 1, %s6035_s8  }
 0x12c   : > { %819 = sbr.rel (%p7860_p8) target bundleno = 2832 (0xb10), region = 120  ;;  %s7817_s14 = sshll.u32 (!%p7860_p8), %s6506_s1, 4 }
 0x12d   : > { %s822_s6 = scalar_lea.sflag (!%p7860_p8), [#allocation4], %s6506_s1  ;;  %s6512_s19 = scalar_lea.vmem (!%p7860_p8), [#allocation3], %s7817_s14 }
 0x133   : > { %6002 = dma.done.wait (%p6449_p7), %s822_s6, 256  }
 0x134   : > { %6004 = vsyncadd (%p6449_p7), %s822_s6, 4294967040  ;;  %p7861_p6 = scmp.eq.s32.totalorder %s6222_s30, 0 }
 0x136   : > { %6006 = dma.done.wait (%p7861_p6), [#allocation7], 32   ;;  %p7862_p11 = pmov %p7861_p6 }
 0x137   : > { %p7863_p12 = pmov %p7861_p6 }
 0x138   : > { %6008 = vsyncadd (%p7862_p11), [#allocation7], 4294967264 }
 0x139   : > { %6010 = dma.done.wait (%p7863_p12), [#allocation10], 32   ;;  %p7864_p0 = pmov %p7861_p6 }
 0x13b   : > { %6012 = vsyncadd (%p7864_p0), [#allocation10], 4294967264  ;;  %p7865_p5 = pmov %p7864_p0 }
 0x13c   : > { %p7866_p9 = pmov %p7864_p0 }
 0x13d   : > { %6014 = dma.done.wait (%p7865_p5), [#allocation13], 12304  }
 0x13e   : > { %6016 = vsyncadd (%p7866_p9), [#allocation13], 4294954992  ;;  %p7867_p7 = pmov %p7864_p0 }
 0x13f   : > { %p7868_p10 = pmov %p7864_p0 }
 0x140   : > { %6018 = dma.done.wait (%p7867_p7), [#allocation16], 32  }
 0x141   : > { %6020 = vsyncadd (%p7868_p10), [#allocation16], 4294967264  ;;  %p7869_p4 = pmov %p7864_p0 }
 0x142   : > { %p7870_p13 = pmov %p7864_p0 }
 0x143   : > { %6022 = dma.done.wait (%p7869_p4), [#allocation19], 16  }
 0x144   : > { %6024 = vsyncadd (%p7870_p13), [#allocation19], 4294967280  ;;  %v6059_v1 = vmov 0.0   ;;  %s7871_s21 = sld [smem:[#allocation29_spill]]  ;;  %v942_v5 = vlaneseq  ;;  %vm983_vm0 = vcmask 1045504   ;;  %v6567_v14 = vld [vmem:[%s6512_s19 + $0x8] sm:$0xff] }
 0x145   : > { %1054 = vmatprep.mubr.f32.mxu0 %v6059_v1  ;;  %v6576_v17 = vld [vmem:[%s6512_s19] sm:$0xff]  ;;  %vm976_vm1 = vcmask 179200   ;;  %v948_v24 = vrot.slane %v6567_v14, 7  ;;  %s7872_s10 = sld [smem:[#allocation31_spill]]  ;;  %v957_v59 = vrot.slane %v6567_v14, 1  ;;  %s7873_s2 = sld [smem:[#allocation30_spill]] }
 0x146   : > { %v6569_v15 = vshrl.u32 %v942_v5, 7  ;;  %v947_v23 = vrot.slane %v6576_v17, 7  ;;  %v956_v58 = vrot.slane %v6576_v17, 1  ;;  %s7874_s15 = sld [smem:[#allocation47_spill]]  ;;  %s7879_s7 = sld [smem:[#allocation33_spill]] }
 0x147   : > { %s7880_s25 = sld [smem:[#allocation35_spill]]  ;;  %s7881_s3 = sld [smem:[#allocation32_spill]] }
 0x148   : > { %vm949_vm2 = vcmp.lt.s32.totalorder %v6569_v15, 1  ;;  %vm945_vm3 = vcmp.eq.s32.totalorder %v6569_v15, 0  ;;  %vm958_vm4 = vcmp.lt.s32.totalorder %v6569_v15, 7  ;;  %v6688_v0 = vadd.s32 8, %v6569_v15  ;;  %s7883_s26 = sld [smem:[#allocation37_spill]]  ;;  %p935_p1 = scmp.lt.s32.totalorder %s6222_s30, 1 }
 0x149   : > { %v951_v39 = vsel %vm949_vm2, %v948_v24, %v947_v23  ;;  %v950_v60 = vsel %vm949_vm2, %v947_v23, %v948_v24  ;;  %vm6925_vm10 = vmneg %vm945_vm3  ;;  %s7885_s11 = sld [smem:[#allocation48_spill]]  ;;  %s7886_s5 = sld [smem:[#allocation41_spill]] }
 0x14a   : > { %v4164_v2 = vld [vmem:[%s7871_s21 + $0x38] sm:$0xff]  ;;  %v4166_v3 = vld [vmem:[%s7871_s21 + $0x48] sm:$0xff]  ;;  %v4163_v4 = vld [vmem:[%s7871_s21 + $0x30] sm:$0xff]  ;;  %v952_v47 = vsel %vm945_vm3, 0.0, %v951_v39  ;;  %vm955_vm5 = vcmp.eq.s32.totalorder %v6688_v0, 15  ;;  %s936_s6 = scalar_select %p935_p1, %s6222_s30, 1 }
 0x14b   : > { %v5012_v6 = vpack.c.bf16 %v4166_v3, %v4164_v2  ;;  %v4165_v7 = vld [vmem:[%s7871_s21 + $0x40] sm:$0xff]  ;;  %v4168_v9 = vld [vmem:[%s7871_s21 + $0x58] sm:$0x3f]  ;;  %v964_v10 = vld [vmem:[%s7871_s21 + $0x8] sm:$0xff]  ;;  %s7888_s14 = sld [smem:[#allocation46_spill]]  ;;  %s7890_s0 = sshll.u32 %s6506_s1, 4 }
 0x14c   : > { %v5014_v8 = vpack.c.bf16 %v4165_v7, %v4163_v4  ;;  %v966_v11 = vld [vmem:[%s7871_s21 + $0x18] sm:$0xff]  ;;  %v963_v12 = vld [vmem:[%s7871_s21] sm:$0xff]  ;;  %v965_v13 = vld [vmem:[%s7871_s21 + $0x10] sm:$0xff]  ;;  %p7892_p2 = scmp.ne.s32.totalorder %s7856_s9, 0 }
 0x14d   : > { %5013 = vmatprep.subr.bf16.mxu0 %v5012_v6  ;;  %v4167_v16 = vld [vmem:[%s7871_s21 + $0x50] sm:$0x3f]  ;;  %v5016_v18 = vpack.c.bf16 %v966_v11, %v964_v10  ;;  %v5018_v19 = vpack.c.bf16 %v965_v13, %v963_v12  ;;  %v968_v20 = vld [vmem:[%s7871_s21 + $0x28] sm:$0x3f]  ;;  %v4180_v22 = vld [vmem:[%s7871_s21 + $0x78] sm:$0xff]  ;;  %v959_v11 = vsel %vm958_vm4, %v956_v58, %v957_v59 }
 0x14e   : > { %5015 = vmatpush1.bf16.msra.mxu0 %v5014_v8  ;;  %v4178_v21 = vld [vmem:[%s7871_s21 + $0x68] sm:$0xff]  ;;  %v4203_v25 = vld [vmem:[%s7872_s10 + $0x180] sm:$0xff]  ;;  %v4205_v30 = vld [vmem:[%s7872_s10 + $0x190] sm:$0xff] }
 0x14f   : > { %4169 = vmatprep.subr.msk.mxu0 %vm983_vm0, %v4168_v9  ;;  %v4204_v26 = vld [vmem:[%s7872_s10 + $0x188] sm:$0xff]  ;;  %v4187_v27 = vld [vmem:[%s7872_s10 + $0x100] sm:$0xff]  ;;  %v4206_v31 = vld [vmem:[%s7872_s10 + $0x198] sm:$0xff]  ;;  %v5020_v40 = vpack.c.bf16 %v4180_v22, %v4178_v21 }
 0x150   : > { %v5024_v28 = vpack.c.bf16 %v4204_v26, %v4203_v25  ;;  %v4188_v29 = vld [vmem:[%s7872_s10 + $0x108] sm:$0xff]  ;;  %v5028_v33 = vpack.c.bf16 %v4206_v31, %v4205_v30  ;;  %v4189_v34 = vld [vmem:[%s7872_s10 + $0x110] sm:$0xff]  ;;  %v4190_v35 = vld [vmem:[%s7872_s10 + $0x118] sm:$0xff] }
 0x151   : > { %v5026_v32 = vpack.c.bf16 %v4188_v29, %v4187_v27  ;;  %v4207_v36 = vld [vmem:[%s7872_s10 + $0x1a0] sm:$0xff]  ;;  %v4208_v37 = vld [vmem:[%s7872_s10 + $0x1a8] sm:$0xff]  ;;  %v4179_v42 = vld [vmem:[%s7871_s21 + $0x70] sm:$0xff]  ;;  %v5030_v43 = vpack.c.bf16 %v4190_v35, %v4189_v34 }
 0x152   : > { %4170 = vmatpush1.msk.msra.mxu0 %vm983_vm0, %v4167_v16  ;;  %v967_v38 = vld [vmem:[%s7871_s21 + $0x20] sm:$0x3f]  ;;  %5025 = vmatprep.subr.bf16.mxu1 %v5024_v28  ;;  %v5032_v44 = vpack.c.bf16 %v4208_v37, %v4207_v36  ;;  %v4192_v46 = vld [vmem:[%s7872_s10 + $0x128] sm:$0xff]  ;;  %v4209_v49 = vld [vmem:[%s7872_s10 + $0x1b0] sm:$0xff]  ;;  %v960_v16 = vsel %vm958_vm4, %v957_v59, %v956_v58 }
 0x153   : > { %4171 = vmatmul.mubr.msk.f32.vlgmr.msra.gmra.mrb[0].mxu0 %vm976_vm1, %v6576_v17  ;;  %5017 = vmatprep.subr.bf16.mxu0 %v5016_v18  ;;  %v4177_v41 = vld [vmem:[%s7871_s21 + $0x60] sm:$0xff]  ;;  %v4210_v50 = vld [vmem:[%s7872_s10 + $0x1b8] sm:$0xff]  ;;  %v4182_v51 = vld [vmem:[%s7871_s21 + $0x88] sm:$0x3f]  ;;  %v962_v26 = vsel %vm955_vm5, 0.0, %v960_v16 }
 0x154   : > { %5019 = vmatpush1.bf16.msra.mxu0 %v5018_v19  ;;  %1060 = vmatprep.mubr.f32.mxu0 %v6059_v1  ;;  %v4191_v45 = vld [vmem:[%s7872_s10 + $0x120] sm:$0xff]  ;;  %v5022_v48 = vpack.c.bf16 %v4179_v42, %v4177_v41  ;;  %v1337_v53 = vld [vmem:[%s7872_s10 + $0x88] sm:$0xff]  ;;  %v5036_v55 = vpack.c.bf16 %v4210_v50, %v4209_v49  ;;  %v4193_v56 = vld [vmem:[%s7872_s10 + $0x130] sm:$0xff] }
 0x155   : > { %4173 = vmatprep.subr.msk.mxu0 %vm983_vm0, %v968_v20  ;;  %5027 = vmatpush3.bf16.msra.mxu1 %v5026_v32  ;;  %v1336_v52 = vld [vmem:[%s7872_s10 + $0x80] sm:$0xff]  ;;  %v5034_v54 = vpack.c.bf16 %v4192_v46, %v4191_v45  ;;  %v4194_v57 = vld [vmem:[%s7872_s10 + $0x138] sm:$0xff]  ;;  %v4212_v62 = vld [vmem:[%s7872_s10 + $0x1c8] sm:$0xff] }
 0x156   : > { %5029 = vmatprep.subr.bf16.mxu1 %v5028_v33  ;;  %v4211_v61 = vld [vmem:[%s7872_s10 + $0x1c0] sm:$0xff]  ;;  %v5056_v2 = vpack.c.bf16 %v1337_v53, %v1336_v52  ;;  %v1321_v4 = vld [vmem:[%s7872_s10 + $0x8] sm:$0xff]  ;;  %v1338_v5 = vld [vmem:[%s7872_s10 + $0x90] sm:$0xff]  ;;  %v5038_v7 = vpack.c.bf16 %v4194_v57, %v4193_v56 }
 0x157   : > { %4172 = vmatmul.mubr.msk.f32.gmra.mrb[2].mxu0 %vm976_vm1, %v6567_v14  ;;  %v4181_v63 = vld [vmem:[%s7871_s21 + $0x80] sm:$0x3f]  ;;  %v1339_v6 = vld [vmem:[%s7872_s10 + $0x98] sm:$0xff]  ;;  %v5040_v8 = vpack.c.bf16 %v4212_v62, %v4211_v61  ;;  %v4196_v10 = vld [vmem:[%s7872_s10 + $0x148] sm:$0xff] }
 0x158   : > { %4174 = vmatpush1.msk.msra.mxu0 %vm983_vm0, %v967_v38  ;;  %1143 = vmatprep.mubr.f32.mxu0 %v6059_v1  ;;  %v1320_v3 = vld [vmem:[%s7872_s10] sm:$0xff]  ;;  %v4213_v13 = vld [vmem:[%s7872_s10 + $0x1d0] sm:$0xff]  ;;  %v4214_v14 = vld [vmem:[%s7872_s10 + $0x1d8] sm:$0xff]  ;;  %v5060_v17 = vpack.c.bf16 %v1339_v6, %v1338_v5 }
 0x159   : > { %5021 = vmatprep.subr.bf16.mxu0 %v5020_v40  ;;  %5031 = vmatpush3.bf16.msra.mxu1 %v5030_v43  ;;  %v4195_v9 = vld [vmem:[%s7872_s10 + $0x140] sm:$0xff]  ;;  %v5058_v12 = vpack.c.bf16 %v1321_v4, %v1320_v3  ;;  %v1322_v18 = vld [vmem:[%s7872_s10 + $0x10] sm:$0xff]  ;;  %v1323_v19 = vld [vmem:[%s7872_s10 + $0x18] sm:$0xff]  ;;  %v5044_v23 = vpack.c.bf16 %v4214_v14, %v4213_v13 }
 0x15a   : > { %5033 = vmatprep.subr.bf16.mxu1 %v5032_v44  ;;  %v1340_v20 = vld [vmem:[%s7872_s10 + $0xa0] sm:$0xff]  ;;  %v1341_v21 = vld [vmem:[%s7872_s10 + $0xa8] sm:$0xff]  ;;  %v5042_v22 = vpack.c.bf16 %v4196_v10, %v4195_v9  ;;  %v4197_v24 = vld [vmem:[%s7872_s10 + $0x150] sm:$0xff]  ;;  %v5062_v27 = vpack.c.bf16 %v1323_v19, %v1322_v18  ;;  %v6848_v19 = vsub.s32 1, %v6569_v15 }
 0x15b   : > { %4175 = vmatmul.mubr.msk.f32.vlgmr.msra.gmra.mrb[0].mxu0 %vm976_vm1, %v952_v47  ;;  %v4198_v25 = vld [vmem:[%s7872_s10 + $0x158] sm:$0xff]  ;;  %v4215_v28 = vld [vmem:[%s7872_s10 + $0x1e0] sm:$0xff]  ;;  %v4216_v29 = vld [vmem:[%s7872_s10 + $0x1e8] sm:$0xff]  ;;  %v5064_v30 = vpack.c.bf16 %v1341_v21, %v1340_v20 }
 0x15c   : > { %5023 = vmatpush1.bf16.msra.mxu0 %v5022_v48  ;;  %1149 = vmatprep.mubr.f32.mxu0 %v6059_v1  ;;  %v1324_v31 = vld [vmem:[%s7872_s10 + $0x20] sm:$0xff]  ;;  %v1325_v32 = vld [vmem:[%s7872_s10 + $0x28] sm:$0xff]  ;;  %v1342_v33 = vld [vmem:[%s7872_s10 + $0xb0] sm:$0xff]  ;;  %v5046_v35 = vpack.c.bf16 %v4198_v25, %v4197_v24  ;;  %v5048_v36 = vpack.c.bf16 %v4216_v29, %v4215_v28 }
 0x15d   : > { %4183 = vmatprep.subr.msk.mxu0 %vm983_vm0, %v4182_v51  ;;  %5035 = vmatpush3.bf16.msra.mxu1 %v5034_v54  ;;  %v1343_v34 = vld [vmem:[%s7872_s10 + $0xb8] sm:$0xff]  ;;  %v5066_v37 = vpack.c.bf16 %v1325_v32, %v1324_v31  ;;  %v1326_v39 = vld [vmem:[%s7872_s10 + $0x30] sm:$0xff]  ;;  %v1344_v41 = vld [vmem:[%s7872_s10 + $0xc0] sm:$0xff] }
 0x15e   : > { %5037 = vmatprep.subr.bf16.mxu1 %v5036_v55  ;;  %v5068_v38 = vpack.c.bf16 %v1343_v34, %v1342_v33  ;;  %v1327_v40 = vld [vmem:[%s7872_s10 + $0x38] sm:$0xff]  ;;  %v1345_v42 = vld [vmem:[%s7872_s10 + $0xc8] sm:$0xff]  ;;  %v4199_v45 = vld [vmem:[%s7872_s10 + $0x160] sm:$0xff] }
 0x15f   : > { %4176 = vmatmul.mubr.msk.f32.gmra.mrb[2].mxu0 %vm976_vm1, %v950_v60  ;;  %v5070_v43 = vpack.c.bf16 %v1327_v40, %v1326_v39  ;;  %v5072_v44 = vpack.c.bf16 %v1345_v42, %v1344_v41  ;;  %v4200_v46 = vld [vmem:[%s7872_s10 + $0x168] sm:$0xff]  ;;  %v1328_v47 = vld [vmem:[%s7872_s10 + $0x40] sm:$0xff]  ;;  %v4217_v51 = vld [vmem:[%s7872_s10 + $0x1f0] sm:$0xff] }
 0x160   : > { %4184 = vmatpush1.msk.msra.mxu0 %vm983_vm0, %v4181_v63  ;;  %1239 = vmatprep.mubr.f32.mxu0 %v6059_v1  ;;  %v5050_v48 = vpack.c.bf16 %v4200_v46, %v4199_v45  ;;  %v1329_v49 = vld [vmem:[%s7872_s10 + $0x48] sm:$0xff]  ;;  %v4218_v52 = vld [vmem:[%s7872_s10 + $0x1f8] sm:$0xff]  ;;  %v1346_v53 = vld [vmem:[%s7872_s10 + $0xd0] sm:$0xff]  ;;  %vm2007_vm0 = vcmask 523264  }
 0x161   : > { %5057 = vmatprep.subr.bf16.mxu0 %v5056_v2  ;;  %5039 = vmatpush3.bf16.msra.mxu1 %v5038_v7  ;;  %v5074_v50 = vpack.c.bf16 %v1329_v49, %v1328_v47  ;;  %v5052_v54 = vpack.c.bf16 %v4218_v52, %v4217_v51  ;;  %v1347_v55 = vld [vmem:[%s7872_s10 + $0xd8] sm:$0xff]  ;;  %v4201_v56 = vld [vmem:[%s7872_s10 + $0x170] sm:$0xff]  ;;  %v1348_v63 = vld [vmem:[%s7872_s10 + $0xe0] sm:$0xff] }
 0x162   : > { %5041 = vmatprep.subr.bf16.mxu1 %v5040_v8  ;;  %v4202_v57 = vld [vmem:[%s7872_s10 + $0x178] sm:$0xff]  ;;  %v5076_v58 = vpack.c.bf16 %v1347_v55, %v1346_v53  ;;  %v1330_v60 = vld [vmem:[%s7872_s10 + $0x50] sm:$0xff]  ;;  %v1349_v2 = vld [vmem:[%s7872_s10 + $0xe8] sm:$0xff] }
 0x163   : > { %4185 = vmatmul.mubr.msk.f32.vlgmr.msra.gmra.mrb[0].mxu0 %vm976_vm1, %v959_v11  ;;  %v5054_v59 = vpack.c.bf16 %v4202_v57, %v4201_v56  ;;  %v1331_v61 = vld [vmem:[%s7872_s10 + $0x58] sm:$0xff]  ;;  %v4239_v3 = vld [vmem:[%s7872_s10 + $0x280] sm:$0xff]  ;;  %v5080_v4 = vpack.c.bf16 %v1349_v2, %v1348_v63  ;;  %v4240_v5 = vld [vmem:[%s7872_s10 + $0x288] sm:$0xff] }
 0x164   : > { %1245 = vmatprep.mubr.f32.mxu0 %v6059_v1  ;;  %5059 = vmatpush3.bf16.msra.mxu0 %v5058_v12  ;;  %v5078_v62 = vpack.c.bf16 %v1331_v61, %v1330_v60  ;;  %v1332_v6 = vld [vmem:[%s7872_s10 + $0x60] sm:$0xff]  ;;  %v1333_v7 = vld [vmem:[%s7872_s10 + $0x68] sm:$0xff]  ;;  %v5088_v8 = vpack.c.bf16 %v4240_v5, %v4239_v3  ;;  %v1350_v10 = vld [vmem:[%s7872_s10 + $0xf0] sm:$0xff] }
 0x165   : > { %5061 = vmatprep.subr.bf16.mxu0 %v5060_v17  ;;  %5043 = vmatpush3.bf16.msra.mxu1 %v5042_v22  ;;  %v5082_v9 = vpack.c.bf16 %v1333_v7, %v1332_v6  ;;  %v1351_v11 = vld [vmem:[%s7872_s10 + $0xf8] sm:$0xff]  ;;  %v1334_v13 = vld [vmem:[%s7872_s10 + $0x70] sm:$0xff]  ;;  %v6842_v17 = vsub.s32 0, %v6569_v15  ;;  %v1256_v18 = vld [vmem:[%s7873_s2] sm:$0x3]  ;;  %s4399_s2 = sshll.u32 %s936_s6, 4 }
 0x166   : > { %5045 = vmatprep.subr.bf16.mxu1 %v5044_v23  ;;  %v5084_v12 = vpack.c.bf16 %v1351_v11, %v1350_v10  ;;  %v1335_v14 = vld [vmem:[%s7872_s10 + $0x78] sm:$0xff]  ;;  %v1272_v20 = vld [vmem:[%s7874_s15] sm:$0x3]  ;;  %v1265_v22 = vrot.slane %v1256_v18, %v6848_v19  ;;  %v4241_v32 = vld [vmem:[%s7872_s10 + $0x290] sm:$0xff]  ;;  %s7884_s15 = sld [smem:[#allocation39_spill]]  ;;  %s939_s12 = scalar_lea.vmem %s7885_s11, %s4399_s2 }
 0x167   : > { %4186 = vmatmul.mubr.msk.f32.gmra.mrb[2].mxu0 %vm976_vm1, %v962_v26  ;;  %v5086_v16 = vpack.c.bf16 %v1335_v14, %v1334_v13  ;;  %v1261_v21 = vrot.slane %v1256_v18, %v6842_v17  ;;  %v1281_v23 = vrot.slane %v1272_v20, %v6842_v17  ;;  %v1285_v25 = vrot.slane %v1272_v20, %v6848_v19  ;;  %v4223_v29 = vld [vmem:[%s7872_s10 + $0x200] sm:$0xff]  ;;  %v4242_v33 = vld [vmem:[%s7872_s10 + $0x298] sm:$0xff]  ;;  %v4225_v42 = vld [vmem:[%s7872_s10 + $0x210] sm:$0xff]  ;;  %s7887_s6 = sld [smem:[#allocation43_spill]]  ;;  %s7889_s11 = sld [smem:[#allocation45_spill]] }
 0x168   : > { %5063 = vmatpush3.bf16.msra.mxu0 %v5062_v27  ;;  %v5092_v41 = vpack.c.bf16 %v4242_v33, %v4241_v32  ;;  %v4243_v46 = vld [vmem:[%s7872_s10 + $0x2a0] sm:$0xff]  ;;  %v4244_v47 = vld [vmem:[%s7872_s10 + $0x2a8] sm:$0xff]  ;;  %v4245_v61 = vld [vmem:[%s7872_s10 + $0x2b0] sm:$0xff]  ;;  %s934_s2 = scalar_lea.vmem [#allocation20], %s7890_s0 }
 0x169   : > { %5065 = vmatprep.subr.bf16.mxu0 %v5064_v30  ;;  %5047 = vmatpush3.bf16.msra.mxu1 %v5046_v35  ;;  %v4224_v30 = vld [vmem:[%s7872_s10 + $0x208] sm:$0xff]  ;;  %v5096_v53 = vpack.c.bf16 %v4244_v47, %v4243_v46  ;;  %v4229_v7 = vld [vmem:[%s7872_s10 + $0x230] sm:$0xff]  ;;  %v4247_v10 = vld [vmem:[%s7872_s10 + $0x2c0] sm:$0xff] }
 0x16a   : > { %5049 = vmatprep.subr.bf16.mxu1 %v5048_v36  ;;  %v4228_v55 = vld [vmem:[%s7872_s10 + $0x228] sm:$0xff]  ;;  %v4249_v20 = vld [vmem:[%s7872_s10 + $0x2d0] sm:$0xff]  ;;  %v4235_v32 = vld [vmem:[%s7872_s10 + $0x260] sm:$0xff] }
 0x16b   : > { %v4248_v11 = vld [vmem:[%s7872_s10 + $0x2c8] sm:$0xff]  ;;  %vm7013_vm11 = vmneg %vm955_vm5  ;;  %v3456_v0 = vld [vmem:[#allocation12 + $0x8] sm:$0xff] }
 0x16c   : > { %5067 = vmatpush3.bf16.msra.mxu0 %v5066_v37  ;;  %v5104_v14 = vpack.c.bf16 %v4248_v11, %v4247_v10  ;;  %v4232_v18 = vld [vmem:[%s7872_s10 + $0x248] sm:$0xff]  ;;  %v4276_v10 = vld [vmem:[%s7879_s7 + $0xf8] sm:$0xff] }
 0x16d   : > { %5069 = vmatprep.subr.bf16.mxu0 %v5068_v38  ;;  %5051 = vmatpush3.bf16.msra.mxu1 %v5050_v48  ;;  %v5090_v38 = vpack.c.bf16 %v4224_v30, %v4223_v29  ;;  %v4252_v29 = vld [vmem:[%s7872_s10 + $0x2e8] sm:$0xff] }
 0x16e   : > { %5053 = vmatprep.subr.bf16.mxu1 %v5052_v54  ;;  %v4227_v54 = vld [vmem:[%s7872_s10 + $0x220] sm:$0xff]  ;;  %v4236_v33 = vld [vmem:[%s7872_s10 + $0x268] sm:$0xff] }
 0x16f   : > { %v3471_v15 = vld [vmem:[#allocation12 + $0x80] sm:$0xff] }
 0x170   : > { %5071 = vmatpush3.bf16.msra.mxu0 %v5070_v43  ;;  %v4226_v43 = vld [vmem:[%s7872_s10 + $0x218] sm:$0xff]  ;;  %v3687_v60 = vld [vmem:[#allocation12 + $0x260] sm:$0xff] }
 0x171   : > { %5073 = vmatprep.subr.bf16.mxu0 %v5072_v44  ;;  %5055 = vmatpush3.bf16.msra.mxu1 %v5054_v59 }
 0x172   : > { %5089 = vmatprep.subr.bf16.mxu1 %v5088_v8  ;;  %v4230_v8 = vld [vmem:[%s7872_s10 + $0x238] sm:$0xff] }
 0x174   : > { %5075 = vmatpush3.bf16.msra.mxu0 %v5074_v50  ;;  %v5094_v50 = vpack.c.bf16 %v4226_v43, %v4225_v42  ;;  %v4238_v42 = vld [vmem:[%s7872_s10 + $0x278] sm:$0xff] }
 0x175   : > { %5077 = vmatprep.subr.bf16.mxu0 %v5076_v58 }
 0x178   : > { %5079 = vmatpush3.bf16.msra.mxu0 %v5078_v62  ;;  %v4246_v62 = vld [vmem:[%s7872_s10 + $0x2b8] sm:$0xff] }
 0x179   : > { %5081 = vmatprep.subr.bf16.mxu0 %v5080_v4  ;;  %v5098_v4 = vpack.c.bf16 %v4228_v55, %v4227_v54  ;;  %v5100_v6 = vpack.c.bf16 %v4246_v62, %v4245_v61  ;;  %v4265_v54 = vld [vmem:[%s7879_s7 + $0xa0] sm:$0xff] }
 0x17a   : > { %v4269_v62 = vld [vmem:[%s7879_s7 + $0xc0] sm:$0xff] }
 0x17c   : > { %5083 = vmatpush3.bf16.msra.mxu0 %v5082_v9 }
 0x17d   : > { %5085 = vmatprep.subr.bf16.mxu0 %v5084_v12  ;;  %v5102_v12 = vpack.c.bf16 %v4230_v8, %v4229_v7  ;;  %v4274_v7 = vld [vmem:[%s7879_s7 + $0xe8] sm:$0xff] }
 0x180   : > { %5087 = vmatpush3.bf16.msra.mxu0 %v5086_v16  ;;  %v4231_v16 = vld [vmem:[%s7872_s10 + $0x240] sm:$0xff] }
 0x236   : > { %v1241_v24 = vpop.f32.mrb[0].mxu0 }
 0x237   : > { %v6857_v26 = vadd.f32 %v1261_v21, %v1241_v24  ;;  %v1243_v27 = vpop.f32.mrb[1].mxu0  ;;  %v4233_v24 = vld [vmem:[%s7872_s10 + $0x250] sm:$0xff] }
 0x238   : > { %v6859_v28 = vadd.f32 %v1265_v22, %v1243_v27  ;;  %v4251_v27 = vld [vmem:[%s7872_s10 + $0x2e0] sm:$0xff] }
 0x239   : > { %v1288_v31 = vmul.f32 %v1281_v23, %v6857_v26  ;;  %vm1273_vm7 = vcmp.ge.f32.partialorder %v6857_v26, 0.0 }
 0x23a   : > { %v1247_v34 = vpop.f32.mrb[2].mxu0  ;;  %vm1274_vm6 = vcmp.ge.f32.partialorder %v6859_v28, 0.0  ;;  %v1289_v35 = vmul.f32 %v1285_v25, %v6859_v28 }
 0x23b   : > { %v6877_v36 = vadd.f32 %v1261_v21, %v1247_v34  ;;  %v1249_v37 = vpop.f32.mrb[3].mxu0  ;;  %v6892_v44 = vsel %vm1273_vm7, %v6857_v26, %v1288_v31  ;;  %v4250_v21 = vld [vmem:[%s7872_s10 + $0x2d8] sm:$0xff]  ;;  %v5112_v31 = vpack.c.bf16 %v4252_v29, %v4251_v27  ;;  %v4253_v34 = vld [vmem:[%s7872_s10 + $0x2f0] sm:$0xff] }
 0x23c   : > { %v6879_v39 = vadd.f32 %v1265_v22, %v1249_v37  ;;  %v6882_v40 = vsel %vm1274_vm6, %v6859_v28, %v1289_v35  ;;  %v1296_v63 = vrot.slane %v6892_v44, 7  ;;  %v5106_v22 = vpack.c.bf16 %v4232_v18, %v4231_v16  ;;  %v4254_v35 = vld [vmem:[%s7872_s10 + $0x2f8] sm:$0xff]  ;;  %v1990_v16 = vld [vmem:[%s7880_s25] sm:$0xff]  ;;  %v1991_v18 = vld [vmem:[%s7880_s25 + $0x8] sm:$0xff] }
 0x23d   : > { %1449 = vmatprep.mubr.f32.mxu1 %v6882_v40  ;;  %vm1275_vm8 = vcmp.ge.f32.partialorder %v6877_v36, 0.0  ;;  %v1290_v45 = vmul.f32 %v1281_v23, %v6877_v36  ;;  %v1297_v56 = vrot.slane %v6882_v40, 7  ;;  %v1309_v57 = vrot.slane %v6882_v40, 1  ;;  %v4262_v40 = vld [vmem:[%s7879_s7 + $0x88] sm:$0xff] }
 0x23e   : > { %1450 = vmatmul.mubr.f32.vlgmr.msra.gmra.mrb[0].mxu1 %v6892_v44  ;;  %vm1276_vm9 = vcmp.ge.f32.partialorder %v6879_v39, 0.0  ;;  %v1291_v48 = vmul.f32 %v1285_v25, %v6879_v39  ;;  %v5108_v23 = vpack.c.bf16 %v4250_v21, %v4249_v20  ;;  %v4234_v25 = vld [vmem:[%s7872_s10 + $0x258] sm:$0xff]  ;;  %v5114_v37 = vpack.c.bf16 %v4236_v33, %v4235_v32  ;;  %v1992_v21 = vld [vmem:[%s7880_s25 + $0x10] sm:$0xff] }
 0x23f   : > { %5091 = vmatpush3.bf16.msra.mxu1 %v5090_v38  ;;  %v6906_v49 = vsel %vm1275_vm8, %v6877_v36, %v1290_v45  ;;  %v5110_v30 = vpack.c.bf16 %v4234_v25, %v4233_v24  ;;  %v5116_v38 = vpack.c.bf16 %v4254_v35, %v4253_v34  ;;  %v1308_v46 = vrot.slane %v6892_v44, 1 }
 0x240   : > { %v6909_v51 = vsel %vm1276_vm9, %v6879_v39, %v1291_v48  ;;  %5093 = vmatprep.subr.bf16.mxu1 %v5092_v41  ;;  %v1298_v52 = vrot.slane %v6906_v49, 7  ;;  %v4237_v41 = vld [vmem:[%s7872_s10 + $0x270] sm:$0xff]  ;;  %v1310_v45 = vrot.slane %v6906_v49, 1  ;;  %v5232_v20 = vpack.c.bf16 %v1991_v18, %v1990_v16  ;;  %v1691_v18 = vld [vmem:[%s7879_s7 + $0x60] sm:$0xff]  ;;  %s7882_s10 = sld [smem:[#allocation34_spill]] }
 0x241   : > { %v1299_v58 = vrot.slane %v6909_v51, 7  ;;  %v1311_v59 = vrot.slane %v6909_v51, 1  ;;  %1454 = vmatprep.mubr.f32.mxu1 %v6909_v51  ;;  %v5118_v43 = vpack.c.bf16 %v4238_v42, %v4237_v41  ;;  %vm2305_vm8 = vcmask 261120  }
 0x242   : > { %1455 = vmatmul.mubr.f32.gmra.mrb[2].mxu1 %v6906_v49  ;;  %v1302_v5 = vsel %vm949_vm2, %v1298_v52, %v1296_v63  ;;  %v1300_v13 = vsel %vm949_vm2, %v1296_v63, %v1298_v52  ;;  %v1312_v48 = vsel %vm958_vm4, %v1308_v46, %v1310_v45  ;;  %v1314_v44 = vsel %vm958_vm4, %v1310_v45, %v1308_v46  ;;  %v4263_v52 = vld [vmem:[%s7879_s7 + $0x90] sm:$0xff]  ;;  %v4270_v63 = vld [vmem:[%s7879_s7 + $0xc8] sm:$0xff] }
 0x243   : > { %5095 = vmatpush3.bf16.msra.mxu1 %v5094_v50  ;;  %v1303_v2 = vsel %vm949_vm2, %v1299_v58, %v1297_v56  ;;  %v1313_v3 = vsel %vm958_vm4, %v1309_v57, %v1311_v59  ;;  %v1301_v9 = vsel %vm949_vm2, %v1297_v56, %v1299_v58  ;;  %v1315_v49 = vsel %vm958_vm4, %v1311_v59, %v1309_v57  ;;  %v4261_v50 = vld [vmem:[%s7879_s7 + $0x80] sm:$0xff]  ;;  %v4266_v56 = vld [vmem:[%s7879_s7 + $0xa8] sm:$0xff]  ;;  %v4267_v58 = vld [vmem:[%s7879_s7 + $0xb0] sm:$0xff] }
 0x244   : > { %4220 = vmatprep.mubr.msk.f32.mxu0 %vm6925_vm10, %v1303_v2  ;;  %1632 = vmatprep.mubr.f32.mxu1 %v1313_v3  ;;  %v5120_v51 = vpack.c.bf16 %v4262_v40, %v4261_v50  ;;  %v5128_v57 = vpack.c.bf16 %v4266_v56, %v4265_v54  ;;  %v4268_v59 = vld [vmem:[%s7879_s7 + $0xb8] sm:$0xff]  ;;  %v5136_v2 = vpack.c.bf16 %v4270_v63, %v4269_v62  ;;  %v4271_v3 = vld [vmem:[%s7879_s7 + $0xd0] sm:$0xff]  ;;  %v4260_v40 = vld [vmem:[#allocation15] ss:$0 sm:$0xff]  ;;  %vm2587_vm9 = vcmask 1040384  }
 0x245   : > { %4222 = vmatmul.mubr.msk.f32.vlgmr.msra.gmra.mrb[4].mxu0 %vm6925_vm10, %v1302_v5  ;;  %5097 = vmatprep.subr.bf16.mxu1 %v5096_v53  ;;  %v4264_v53 = vld [vmem:[%s7879_s7 + $0x98] sm:$0xff]  ;;  %v5132_v61 = vpack.c.bf16 %v4268_v59, %v4267_v58  ;;  %v1683_v63 = vld [vmem:[%s7879_s7 + $0x20] sm:$0xff] }
 0x246   : > { %1529 = vmatprep.mubr.f32.mxu0 %v1301_v9  ;;  %5121 = vmatprep.subr.bf16.mxu0 %v5120_v51  ;;  %v5124_v55 = vpack.c.bf16 %v4264_v53, %v4263_v52  ;;  %v4275_v9 = vld [vmem:[%s7879_s7 + $0xf0] sm:$0xff]  ;;  %v1682_v58 = vld [vmem:[%s7879_s7 + $0x18] sm:$0xff] }
 0x247   : > { %5099 = vmatpush3.bf16.msra.mxu1 %v5098_v4  ;;  %5123 = vmatpush3.bf16.msra.mxu0 %v5120_v51  ;;  %v4272_v4 = vld [vmem:[%s7879_s7 + $0xd8] sm:$0xff]  ;;  %v5148_v11 = vpack.c.bf16 %v4276_v10, %v4275_v9  ;;  %v1687_v10 = vld [vmem:[%s7879_s7 + $0x40] sm:$0xff] }
 0x248   : > { %5101 = vmatprep.subr.bf16.mxu1 %v5100_v6  ;;  %5125 = vmatprep.subr.bf16.mxu0 %v5124_v55  ;;  %v5140_v5 = vpack.c.bf16 %v4272_v4, %v4271_v3  ;;  %v4273_v6 = vld [vmem:[%s7879_s7 + $0xe0] sm:$0xff] }
 0x249   : > { %1530 = vmatmul.mubr.f32.gmra.mrb[6].mxu0 %v1300_v13  ;;  %v5144_v8 = vpack.c.bf16 %v4274_v7, %v4273_v6  ;;  %v1680_v13 = vld [vmem:[%s7879_s7 + $0x8] sm:$0xff]  ;;  %v1685_v7 = vld [vmem:[%s7879_s7 + $0x30] sm:$0xff] }
 0x24b   : > { %5103 = vmatpush3.bf16.msra.mxu1 %v5102_v12  ;;  %5127 = vmatpush3.bf16.msra.mxu0 %v5124_v55  ;;  %v1679_v12 = vld [vmem:[%s7879_s7] sm:$0xff] }
 0x24c   : > { %5105 = vmatprep.subr.bf16.mxu1 %v5104_v14  ;;  %5129 = vmatprep.subr.bf16.mxu0 %v5128_v57  ;;  %v5152_v14 = vpack.c.bf16 %v1680_v13, %v1679_v12  ;;  %v1689_v13 = vld [vmem:[%s7879_s7 + $0x50] sm:$0xff] }
 0x24f   : > { %5107 = vmatpush3.bf16.msra.mxu1 %v5106_v22  ;;  %5131 = vmatpush3.bf16.msra.mxu0 %v5128_v57  ;;  %v1993_v22 = vld [vmem:[%s7880_s25 + $0x18] sm:$0xff]  ;;  %v1681_v57 = vld [vmem:[%s7879_s7 + $0x10] sm:$0xff] }
 0x250   : > { %5109 = vmatprep.subr.bf16.mxu1 %v5108_v23  ;;  %5133 = vmatprep.subr.bf16.mxu0 %v5132_v61  ;;  %v5236_v23 = vpack.c.bf16 %v1993_v22, %v1992_v21  ;;  %v1693_v22 = vld [vmem:[%s7879_s7 + $0x70] sm:$0xff] }
 0x253   : > { %5111 = vmatpush3.bf16.msra.mxu1 %v5110_v30  ;;  %5135 = vmatpush3.bf16.msra.mxu0 %v5132_v61  ;;  %v5156_v61 = vpack.c.bf16 %v1682_v58, %v1681_v57  ;;  %v4293_v57 = vld [vmem:[%s7879_s7 + $0x170] sm:$0xff]  ;;  %v4294_v58 = vld [vmem:[%s7879_s7 + $0x178] sm:$0xff] }
 0x254   : > { %5113 = vmatprep.subr.bf16.mxu1 %v5112_v31  ;;  %5137 = vmatprep.subr.bf16.mxu0 %v5136_v2 }
 0x257   : > { %5115 = vmatpush3.bf16.msra.mxu1 %v5114_v37  ;;  %5139 = vmatpush3.bf16.msra.mxu0 %v5136_v2  ;;  %v1684_v2 = vld [vmem:[%s7879_s7 + $0x28] sm:$0xff] }
 0x258   : > { %5117 = vmatprep.subr.bf16.mxu1 %v5116_v38  ;;  %5141 = vmatprep.subr.bf16.mxu0 %v5140_v5  ;;  %v5160_v6 = vpack.c.bf16 %v1684_v2, %v1683_v63  ;;  %v4301_v2 = vld [vmem:[%s7880_s25 + $0x50] sm:$0xff] }
 0x25b   : > { %5119 = vmatpush3.bf16.msra.mxu1 %v5118_v43  ;;  %5143 = vmatpush3.bf16.msra.mxu0 %v5140_v5 }
 0x25c   : > { %5145 = vmatprep.subr.bf16.mxu0 %v5144_v8  ;;  %5233 = vmatprep.subr.bf16.mxu1 %v5232_v20 }
 0x25e   : > { %1633 = vmatmul.mubr.f32.vlgmr.msra.gmra.mrb[4].mxu1 %v1312_v48  ;;  %v4259_v48 = vld [vmem:[%s7881_s3] ss:$0 sm:$0xff] }
 0x25f   : > { %4256 = vmatprep.mubr.msk.f32.mxu1 %vm7013_vm11, %v1315_v49  ;;  %5147 = vmatpush3.bf16.msra.mxu0 %v5144_v8  ;;  %v1686_v8 = vld [vmem:[%s7879_s7 + $0x38] sm:$0xff] }
 0x260   : > { %5149 = vmatprep.subr.bf16.mxu0 %v5148_v11  ;;  %5235 = vmatpush3.bf16.msra.mxu1 %v5232_v20  ;;  %v5164_v9 = vpack.c.bf16 %v1686_v8, %v1685_v7  ;;  %v1692_v20 = vld [vmem:[%s7879_s7 + $0x68] sm:$0xff] }
 0x261   : > { %5237 = vmatprep.subr.bf16.mxu1 %v5236_v23  ;;  %v5176_v21 = vpack.c.bf16 %v1692_v20, %v1691_v18  ;;  %v4304_v7 = vld [vmem:[%s7880_s25 + $0x68] sm:$0xff]  ;;  %v1997_v18 = vld [vmem:[%s7880_s25 + $0x38] sm:$0xff] }
 0x262   : > { %4258 = vmatmul.mubr.msk.f32.gmra.mrb[6].mxu1 %vm7013_vm11, %v1314_v44 }
 0x263   : > { %5151 = vmatpush3.bf16.msra.mxu0 %v5148_v11  ;;  %v1688_v11 = vld [vmem:[%s7879_s7 + $0x48] sm:$0xff] }
 0x264   : > { %5153 = vmatprep.subr.bf16.mxu0 %v5152_v14  ;;  %5239 = vmatpush3.bf16.msra.mxu1 %v5236_v23  ;;  %v5168_v12 = vpack.c.bf16 %v1688_v11, %v1687_v10  ;;  %v1694_v23 = vld [vmem:[%s7879_s7 + $0x78] sm:$0xff]  ;;  %v1995_v10 = vld [vmem:[%s7880_s25 + $0x28] sm:$0xff] }
 0x311   : > { %v4433_v24 = vpop.f32.mrb[0].mxu1 }
 0x312   : > { %v4434_v25 = vpop.f32.mrb[1].mxu1 }
 0x313   : > { %v4435_v27 = vadd.f32 %v4434_v25, %v4433_v24  ;;  %v5180_v24 = vpack.c.bf16 %v1694_v23, %v1693_v22  ;;  %v4279_v25 = vld [vmem:[%s7879_s7 + $0x100] sm:$0xff]  ;;  %v4312_v22 = vld [vmem:[%s7880_s25 + $0x88] sm:$0xff] }
 0x315   : > { %v4436_v29 = vpop.f32.mrb[2].mxu1 }
 0x316   : > { %v4437_v30 = vpop.f32.mrb[3].mxu1 }
 0x317   : > { %v4438_v31 = vadd.f32 %v4437_v30, %v4436_v29  ;;  %v4281_v30 = vld [vmem:[%s7879_s7 + $0x110] sm:$0xff] }
 0x318   : > { %v4471_v32 = vpop.f32.mrb[4].mxu0 }
 0x319   : > { %v4472_v33 = vpop.f32.mrb[5].mxu0 }
 0x31a   : > { %v4473_v34 = vadd.f32 %v4472_v33, %v4471_v32 }
 0x31c   : > { %v1527_v35 = vadd.f32 %v4473_v34, %v4435_v27  ;;  %v4474_v37 = vpop.f32.mrb[6].mxu0  ;;  %v4280_v27 = vld [vmem:[%s7879_s7 + $0x108] sm:$0xff] }
 0x31d   : > { %v4475_v38 = vpop.f32.mrb[7].mxu0  ;;  %v5184_v29 = vpack.c.bf16 %v4280_v27, %v4279_v25  ;;  %v7267_v27 = vld [vmem:[#allocation17] ss:$0 sm:$0xff] }
 0x31e   : > { %v4476_v41 = vadd.f32 %v4475_v38, %v4474_v37  ;;  %v4283_v37 = vld [vmem:[%s7879_s7 + $0x120] sm:$0xff]  ;;  %v4284_v38 = vld [vmem:[%s7879_s7 + $0x128] sm:$0xff] }
 0x320   : > { %v1532_v42 = vadd.f32 %v4476_v41, %v4438_v31  ;;  %v4282_v31 = vld [vmem:[%s7879_s7 + $0x118] sm:$0xff] }
 0x321   : > { %v5188_v34 = vpack.c.bf16 %v4282_v31, %v4281_v30 }
 0x331   : > { %v4509_v43 = vpop.f32.mrb[4].mxu1 }
 0x332   : > { %v4510_v45 = vpop.f32.mrb[5].mxu1 }
 0x333   : > { %v4511_v46 = vadd.f32 %v4510_v45, %v4509_v43  ;;  %v4285_v43 = vld [vmem:[%s7879_s7 + $0x130] sm:$0xff]  ;;  %v4286_v45 = vld [vmem:[%s7879_s7 + $0x138] sm:$0xff] }
 0x335   : > { %v1643_v49 = vadd.f32 %v4511_v46, %v1527_v35  ;;  %v4512_v44 = vpop.f32.mrb[6].mxu1  ;;  %v5196_v46 = vpack.c.bf16 %v4286_v45, %v4285_v43 }
 0x336   : > { %v4513_v50 = vpop.f32.mrb[7].mxu1 }
 0x337   : > { %v7100_v51 = vadd.f32 %v4259_v48, %v1643_v49  ;;  %v4514_v52 = vadd.f32 %v4513_v50, %v4512_v44  ;;  %v4288_v49 = vld [vmem:[%s7879_s7 + $0x148] sm:$0xff]  ;;  %v4289_v50 = vld [vmem:[%s7879_s7 + $0x150] sm:$0xff] }
 0x339   : > { %v1644_v53 = vadd.f32 %v4514_v52, %v1532_v42  ;;  %vm1655_vm12 = vcmp.ge.f32.partialorder %v7100_v51, 0.0  ;;  %v1663_v54 = vmul.f32 %v4260_v40, %v7100_v51  ;;  %v5192_v42 = vpack.c.bf16 %v4284_v38, %v4283_v37 }
 0x33b   : > { %v7104_v55 = vadd.f32 %v4259_v48, %v1644_v53  ;;  %v7107_v56 = vsel %vm1655_vm12, %v7100_v51, %v1663_v54  ;;  %v4287_v48 = vld [vmem:[%s7879_s7 + $0x140] sm:$0xff]  ;;  %v4292_v54 = vld [vmem:[%s7879_s7 + $0x168] sm:$0xff]  ;;  %vm2580_vm12 = vcmask 7168  }
 0x33c   : > { %4744 = vmatprep.mubr.f32.mxu0 %v7107_v56  ;;  %v1667_v3 = vrot.slane %v7107_v56, 7  ;;  %v1673_v33 = vrot.slane %v7107_v56, 1  ;;  %v5200_v44 = vpack.c.bf16 %v4288_v49, %v4287_v48  ;;  %v4291_v53 = vld [vmem:[%s7879_s7 + $0x160] sm:$0xff] }
 0x33d   : > { %vm1656_vm13 = vcmp.ge.f32.partialorder %v7104_v55, 0.0  ;;  %v1664_v59 = vmul.f32 %v4260_v40, %v7104_v55  ;;  %v4290_v40 = vld [vmem:[%s7879_s7 + $0x158] sm:$0xff]  ;;  %v5208_v56 = vpack.c.bf16 %v4292_v54, %v4291_v53  ;;  %v4317_v54 = vld [vmem:[%s7880_s25 + $0xb0] sm:$0xff] }
 0x33e   : > { %v5204_v52 = vpack.c.bf16 %v4290_v40, %v4289_v50  ;;  %v4315_v50 = vld [vmem:[%s7880_s25 + $0xa0] sm:$0xff]  ;;  %v4316_v40 = vld [vmem:[%s7880_s25 + $0xa8] sm:$0xff] }
 0x33f   : > { %v7119_v62 = vsel %vm1656_vm13, %v7104_v55, %v1664_v59  ;;  %v5212_v59 = vpack.c.bf16 %v4294_v58, %v4293_v57  ;;  %v5256_v53 = vpack.c.bf16 %v4316_v40, %v4315_v50 }
 0x340   : > { %4745 = vmatmul.mubr.f32.vlgmr.msra.gmra.mrb[8].mxu0 %v7119_v62  ;;  %v1668_v4 = vrot.slane %v7119_v62, 7  ;;  %v1674_v32 = vrot.slane %v7119_v62, 1  ;;  %v4300_v62 = vld [vmem:[%s7880_s25 + $0x48] sm:$0xff] }
 0x341   : > { %5155 = vmatpush3.bf16.msra.mxu0 %v5152_v14  ;;  %v1690_v14 = vld [vmem:[%s7879_s7 + $0x58] sm:$0xff]  ;;  %s4400_s7 = sshll.u32 %s6222_s30, 8  ;;  %s3934_s30 = scalar_lea.sflag [#allocation5], %s6506_s1 }
 0x342   : > { %5157 = vmatprep.subr.bf16.mxu0 %v5156_v61  ;;  %v1670_v5 = vsel %vm949_vm2, %v1668_v4, %v1667_v3  ;;  %v5172_v16 = vpack.c.bf16 %v1690_v14, %v1689_v13  ;;  %v1669_v35 = vsel %vm949_vm2, %v1667_v3, %v1668_v4  ;;  %v1675_v41 = vsel %vm958_vm4, %v1673_v33, %v1674_v32  ;;  %v4302_v3 = vld [vmem:[%s7880_s25 + $0x58] sm:$0xff] }
 0x343   : > { %4779 = vmatprep.mubr.msk.f32.mxu0 %vm6925_vm10, %v1670_v5  ;;  %v5220_v4 = vpack.c.bf16 %v4302_v3, %v4301_v2  ;;  %v1676_v5 = vsel %vm958_vm4, %v1674_v32, %v1673_v33  ;;  %v4306_v13 = vld [vmem:[%s7880_s25 + $0x78] sm:$0xff]  ;;  %v4325_v2 = vld [vmem:[%s7883_s26 + $0x30] sm:$0xff] }
 0x344   : > { %v4326_v3 = vld [vmem:[%s7883_s26 + $0x38] sm:$0xff] }
 0x345   : > { %5159 = vmatpush3.bf16.msra.mxu0 %v5156_v61  ;;  %v4299_v61 = vld [vmem:[%s7880_s25 + $0x40] sm:$0xff] }
 0x346   : > { %5161 = vmatprep.subr.bf16.mxu0 %v5160_v6  ;;  %v5216_v63 = vpack.c.bf16 %v4300_v62, %v4299_v61  ;;  %v4323_v61 = vld [vmem:[%s7883_s26 + $0x20] sm:$0xff]  ;;  %v4324_v62 = vld [vmem:[%s7883_s26 + $0x28] sm:$0xff] }
 0x349   : > { %5163 = vmatpush3.bf16.msra.mxu0 %v5160_v6  ;;  %v4303_v6 = vld [vmem:[%s7880_s25 + $0x60] sm:$0xff] }
 0x34a   : > { %5165 = vmatprep.subr.bf16.mxu0 %v5164_v9  ;;  %v5224_v8 = vpack.c.bf16 %v4304_v7, %v4303_v6  ;;  %v2297_v6 = vld [vmem:[%s7883_s26 + $0x8] sm:$0xff] }
 0x34d   : > { %5167 = vmatpush3.bf16.msra.mxu0 %v5164_v9  ;;  %v1994_v9 = vld [vmem:[%s7880_s25 + $0x20] sm:$0xff] }
 0x34e   : > { %5169 = vmatprep.subr.bf16.mxu0 %v5168_v12  ;;  %v5240_v11 = vpack.c.bf16 %v1995_v10, %v1994_v9 }
 0x350   : > { %5241 = vmatprep.subr.bf16.mxu1 %v5240_v11 }
 0x351   : > { %5171 = vmatpush3.bf16.msra.mxu0 %v5168_v12  ;;  %v4305_v12 = vld [vmem:[%s7880_s25 + $0x70] sm:$0xff]  ;;  %5243 = vmatpush3.bf16.msra.mxu1 %v5240_v11  ;;  %v4321_v11 = vld [vmem:[#allocation6] ss:$0 sm:$0xff] }
 0x352   : > { %5173 = vmatprep.subr.bf16.mxu0 %v5172_v16  ;;  %v5228_v14 = vpack.c.bf16 %v4306_v13, %v4305_v12 }
 0x355   : > { %5175 = vmatpush3.bf16.msra.mxu0 %v5172_v16  ;;  %v1996_v16 = vld [vmem:[%s7880_s25 + $0x30] sm:$0xff] }
 0x356   : > { %5177 = vmatprep.subr.bf16.mxu0 %v5176_v21  ;;  %v5244_v20 = vpack.c.bf16 %v1997_v18, %v1996_v16  ;;  %v7335_v16 = vld [vmem:[#allocation18] ss:$0 sm:$0xff] }
 0x358   : > { %5245 = vmatprep.subr.bf16.mxu1 %v5244_v20 }
 0x359   : > { %5179 = vmatpush3.bf16.msra.mxu0 %v5176_v21  ;;  %5247 = vmatpush3.bf16.msra.mxu1 %v5244_v20  ;;  %v4311_v21 = vld [vmem:[%s7880_s25 + $0x80] sm:$0xff] }
 0x35a   : > { %5181 = vmatprep.subr.bf16.mxu0 %v5180_v24  ;;  %v5248_v23 = vpack.c.bf16 %v4312_v22, %v4311_v21  ;;  %v2298_v22 = vld [vmem:[%s7883_s26 + $0x10] sm:$0xff] }
 0x35c   : > { %5249 = vmatprep.subr.bf16.mxu1 %v5248_v23 }
 0x35d   : > { %5183 = vmatpush3.bf16.msra.mxu0 %v5180_v24  ;;  %v4297_v24 = vld [vmem:[%s7882_s10] ss:$0 sm:$0xff]  ;;  %s3950_s10 = sshll.u32 %s934_s2, 4  ;;  %s7728_s10 = int_to_ptr.vmem [resolvable:$true] %s3950_s10 }
 0x35e   : > { %5185 = vmatprep.subr.bf16.mxu0 %v5184_v29 }
 0x360   : > { %4780 = vmatmul.mubr.f32.vlgmr.msra.gmra.mrb[8].mxu0 %v1669_v35 }
 0x361   : > { %5187 = vmatpush3.bf16.msra.mxu0 %v5184_v29  ;;  %4814 = vmatprep.mubr.f32.mxu0 %v1675_v41  ;;  %v4313_v41 = vld [vmem:[%s7880_s25 + $0x90] sm:$0xff] }
 0x362   : > { %5189 = vmatprep.subr.bf16.mxu0 %v5188_v34 }
 0x365   : > { %5191 = vmatpush3.bf16.msra.mxu0 %v5188_v34 }
 0x366   : > { %5193 = vmatprep.subr.bf16.mxu0 %v5192_v42 }
 0x369   : > { %5195 = vmatpush3.bf16.msra.mxu0 %v5192_v42  ;;  %v4314_v42 = vld [vmem:[%s7880_s25 + $0x98] sm:$0xff] }
 0x36a   : > { %5197 = vmatprep.subr.bf16.mxu0 %v5196_v46  ;;  %v5252_v49 = vpack.c.bf16 %v4314_v42, %v4313_v41 }
 0x36d   : > { %5199 = vmatpush3.bf16.msra.mxu0 %v5196_v46 }
 0x36e   : > { %5201 = vmatprep.subr.bf16.mxu0 %v5200_v44 }
 0x371   : > { %5203 = vmatpush3.bf16.msra.mxu0 %v5200_v44 }
 0x372   : > { %5205 = vmatprep.subr.bf16.mxu0 %v5204_v52 }
 0x375   : > { %5207 = vmatpush3.bf16.msra.mxu0 %v5204_v52 }
 0x376   : > { %5209 = vmatprep.subr.bf16.mxu0 %v5208_v56 }
 0x379   : > { %5211 = vmatpush3.bf16.msra.mxu0 %v5208_v56  ;;  %v4318_v56 = vld [vmem:[%s7880_s25 + $0xb8] sm:$0xff] }
 0x37a   : > { %5213 = vmatprep.subr.bf16.mxu0 %v5212_v59  ;;  %v5260_v57 = vpack.c.bf16 %v4318_v56, %v4317_v54  ;;  %v2577_v54 = vld [vmem:[%s7884_s15] sm:$0x1]  ;;  %v4345_v56 = vld [vmem:[%s7884_s15 + $0x2] sm:$0x1] }
 0x37d   : > { %5215 = vmatpush3.bf16.msra.mxu0 %v5212_v59 }
 0x37e   : > { %5217 = vmatprep.subr.bf16.mxu0 %v5216_v63 }
 0x380   : > { %4815 = vmatmul.mubr.msk.f32.vlgmr.msra.gmra.mrb[8].mxu0 %vm7013_vm11, %v1676_v5  ;;  %v2296_v5 = vld [vmem:[%s7883_s26] sm:$0xff] }
 0x381   : > { %5219 = vmatpush3.bf16.msra.mxu0 %v5216_v63  ;;  %v5264_v63 = vpack.c.bf16 %v4324_v62, %v4323_v61  ;;  %v5272_v7 = vpack.c.bf16 %v2297_v6, %v2296_v5 }
 0x382   : > { %5221 = vmatprep.subr.bf16.mxu0 %v5220_v4 }
 0x385   : > { %5223 = vmatpush3.bf16.msra.mxu0 %v5220_v4  ;;  %v5268_v4 = vpack.c.bf16 %v4326_v3, %v4325_v2 }
 0x386   : > { %5225 = vmatprep.subr.bf16.mxu0 %v5224_v8 }
 0x389   : > { %5227 = vmatpush3.bf16.msra.mxu0 %v5224_v8 }
 0x38a   : > { %5229 = vmatprep.subr.bf16.mxu0 %v5228_v14 }
 0x38d   : > { %5231 = vmatpush3.bf16.msra.mxu0 %v5228_v14 }
 0x453   : > { %v4816_v25 = vpop.f32.mrb[8].mxu0 }
 0x454   : > { %v7269_v29 = vadd.f32 %v4816_v25, %v4297_v24  ;;  %v1945_v30 = vpop.f32.mrb[9].mxu0 }
 0x455   : > { %v7271_v31 = vadd.f32 %v4297_v24, %v1945_v30 }
 0x456   : > { %v1975_v32 = vmul.f32 %v7267_v27, %v7269_v29  ;;  %vm1967_vm14 = vcmp.ge.f32.partialorder %v7269_v29, 0.0 }
 0x457   : > { %vm1966_vm15 = vcmp.ge.f32.partialorder %v7271_v31, 0.0  ;;  %v1974_v33 = vmul.f32 %v7267_v27, %v7271_v31 }
 0x458   : > { %v1977_v34 = vsel %vm1967_vm14, %v7269_v29, %v1975_v32 }
 0x459   : > { %v1976_v35 = vsel %vm1966_vm15, %v7271_v31, %v1974_v33  ;;  %v1979_v37 = vrot.slane %v1977_v34, 7  ;;  %v1985_v45 = vrot.slane %v1977_v34, 1 }
 0x45a   : > { %v1978_v38 = vrot.slane %v1976_v35, 7  ;;  %4833 = vmatprep.mubr.msk.f32.mxu0 %vm2007_vm0, %v1976_v35  ;;  %v1984_v43 = vrot.slane %v1976_v35, 1  ;;  %v4331_v35 = vld [vmem:[%s7883_s26 + $0x40] sm:$0xff] }
 0x45b   : > { %4834 = vmatmul.mubr.msk.f32.vlgmr.msra.gmra.mrb[10].mxu0 %vm2007_vm0, %v1977_v34 }
 0x45c   : > { %v1981_v46 = vsel %vm949_vm2, %v1979_v37, %v1978_v38  ;;  %v1980_v44 = vsel %vm949_vm2, %v1978_v38, %v1979_v37  ;;  %v1986_v52 = vsel %vm958_vm4, %v1984_v43, %v1985_v45  ;;  %v1987_v58 = vsel %vm958_vm4, %v1985_v45, %v1984_v43  ;;  %v4332_v37 = vld [vmem:[%s7883_s26 + $0x48] sm:$0xff]  ;;  %v4333_v43 = vld [vmem:[%s7883_s26 + $0x50] sm:$0xff]  ;;  %v4334_v45 = vld [vmem:[%s7883_s26 + $0x58] sm:$0xff] }
 0x45d   : > { %v1982_v48 = vsel %vm945_vm3, 0.0, %v1981_v46  ;;  %v1989_v59 = vsel %vm955_vm5, 0.0, %v1987_v58  ;;  %v5280_v42 = vpack.c.bf16 %v4332_v37, %v4331_v35  ;;  %v4368_v35 = vld [vmem:[%s7887_s6 + $0x58] sm:$0xff] }
 0x45e   : > { %4852 = vmatprep.mubr.msk.f32.mxu1 %vm2007_vm0, %v1982_v48 }
 0x45f   : > { %4853 = vmatmul.mubr.msk.f32.vlgmr.msra.gmra.mrb[8].mxu1 %vm2007_vm0, %v1980_v44 }
 0x460   : > { %5251 = vmatpush3.bf16.msra.mxu1 %v5248_v23  ;;  %4871 = vmatprep.mubr.msk.f32.mxu1 %vm2007_vm0, %v1986_v52  ;;  %v2299_v23 = vld [vmem:[%s7883_s26 + $0x18] sm:$0xff] }
 0x461   : > { %5253 = vmatprep.subr.bf16.mxu1 %v5252_v49  ;;  %v5276_v33 = vpack.c.bf16 %v2299_v23, %v2298_v22  ;;  %v2867_v23 = vld [vmem:[%s7886_s5] sm:$0xff] }
 0x464   : > { %5255 = vmatpush3.bf16.msra.mxu1 %v5252_v49  ;;  %v5284_v49 = vpack.c.bf16 %v4334_v45, %v4333_v43  ;;  %v4349_v43 = vld [vmem:[#allocation8] ss:$0 sm:$0xff] }
 0x465   : > { %5257 = vmatprep.subr.bf16.mxu1 %v5256_v53 }
 0x468   : > { %5259 = vmatpush3.bf16.msra.mxu1 %v5256_v53  ;;  %v4338_v53 = vld [vmem:[%s7884_s15 + $0x1] sm:$0x1]  ;;  %s6060_s15 = smov [#allocation20]  }
 0x469   : > { %5261 = vmatprep.subr.bf16.mxu1 %v5260_v57  ;;  %4907 = vmatprep.subr.msk.mxu0 %vm2587_vm9, %v4338_v53 }
 0x46a   : > { %4908 = vmatpush3.msk.msra.mxu0 %vm2587_vm9, %v4338_v53  ;;  %v2869_v53 = vld [vmem:[%s7886_s5 + $0x10] sm:$0xff] }
 0x46c   : > { %5263 = vmatpush3.bf16.msra.mxu1 %v5260_v57  ;;  %v4337_v57 = vld [vmem:[#allocation2] ss:$0 sm:$0xff] }
 0x46d   : > { %5265 = vmatprep.subr.bf16.mxu1 %v5264_v63 }
 0x46f   : > { %4872 = vmatmul.mubr.msk.f32.vlgmr.msra.gmra.mrb[8].mxu1 %vm2007_vm0, %v1989_v59 }
 0x470   : > { %5267 = vmatpush3.bf16.msra.mxu1 %v5264_v63 }
 0x471   : > { %5269 = vmatprep.subr.bf16.mxu1 %v5268_v4 }
 0x474   : > { %5271 = vmatpush3.bf16.msra.mxu1 %v5268_v4 }
 0x475   : > { %5273 = vmatprep.subr.bf16.mxu1 %v5272_v7 }
 0x52e   : > { %v4835_v8 = vpop.f32.mrb[10].mxu0 }
 0x52f   : > { %v2080_v9 = vpop.f32.mrb[11].mxu0 }
 0x542   : > { %v4873_v10 = vpop.f32.mrb[8].mxu1 }
 0x543   : > { %v5488_v12 = vadd.f32 %v4873_v10, %v4835_v8  ;;  %v2251_v13 = vpop.f32.mrb[9].mxu1 }
 0x544   : > { %v5489_v14 = vadd.f32 %v2251_v13, %v2080_v9 }
 0x545   : > { %v7337_v18 = vadd.f32 %v5488_v12, %v4321_v11  ;;  %v4351_v12 = vld [vmem:[%s7886_s5 + $0x28] sm:$0xff] }
 0x546   : > { %v7339_v20 = vadd.f32 %v5489_v14, %v4321_v11  ;;  %v4350_v11 = vld [vmem:[%s7886_s5 + $0x20] sm:$0xff]  ;;  %v4352_v14 = vld [vmem:[%s7886_s5 + $0x30] sm:$0xff] }
 0x547   : > { %vm2273_vm6 = vcmp.ge.f32.partialorder %v7337_v18, 0.0  ;;  %v2281_v21 = vmul.f32 %v7335_v16, %v7337_v18  ;;  %v5288_v13 = vpack.c.bf16 %v4351_v12, %v4350_v11  ;;  %v4369_v12 = vld [vmem:[%s7887_s6 + $0x60] sm:$0xff] }
 0x548   : > { %vm2272_vm7 = vcmp.ge.f32.partialorder %v7339_v20, 0.0  ;;  %v2280_v24 = vmul.f32 %v7335_v16, %v7339_v20 }
 0x549   : > { %v2283_v25 = vsel %vm2273_vm6, %v7337_v18, %v2281_v21  ;;  %v4353_v21 = vld [vmem:[%s7886_s5 + $0x38] sm:$0xff] }
 0x54a   : > { %v2282_v30 = vsel %vm2272_vm7, %v7339_v20, %v2280_v24  ;;  %v2285_v32 = vrot.slane %v2283_v25, 7  ;;  %v2291_v48 = vrot.slane %v2283_v25, 1  ;;  %v5292_v22 = vpack.c.bf16 %v4353_v21, %v4352_v14  ;;  %v2868_v24 = vld [vmem:[%s7886_s5 + $0x8] sm:$0xff]  ;;  %v4371_v21 = vld [vmem:[%s7887_s6 + $0x70] sm:$0xff] }
 0x54b   : > { %v2284_v34 = vrot.slane %v2282_v30, 7  ;;  %4882 = vmatprep.mubr.msk.f32.mxu1 %vm2305_vm8, %v2282_v30  ;;  %v2290_v46 = vrot.slane %v2282_v30, 1  ;;  %v4365_v30 = vld [vmem:[%s7887_s6 + $0x40] sm:$0xff] }
 0x54c   : > { %4883 = vmatmul.mubr.msk.f32.vlgmr.msra.gmra.mrb[10].mxu1 %vm2305_vm8, %v2283_v25  ;;  %v5296_v25 = vpack.c.bf16 %v2868_v24, %v2867_v23  ;;  %v3155_v24 = vld [vmem:[%s7887_s6] sm:$0xff] }
 0x54d   : > { %5275 = vmatpush3.bf16.msra.mxu1 %v5272_v7  ;;  %v2287_v38 = vsel %vm949_vm2, %v2285_v32, %v2284_v34  ;;  %v2286_v44 = vsel %vm949_vm2, %v2284_v34, %v2285_v32  ;;  %v2292_v50 = vsel %vm958_vm4, %v2290_v46, %v2291_v48  ;;  %v2293_v40 = vsel %vm958_vm4, %v2291_v48, %v2290_v46  ;;  %v4366_v32 = vld [vmem:[%s7887_s6 + $0x48] sm:$0xff] }
 0x54e   : > { %v2288_v41 = vsel %vm945_vm3, 0.0, %v2287_v38  ;;  %5277 = vmatprep.subr.bf16.mxu1 %v5276_v33  ;;  %v2295_v52 = vsel %vm955_vm5, 0.0, %v2293_v40  ;;  %v5312_v34 = vpack.c.bf16 %v4366_v32, %v4365_v30  ;;  %v3489_v32 = vld [vmem:[#allocation12 + $0x108] sm:$0xff] }
 0x54f   : > { %4893 = vmatprep.mubr.msk.f32.mxu1 %vm2305_vm8, %v2288_v41 }
 0x550   : > { %5313 = vmatprep.subr.bf16.mxu0 %v5312_v34 }
 0x551   : > { %5279 = vmatpush3.bf16.msra.mxu1 %v5276_v33  ;;  %v4367_v33 = vld [vmem:[%s7887_s6 + $0x50] sm:$0xff] }
 0x552   : > { %5281 = vmatprep.subr.bf16.mxu1 %v5280_v42  ;;  %v5316_v37 = vpack.c.bf16 %v4368_v35, %v4367_v33  ;;  %v3491_v33 = vld [vmem:[#allocation12 + $0x118] sm:$0xff] }
 0x553   : > { %v5360_v35 = vpack.c.bf16 %v3491_v33, %v3489_v32 }
 0x554   : > { %4894 = vmatmul.mubr.msk.f32.vlgmr.msra.gmra.mrb[10].mxu1 %vm2305_vm8, %v2286_v44 }
 0x555   : > { %5283 = vmatpush3.bf16.msra.mxu1 %v5280_v42  ;;  %4904 = vmatprep.mubr.msk.f32.mxu1 %vm2305_vm8, %v2292_v50 }
 0x556   : > { %5285 = vmatprep.subr.bf16.mxu1 %v5284_v49 }
 0x559   : > { %5287 = vmatpush3.bf16.msra.mxu1 %v5284_v49 }
 0x55a   : > { %4912 = vmatprep.subr.msk.mxu1 %vm2587_vm9, %v2577_v54 }
 0x55c   : > { %4905 = vmatmul.mubr.msk.f32.vlgmr.msra.gmra.mrb[10].mxu1 %vm2305_vm8, %v2295_v52 }
 0x55d   : > { %4913 = vmatpush3.msk.msra.mxu1 %vm2587_vm9, %v2577_v54  ;;  %v2870_v54 = vld [vmem:[%s7886_s5 + $0x18] sm:$0xff] }
 0x55e   : > { %4917 = vmatprep.subr.msk.mxu1 %vm2587_vm9, %v4345_v56 }
 0x62f   : > { %v4906_v58 = vpop.f32.mrb[10].mxu1 }
 0x630   : > { %v2564_v59 = vadd.f32 %v4906_v58, %v4337_v57  ;;  %v2545_v61 = vpop.f32.mrb[11].mxu1 }
 0x631   : > { %v2563_v62 = vadd.f32 %v4337_v57, %v2545_v61 }
 0x632   : > { %v2566_v63 = vrot.slane %v2564_v59, 7  ;;  %3925 = vst.msk [vmem:[%s939_s12 + $0x8] sm:$0xff] %vm2580_vm12, %v2564_v59  ;;  %v2572_v2 = vrot.slane %v2564_v59, 1 }
 0x633   : > { %v2565_v3 = vrot.slane %v2563_v62, 7  ;;  %3924 = vst.msk [vmem:[%s939_s12] sm:$0xff] %vm2580_vm12, %v2563_v62  ;;  %4909 = vmatprep.mubr.msk.f32.mxu0 %vm2580_vm12, %v2563_v62  ;;  %v2571_v4 = vrot.slane %v2563_v62, 1 }
 0x634   : > { %4910 = vmatmul.mubr.msk.f32.vlgmr.msra.gmra.mrb[12].mxu0 %vm2580_vm12, %v2564_v59 }
 0x635   : > { %v2568_v5 = vsel %vm949_vm2, %v2566_v63, %v2565_v3  ;;  %v2567_v6 = vsel %vm949_vm2, %v2565_v3, %v2566_v63  ;;  %v2573_v7 = vsel %vm958_vm4, %v2571_v4, %v2572_v2  ;;  %v2574_v8 = vsel %vm958_vm4, %v2572_v2, %v2571_v4  ;;  %5315 = vmatpush3.bf16.msra.mxu0 %v5312_v34  ;;  %v4358_v63 = vld [vmem:[%s7886_s5 + $0x40] sm:$0xff]  ;;  %v4359_v2 = vld [vmem:[%s7886_s5 + $0x48] sm:$0xff] }
 0x636   : > { %v2569_v9 = vsel %vm945_vm3, 0.0, %v2568_v5  ;;  %v2576_v10 = vsel %vm955_vm5, 0.0, %v2574_v8  ;;  %5317 = vmatprep.subr.bf16.mxu0 %v5316_v37  ;;  %v4360_v8 = vld [vmem:[%s7886_s5 + $0x50] sm:$0xff] }
 0x637   : > { %4914 = vmatprep.mubr.msk.f32.mxu1 %vm2580_vm12, %v2569_v9  ;;  %v4361_v9 = vld [vmem:[%s7886_s5 + $0x58] sm:$0xff]  ;;  %v3488_v34 = vld [vmem:[#allocation12 + $0x100] sm:$0xff]  ;;  %s7891_s5 = sld [smem:[#allocation49_spill]] }
 0x638   : > { %4915 = vmatmul.mubr.msk.f32.vlgmr.msra.gmra.mrb[12].mxu1 %vm2580_vm12, %v2567_v6 }
 0x639   : > { %4918 = vmatpush3.msk.msra.mxu1 %vm2587_vm9, %v4345_v56  ;;  %4919 = vmatprep.mubr.msk.f32.mxu1 %vm2580_vm12, %v2573_v7  ;;  %v5304_v7 = vpack.c.bf16 %v4359_v2, %v4358_v63  ;;  %v3504_v63 = vld [vmem:[#allocation12 + $0x180] sm:$0xff]  ;;  %v3506_v2 = vld [vmem:[#allocation12 + $0x190] sm:$0xff] }
 0x63a   : > { %5289 = vmatprep.subr.bf16.mxu1 %v5288_v13  ;;  %5319 = vmatpush3.bf16.msra.mxu0 %v5316_v37  ;;  %v3490_v37 = vld [vmem:[#allocation12 + $0x110] sm:$0xff] }
 0x63d   : > { %s7726_s16 = scalar_lea.hbm %s7891_s5, %s4400_s7 }
 0x640   : > { %4920 = vmatmul.mubr.msk.f32.vlgmr.msra.gmra.mrb[12].mxu1 %vm2580_vm12, %v2576_v10  ;;  %v5308_v10 = vpack.c.bf16 %v4361_v9, %v4360_v8  ;;  %v4364_v9 = vld [vmem:[#allocation9] ss:$0 sm:$0xff] }
 0x641   : > { %5291 = vmatpush3.bf16.msra.mxu1 %v5288_v13  ;;  %v4370_v13 = vld [vmem:[%s7887_s6 + $0x68] sm:$0xff] }
 0x642   : > { %5293 = vmatprep.subr.bf16.mxu1 %v5292_v22  ;;  %v5320_v14 = vpack.c.bf16 %v4370_v13, %v4369_v12 }
 0x644   : > { %5321 = vmatprep.subr.bf16.mxu0 %v5320_v14 }
 0x645   : > { %5295 = vmatpush3.bf16.msra.mxu1 %v5292_v22  ;;  %5323 = vmatpush3.bf16.msra.mxu0 %v5320_v14  ;;  %v4372_v22 = vld [vmem:[%s7887_s6 + $0x78] sm:$0xff] }
 0x646   : > { %5297 = vmatprep.subr.bf16.mxu1 %v5296_v25  ;;  %v5324_v23 = vpack.c.bf16 %v4372_v22, %v4371_v21 }
 0x648   : > { %5325 = vmatprep.subr.bf16.mxu0 %v5324_v23 }
 0x649   : > { %5327 = vmatpush3.bf16.msra.mxu0 %v5324_v23  ;;  %v3157_v23 = vld [vmem:[%s7887_s6 + $0x10] sm:$0xff] }
 0x707   : > { %v4911_v38 = vpop.f32.mrb[12].mxu0 }
 0x708   : > { %v2657_v41 = vpop.f32.mrb[13].mxu0 }
 0x713   : > { %v4921_v42 = vpop.f32.mrb[12].mxu1 }
 0x714   : > { %v5490_v45 = vadd.f32 %v4921_v42, %v4911_v38  ;;  %v2827_v46 = vpop.f32.mrb[13].mxu1  ;;  %v3493_v38 = vld [vmem:[#allocation12 + $0x128] sm:$0xff]  ;;  %v5362_v42 = vpack.c.bf16 %v3490_v37, %v3488_v34 }
 0x715   : > { %v5491_v48 = vadd.f32 %v2827_v46, %v2657_v41  ;;  %v3495_v41 = vld [vmem:[#allocation12 + $0x138] sm:$0xff]  ;;  %v3494_v46 = vld [vmem:[#allocation12 + $0x130] sm:$0xff] }
 0x716   : > { %v2846_v49 = vadd.f32 %v5490_v45, %v4349_v43  ;;  %v3492_v45 = vld [vmem:[#allocation12 + $0x120] sm:$0xff] }
 0x717   : > { %v2845_v44 = vadd.f32 %v5491_v48, %v4349_v43  ;;  %v5364_v43 = vpack.c.bf16 %v3495_v41, %v3493_v38  ;;  %v3497_v48 = vld [vmem:[#allocation12 + $0x148] sm:$0xff]  ;;  %v3159_v38 = vld [vmem:[%s7887_s6 + $0x20] sm:$0xff]  ;;  %v3160_v41 = vld [vmem:[%s7887_s6 + $0x28] sm:$0xff] }
 0x718   : > { %v2848_v50 = vadd.f32 %v2846_v49, %v7337_v18  ;;  %v5300_v18 = vpack.c.bf16 %v2870_v54, %v2869_v53  ;;  %v3499_v49 = vld [vmem:[#allocation12 + $0x158] sm:$0xff]  ;;  %v3501_v53 = vld [vmem:[#allocation12 + $0x168] sm:$0xff] }
 0x719   : > { %v2847_v40 = vadd.f32 %v2845_v44, %v7339_v20  ;;  %v5366_v44 = vpack.c.bf16 %v3494_v46, %v3492_v45  ;;  %v3503_v54 = vld [vmem:[#allocation12 + $0x178] sm:$0xff] }
 0x71a   : > { %v2852_v52 = vmul.f32 %v7335_v16, %v2848_v50  ;;  %vm2850_vm13 = vcmp.ge.f32.partialorder %v2848_v50, 0.0 }
 0x71b   : > { %vm2849_vm14 = vcmp.ge.f32.partialorder %v2847_v40, 0.0  ;;  %v2851_v56 = vmul.f32 %v7335_v16, %v2847_v40 }
 0x71c   : > { %v2854_v57 = vsel %vm2850_vm13, %v2848_v50, %v2852_v52  ;;  %v5368_v50 = vpack.c.bf16 %v3499_v49, %v3497_v48  ;;  %v3498_v52 = vld [vmem:[#allocation12 + $0x150] sm:$0xff]  ;;  %v5336_v48 = vpack.c.bf16 %v3160_v41, %v3159_v38 }
 0x71d   : > { %v2853_v58 = vsel %vm2849_vm14, %v2847_v40, %v2851_v56  ;;  %v2856_v59 = vrot.slane %v2854_v57, 7  ;;  %v2862_v61 = vrot.slane %v2854_v57, 1  ;;  %v3496_v40 = vld [vmem:[#allocation12 + $0x140] sm:$0xff]  ;;  %v3162_v49 = vld [vmem:[%s7887_s6 + $0x38] sm:$0xff] }
 0x71e   : > { %v2855_v20 = vrot.slane %v2853_v58, 7  ;;  %v2861_v62 = vrot.slane %v2853_v58, 1  ;;  %4930 = vmatprep.mubr.msk.f32.mxu1 %vm2305_vm8, %v2853_v58  ;;  %v5370_v56 = vpack.c.bf16 %v3498_v52, %v3496_v40  ;;  %v3500_v58 = vld [vmem:[#allocation12 + $0x160] sm:$0xff] }
 0x71f   : > { %4931 = vmatmul.mubr.msk.f32.vlgmr.msra.gmra.mrb[14].mxu1 %vm2305_vm8, %v2854_v57  ;;  %v5372_v57 = vpack.c.bf16 %v3503_v54, %v3501_v53  ;;  %v4378_v40 = vld [vmem:[%s7887_s6 + $0x88] sm:$0xff]  ;;  %v4379_v53 = vld [vmem:[%s7887_s6 + $0x90] sm:$0xff]  ;;  %v4380_v54 = vld [vmem:[%s7887_s6 + $0x98] sm:$0xff] }
 0x720   : > { %5299 = vmatpush3.bf16.msra.mxu1 %v5296_v25  ;;  %v2858_v16 = vsel %vm949_vm2, %v2856_v59, %v2855_v20  ;;  %v2857_v3 = vsel %vm949_vm2, %v2855_v20, %v2856_v59  ;;  %v2863_v4 = vsel %vm958_vm4, %v2861_v62, %v2862_v61  ;;  %v2864_v5 = vsel %vm958_vm4, %v2862_v61, %v2861_v62  ;;  %v3156_v25 = vld [vmem:[%s7887_s6 + $0x8] sm:$0xff]  ;;  %v3502_v59 = vld [vmem:[#allocation12 + $0x170] sm:$0xff] }
 0x721   : > { %v2859_v6 = vsel %vm945_vm3, 0.0, %v2858_v16  ;;  %5301 = vmatprep.subr.bf16.mxu1 %v5300_v18  ;;  %v2866_v11 = vsel %vm955_vm5, 0.0, %v2864_v5  ;;  %v7514_v30 = vpack.c.bf16 %v3156_v25, %v3155_v24  ;;  %v3507_v61 = vld [vmem:[#allocation12 + $0x198] sm:$0xff]  ;;  %v5374_v20 = vpack.c.bf16 %v3502_v59, %v3500_v58  ;;  %v3509_v16 = vld [vmem:[#allocation12 + $0x1a8] sm:$0xff] }
 0x722   : > { %4941 = vmatprep.mubr.msk.f32.mxu1 %vm2305_vm8, %v2859_v6  ;;  %v3508_v6 = vld [vmem:[#allocation12 + $0x1a0] sm:$0xff]  ;;  %v3158_v24 = vld [vmem:[%s7887_s6 + $0x18] sm:$0xff] }
 0x723   : > { %5329 = vmatprep.subr.bf16.mxu0 %v7514_v30  ;;  %v4382_v58 = vld [vmem:[%s7887_s6 + $0xa8] sm:$0xff] }
 0x724   : > { %5303 = vmatpush3.bf16.msra.mxu1 %v5300_v18  ;;  %v3505_v18 = vld [vmem:[#allocation12 + $0x188] sm:$0xff] }
 0x725   : > { %5305 = vmatprep.subr.bf16.mxu1 %v5304_v7  ;;  %v5376_v62 = vpack.c.bf16 %v3507_v61, %v3505_v18  ;;  %v4383_v18 = vld [vmem:[%s7887_s6 + $0xb0] sm:$0xff]  ;;  %v4384_v61 = vld [vmem:[%s7887_s6 + $0xb8] sm:$0xff] }
 0x727   : > { %4942 = vmatmul.mubr.msk.f32.vlgmr.msra.gmra.mrb[14].mxu1 %vm2305_vm8, %v2857_v3  ;;  %v3511_v3 = vld [vmem:[#allocation12 + $0x1b8] sm:$0xff] }
 0x728   : > { %5307 = vmatpush3.bf16.msra.mxu1 %v5304_v7  ;;  %4952 = vmatprep.mubr.msk.f32.mxu1 %vm2305_vm8, %v2863_v4  ;;  %v5378_v4 = vpack.c.bf16 %v3506_v2, %v3504_v63  ;;  %v5380_v5 = vpack.c.bf16 %v3511_v3, %v3509_v16  ;;  %v3510_v7 = vld [vmem:[#allocation12 + $0x1b0] sm:$0xff]  ;;  %v3513_v63 = vld [vmem:[#allocation12 + $0x1c8] sm:$0xff]  ;;  %v3515_v2 = vld [vmem:[#allocation12 + $0x1d8] sm:$0xff] }
 0x729   : > { %5309 = vmatprep.subr.bf16.mxu1 %v5308_v10  ;;  %v5382_v8 = vpack.c.bf16 %v3510_v7, %v3508_v6  ;;  %v5384_v16 = vpack.c.bf16 %v3515_v2, %v3513_v63  ;;  %v3512_v3 = vld [vmem:[#allocation12 + $0x1c0] sm:$0xff]  ;;  %v3517_v6 = vld [vmem:[#allocation12 + $0x1e8] sm:$0xff]  ;;  %v3519_v7 = vld [vmem:[#allocation12 + $0x1f8] sm:$0xff] }
 0x72c   : > { %5311 = vmatpush3.bf16.msra.mxu1 %v5308_v10 }
 0x72d   : > { %5361 = vmatprep.subr.bf16.mxu1 %v5360_v35 }
 0x72f   : > { %4953 = vmatmul.mubr.msk.f32.vlgmr.msra.gmra.mrb[14].mxu1 %vm2305_vm8, %v2866_v11 }
 0x730   : > { %3584 = vmatprep.mubr.f32.mxu1 %v6059_v1  ;;  %5363 = vmatpush1.bf16.msra.mxu1 %v5362_v42 }
 0x731   : > { %5365 = vmatprep.subr.bf16.mxu1 %v5364_v43 }
 0x734   : > { %5367 = vmatpush1.bf16.msra.mxu1 %v5366_v44 }
 0x735   : > { %5369 = vmatprep.subr.bf16.mxu1 %v5368_v50  ;;  %v4377_v50 = vld [vmem:[%s7887_s6 + $0x80] sm:$0xff] }
 0x736   : > { %v5344_v52 = vpack.c.bf16 %v4378_v40, %v4377_v50  ;;  %v3833_v50 = vld [vmem:[%s7888_s14 + $0xc8] sm:$0xff] }
 0x738   : > { %5371 = vmatpush1.bf16.msra.mxu1 %v5370_v56  ;;  %v5348_v56 = vpack.c.bf16 %v4380_v54, %v4379_v53  ;;  %v3816_v53 = vld [vmem:[%s7888_s14 + $0x40] sm:$0xff]  ;;  %v3817_v54 = vld [vmem:[%s7888_s14 + $0x48] sm:$0xff] }
 0x739   : > { %5373 = vmatprep.subr.bf16.mxu1 %v5372_v57  ;;  %v4381_v57 = vld [vmem:[%s7887_s6 + $0xa0] sm:$0xff] }
 0x73a   : > { %v5352_v59 = vpack.c.bf16 %v4382_v58, %v4381_v57  ;;  %v3835_v57 = vld [vmem:[%s7888_s14 + $0xd8] sm:$0xff]  ;;  %v5474_v58 = vpack.c.bf16 %v3817_v54, %v3816_v53 }
 0x73c   : > { %5375 = vmatpush1.bf16.msra.mxu1 %v5374_v20  ;;  %v5356_v20 = vpack.c.bf16 %v4384_v61, %v4383_v18  ;;  %v3818_v18 = vld [vmem:[%s7888_s14 + $0x50] sm:$0xff]  ;;  %v3819_v61 = vld [vmem:[%s7888_s14 + $0x58] sm:$0xff] }
 0x73d   : > { %5377 = vmatprep.subr.bf16.mxu1 %v5376_v62  ;;  %v5478_v63 = vpack.c.bf16 %v3819_v61, %v3818_v18  ;;  %v3475_v61 = vld [vmem:[#allocation12 + $0xa0] sm:$0xff] }
 0x740   : > { %5379 = vmatpush1.bf16.msra.mxu1 %v5378_v4  ;;  %v3514_v4 = vld [vmem:[#allocation12 + $0x1d0] sm:$0xff] }
 0x741   : > { %5381 = vmatprep.subr.bf16.mxu1 %v5380_v5  ;;  %v5386_v5 = vpack.c.bf16 %v3514_v4, %v3512_v3 }
 0x744   : > { %5383 = vmatpush1.bf16.msra.mxu1 %v5382_v8  ;;  %v5388_v8 = vpack.c.bf16 %v3519_v7, %v3517_v6 }
 0x745   : > { %5385 = vmatprep.subr.bf16.mxu1 %v5384_v16  ;;  %v4387_v16 = vld [vmem:[#allocation11] ss:$0 sm:$0xff] }
 0x748   : > { %5387 = vmatpush1.bf16.msra.mxu1 %v5386_v5 }
 0x749   : > { %5389 = vmatprep.subr.bf16.mxu1 %v5388_v8  ;;  %v3455_v8 = vld [vmem:[#allocation12] sm:$0xff] }
 0x802   : > { %v4954_v10 = vpop.f32.mrb[14].mxu1 }
 0x803   : > { %v3134_v11 = vadd.f32 %v4954_v10, %v4364_v9  ;;  %v3115_v12 = vpop.f32.mrb[15].mxu1  ;;  %v3518_v10 = vld [vmem:[#allocation12 + $0x1f0] sm:$0xff] }
 0x804   : > { %v3133_v13 = vadd.f32 %v4364_v9, %v3115_v12  ;;  %v3516_v9 = vld [vmem:[#allocation12 + $0x1e0] sm:$0xff]  ;;  %v3458_v12 = vld [vmem:[#allocation12 + $0x18] sm:$0xff] }
 0x805   : > { %v3136_v14 = vadd.f32 %v3134_v11, %v7269_v29  ;;  %v5332_v29 = vpack.c.bf16 %v3158_v24, %v3157_v23  ;;  %v5390_v11 = vpack.c.bf16 %v3518_v10, %v3516_v9  ;;  %v3809_v24 = vld [vmem:[%s7888_s14 + $0x8] sm:$0xff]  ;;  %v3457_v9 = vld [vmem:[#allocation12 + $0x10] sm:$0xff] }
 0x806   : > { %v3135_v21 = vadd.f32 %v3133_v13, %v7271_v31  ;;  %v5392_v13 = vpack.c.bf16 %v3458_v12, %v3456_v0  ;;  %v3462_v0 = vld [vmem:[#allocation12 + $0x38] sm:$0xff]  ;;  %v5672_v12 = vld [vmem:[#allocation15] ss:$0 sm:$0xff] }
 0x807   : > { %vm3138_vm15 = vcmp.ge.f32.partialorder %v3136_v14, 0.0  ;;  %v3140_v22 = vmul.f32 %v7267_v27, %v3136_v14  ;;  %5391 = vmatpush1.bf16.msra.mxu1 %v5390_v11  ;;  %v3460_v11 = vld [vmem:[#allocation12 + $0x28] sm:$0xff] }
 0x808   : > { %v3139_v25 = vmul.f32 %v7267_v27, %v3135_v21  ;;  %vm3137_vm6 = vcmp.ge.f32.partialorder %v3135_v21, 0.0  ;;  %5393 = vmatprep.subr.bf16.mxu1 %v5392_v13 }
 0x809   : > { %v3142_v32 = vsel %vm3138_vm15, %v3136_v14, %v3140_v22  ;;  %v3824_v14 = vld [vmem:[%s7888_s14 + $0x80] sm:$0xff] }
 0x80a   : > { %v3141_v33 = vsel %vm3137_vm6, %v3135_v21, %v3139_v25  ;;  %v3144_v34 = vrot.slane %v3142_v32, 7  ;;  %v3150_v35 = vrot.slane %v3142_v32, 1  ;;  %v3825_v21 = vld [vmem:[%s7888_s14 + $0x88] sm:$0xff]  ;;  %v3808_v22 = vld [vmem:[%s7888_s14] sm:$0xff]  ;;  %v3826_v25 = vld [vmem:[%s7888_s14 + $0x90] sm:$0xff] }
 0x80b   : > { %v3143_v31 = vrot.slane %v3141_v33, 7  ;;  %v3149_v37 = vrot.slane %v3141_v33, 1  ;;  %4971 = vmatprep.mubr.msk.f32.mxu0 %vm2007_vm0, %v3141_v33  ;;  %v5456_v23 = vpack.c.bf16 %v3825_v21, %v3824_v14  ;;  %v5458_v33 = vpack.c.bf16 %v3809_v24, %v3808_v22  ;;  %v3459_v22 = vld [vmem:[#allocation12 + $0x20] sm:$0xff] }
 0x80c   : > { %4972 = vmatmul.mubr.msk.f32.vlgmr.msra.gmra.mrb[14].mxu0 %vm2007_vm0, %v3142_v32  ;;  %v3827_v32 = vld [vmem:[%s7888_s14 + $0x98] sm:$0xff]  ;;  %v5394_v21 = vpack.c.bf16 %v3457_v9, %v3455_v8  ;;  %v3483_v9 = vld [vmem:[#allocation12 + $0xe0] sm:$0xff] }
 0x80d   : > { %5331 = vmatpush3.bf16.msra.mxu0 %v7514_v30  ;;  %v3146_v27 = vsel %vm949_vm2, %v3144_v34, %v3143_v31  ;;  %v3145_v42 = vsel %vm949_vm2, %v3143_v31, %v3144_v34  ;;  %v3151_v43 = vsel %vm958_vm4, %v3149_v37, %v3150_v35  ;;  %v3152_v45 = vsel %vm958_vm4, %v3150_v35, %v3149_v37  ;;  %v3161_v30 = vld [vmem:[%s7887_s6 + $0x30] sm:$0xff]  ;;  %v3811_v35 = vld [vmem:[%s7888_s14 + $0x18] sm:$0xff]  ;;  %v3828_v31 = vld [vmem:[%s7888_s14 + $0xa0] sm:$0xff]  ;;  %s5957_s6 = scalar_lea.vmem %s7728_s10, 256 }
 0x80e   : > { %5333 = vmatprep.subr.bf16.mxu0 %v5332_v29  ;;  %v3147_v46 = vsel %vm945_vm3, 0.0, %v3146_v27  ;;  %v5340_v44 = vpack.c.bf16 %v3162_v49, %v3161_v30  ;;  %v3154_v62 = vsel %vm955_vm5, 0.0, %v3152_v45  ;;  %v5460_v34 = vpack.c.bf16 %v3827_v32, %v3826_v25  ;;  %v3829_v37 = vld [vmem:[%s7888_s14 + $0xa8] sm:$0xff]  ;;  %v3812_v27 = vld [vmem:[%s7888_s14 + $0x20] sm:$0xff]  ;;  %v3831_v45 = vld [vmem:[%s7888_s14 + $0xb8] sm:$0xff]  ;;  %p5958_p3 = scmp.ne.s32.totalorder %s7728_s10, %s5957_s6 }
 0x80f   : > { %4990 = vmatprep.mubr.msk.f32.mxu0 %vm2007_vm0, %v3147_v46  ;;  %v5464_v41 = vpack.c.bf16 %v3829_v37, %v3828_v31  ;;  %v3814_v30 = vld [vmem:[%s7888_s14 + $0x30] sm:$0xff]  ;;  %v3815_v49 = vld [vmem:[%s7888_s14 + $0x38] sm:$0xff] }
 0x810   : > { %v5470_v40 = vpack.c.bf16 %v3815_v49, %v3814_v30  ;;  %v3461_v25 = vld [vmem:[#allocation12 + $0x30] sm:$0xff]  ;;  %v3464_v32 = vld [vmem:[#allocation12 + $0x48] sm:$0xff]  ;;  %p5959_p8 = pnand %p5958_p3, %p7892_p2 }
 0x811   : > { %5335 = vmatpush3.bf16.msra.mxu0 %v5332_v29  ;;  %v3810_v29 = vld [vmem:[%s7888_s14 + $0x10] sm:$0xff] }
 0x812   : > { %5337 = vmatprep.subr.bf16.mxu0 %v5336_v48  ;;  %v5462_v38 = vpack.c.bf16 %v3811_v35, %v3810_v29  ;;  %p5960_p6 = pneg %p5959_p8 }
 0x815   : > { %5339 = vmatpush3.bf16.msra.mxu0 %v5336_v48 }
 0x816   : > { %5341 = vmatprep.subr.bf16.mxu0 %v5340_v44 }
 0x819   : > { %5343 = vmatpush3.bf16.msra.mxu0 %v5340_v44  ;;  %v3832_v44 = vld [vmem:[%s7888_s14 + $0xc0] sm:$0xff] }
 0x81a   : > { %5345 = vmatprep.subr.bf16.mxu0 %v5344_v52 }
 0x81c   : > { %4991 = vmatmul.mubr.msk.f32.vlgmr.msra.gmra.mrb[14].mxu0 %vm2007_vm0, %v3145_v42  ;;  %v3813_v42 = vld [vmem:[%s7888_s14 + $0x28] sm:$0xff] }
 0x81d   : > { %5347 = vmatpush3.bf16.msra.mxu0 %v5344_v52  ;;  %5009 = vmatprep.mubr.msk.f32.mxu0 %vm2007_vm0, %v3151_v43  ;;  %v3830_v43 = vld [vmem:[%s7888_s14 + $0xb0] sm:$0xff]  ;;  %v5466_v46 = vpack.c.bf16 %v3813_v42, %v3812_v27  ;;  %v5472_v52 = vpack.c.bf16 %v3833_v50, %v3832_v44  ;;  %v3469_v50 = vld [vmem:[#allocation12 + $0x70] sm:$0xff] }
 0x81e   : > { %5349 = vmatprep.subr.bf16.mxu0 %v5348_v56  ;;  %v5468_v48 = vpack.c.bf16 %v3831_v45, %v3830_v43  ;;  %v3467_v44 = vld [vmem:[#allocation12 + $0x60] sm:$0xff] }
 0x81f   : > { %v5406_v53 = vpack.c.bf16 %v3469_v50, %v3467_v44  ;;  %v3691_v50 = vld [vmem:[#allocation12 + $0x280] sm:$0xff] }
 0x821   : > { %5351 = vmatpush3.bf16.msra.mxu0 %v5348_v56  ;;  %v3834_v56 = vld [vmem:[%s7888_s14 + $0xd0] sm:$0xff] }
 0x822   : > { %5353 = vmatprep.subr.bf16.mxu0 %v5352_v59 }
 0x825   : > { %5355 = vmatpush3.bf16.msra.mxu0 %v5352_v59  ;;  %v5476_v59 = vpack.c.bf16 %v3835_v57, %v3834_v56  ;;  %v3473_v56 = vld [vmem:[#allocation12 + $0x90] sm:$0xff]  ;;  %v3476_v57 = vld [vmem:[#allocation12 + $0xa8] sm:$0xff] }
 0x826   : > { %5357 = vmatprep.subr.bf16.mxu0 %v5356_v20 }
 0x829   : > { %5359 = vmatpush3.bf16.msra.mxu0 %v5356_v20  ;;  %v3836_v20 = vld [vmem:[%s7888_s14 + $0xe0] sm:$0xff] }
 0x82a   : > { %5457 = vmatprep.subr.bf16.mxu0 %v5456_v23  ;;  %v5396_v23 = vpack.c.bf16 %v3462_v0, %v3460_v11  ;;  %v3676_v11 = vld [vmem:[#allocation12 + $0x208] sm:$0xff]  ;;  %v3678_v0 = vld [vmem:[#allocation12 + $0x218] sm:$0xff] }
 0x82c   : > { %5010 = vmatmul.mubr.msk.f32.vlgmr.msra.gmra.mrb[14].mxu0 %vm2007_vm0, %v3154_v62  ;;  %v3837_v62 = vld [vmem:[%s7888_s14 + $0xe8] sm:$0xff] }
 0x82d   : > { %5459 = vmatpush3.bf16.msra.mxu0 %v5458_v33  ;;  %v5480_v2 = vpack.c.bf16 %v3837_v62, %v3836_v20  ;;  %v3466_v33 = vld [vmem:[#allocation12 + $0x58] sm:$0xff]  ;;  %v3477_v20 = vld [vmem:[#allocation12 + $0xb0] sm:$0xff]  ;;  %v3480_v62 = vld [vmem:[#allocation12 + $0xc8] sm:$0xff] }
 0x82e   : > { %5461 = vmatprep.subr.bf16.mxu0 %v5460_v34  ;;  %v5400_v37 = vpack.c.bf16 %v3466_v33, %v3464_v32  ;;  %v3679_v32 = vld [vmem:[#allocation12 + $0x220] sm:$0xff]  ;;  %v3681_v33 = vld [vmem:[#allocation12 + $0x230] sm:$0xff] }
 0x831   : > { %5463 = vmatpush3.bf16.msra.mxu0 %v5462_v38  ;;  %v3463_v38 = vld [vmem:[#allocation12 + $0x40] sm:$0xff] }
 0x832   : > { %5465 = vmatprep.subr.bf16.mxu0 %v5464_v41  ;;  %v3465_v41 = vld [vmem:[#allocation12 + $0x50] sm:$0xff] }
 0x833   : > { %v5402_v30 = vpack.c.bf16 %v3465_v41, %v3463_v38  ;;  %v3690_v38 = vld [vmem:[#allocation12 + $0x278] sm:$0xff] }
 0x835   : > { %5467 = vmatpush3.bf16.msra.mxu0 %v5466_v46  ;;  %v3468_v46 = vld [vmem:[#allocation12 + $0x68] sm:$0xff] }
 0x836   : > { %5469 = vmatprep.subr.bf16.mxu0 %v5468_v48  ;;  %v3470_v48 = vld [vmem:[#allocation12 + $0x78] sm:$0xff] }
 0x837   : > { %v5404_v49 = vpack.c.bf16 %v3470_v48, %v3468_v46  ;;  %v3692_v48 = vld [vmem:[#allocation12 + $0x288] sm:$0xff] }
 0x839   : > { %5471 = vmatpush3.bf16.msra.mxu0 %v5470_v40  ;;  %v3472_v40 = vld [vmem:[#allocation12 + $0x88] sm:$0xff] }
 0x83a   : > { %5473 = vmatprep.subr.bf16.mxu0 %v5472_v52  ;;  %v3474_v52 = vld [vmem:[#allocation12 + $0x98] sm:$0xff] }
 0x83b   : > { %v5408_v54 = vpack.c.bf16 %v3474_v52, %v3472_v40  ;;  %v3693_v40 = vld [vmem:[#allocation12 + $0x290] sm:$0xff]  ;;  %v3696_v52 = vld [vmem:[#allocation12 + $0x2a8] sm:$0xff] }
 0x83d   : > { %5475 = vmatpush3.bf16.msra.mxu0 %v5474_v58  ;;  %v3478_v58 = vld [vmem:[#allocation12 + $0xb8] sm:$0xff] }
 0x83e   : > { %5477 = vmatprep.subr.bf16.mxu0 %v5476_v59  ;;  %v5410_v59 = vpack.c.bf16 %v3473_v56, %v3471_v15  ;;  %v5412_v18 = vpack.c.bf16 %v3478_v58, %v3476_v57  ;;  %v3695_v15 = vld [vmem:[#allocation12 + $0x2a0] sm:$0xff]  ;;  %v3697_v56 = vld [vmem:[#allocation12 + $0x2b0] sm:$0xff]  ;;  %v3700_v57 = vld [vmem:[#allocation12 + $0x2c8] sm:$0xff] }
 0x83f   : > { %v3702_v58 = vld [vmem:[#allocation12 + $0x2d8] sm:$0xff] }
 0x841   : > { %5479 = vmatpush3.bf16.msra.mxu0 %v5478_v63  ;;  %v3482_v63 = vld [vmem:[#allocation12 + $0xd8] sm:$0xff] }
 0x842   : > { %5481 = vmatprep.subr.bf16.mxu0 %v5480_v2  ;;  %v5414_v2 = vpack.c.bf16 %v3477_v20, %v3475_v61  ;;  %v3699_v61 = vld [vmem:[#allocation12 + $0x2c0] sm:$0xff]  ;;  %v3701_v20 = vld [vmem:[#allocation12 + $0x2d0] sm:$0xff] }
 0x8ff   : > { %v5011_v3 = vpop.f32.mrb[14].mxu0 }
 0x900   : > { %v3434_v4 = vadd.f32 %v5011_v3, %v4387_v16  ;;  %v3415_v5 = vpop.f32.mrb[15].mxu0  ;;  %v3479_v3 = vld [vmem:[#allocation12 + $0xc0] sm:$0xff] }
 0x901   : > { %v3433_v6 = vadd.f32 %v4387_v16, %v3415_v5  ;;  %v5416_v16 = vpack.c.bf16 %v3482_v63, %v3480_v62  ;;  %v3484_v5 = vld [vmem:[#allocation12 + $0xe8] sm:$0xff]  ;;  %v3706_v63 = vld [vmem:[#allocation12 + $0x2f8] sm:$0xff] }
 0x902   : > { %v3436_v7 = vadd.f32 %v3434_v4, %v7104_v55  ;;  %v3481_v4 = vld [vmem:[#allocation12 + $0xd0] sm:$0xff]  ;;  %v3704_v62 = vld [vmem:[#allocation12 + $0x2e8] sm:$0xff] }
 0x903   : > { %v3435_v10 = vadd.f32 %v3433_v6, %v7100_v51  ;;  %v5398_v51 = vpack.c.bf16 %v3461_v25, %v3459_v22  ;;  %v3486_v6 = vld [vmem:[#allocation12 + $0xf8] sm:$0xff]  ;;  %v3680_v22 = vld [vmem:[#allocation12 + $0x228] sm:$0xff] }
 0x904   : > { %vm3438_vm3 = vcmp.ge.f32.partialorder %v3436_v7, 0.0  ;;  %v3440_v13 = vmul.f32 %v5672_v12, %v3436_v7  ;;  %v5420_v8 = vpack.c.bf16 %v3486_v6, %v3484_v5  ;;  %v3820_v6 = vld [vmem:[%s7888_s14 + $0x60] sm:$0xff] }
 0x905   : > { %v3439_v14 = vmul.f32 %v5672_v12, %v3435_v10  ;;  %vm3437_vm5 = vcmp.ge.f32.partialorder %v3435_v10, 0.0 }
 0x906   : > { %v3442_v24 = vsel %vm3438_vm3, %v3436_v7, %v3440_v13  ;;  %v5418_v7 = vpack.c.bf16 %v3481_v4, %v3479_v3  ;;  %v5424_v13 = vpack.c.bf16 %v3678_v0, %v3676_v11  ;;  %v3703_v3 = vld [vmem:[#allocation12 + $0x2e0] sm:$0xff]  ;;  %v3705_v4 = vld [vmem:[#allocation12 + $0x2f0] sm:$0xff] }
 0x907   : > { %v3441_v34 = vsel %vm3437_vm5, %v3435_v10, %v3439_v14  ;;  %v3444_v55 = vrot.slane %v3442_v24, 7  ;;  %v3450_v29 = vrot.slane %v3442_v24, 1  ;;  %v3485_v10 = vld [vmem:[#allocation12 + $0xf0] sm:$0xff]  ;;  %v3675_v14 = vld [vmem:[#allocation12 + $0x200] sm:$0xff]  ;;  %v5454_v5 = vpack.c.bf16 %v3705_v4, %v3703_v3 }
 0x908   : > { %v3443_v35 = vrot.slane %v3441_v34, 7  ;;  %v3449_v31 = vrot.slane %v3441_v34, 1  ;;  %3585 = vmatmul.mubr.f32.vlgmr.msra.gmra.mrb[16].mxu1 %v3441_v34  ;;  %v5422_v12 = vpack.c.bf16 %v3485_v10, %v3483_v9  ;;  %v3684_v34 = vld [vmem:[#allocation12 + $0x248] sm:$0xff]  ;;  %v3788_v11 = vld [vmem:[%s7889_s11] sm:$0x3]  ;;  %s5961_s11 = sshll.u32 %s6060_s15, 4  ;;  %s5962_s11 = int_to_ptr.vmem [resolvable:$false] %s5961_s11 }
 0x909   : > { %5395 = vmatpush1.bf16.msra.mxu1 %v5394_v21  ;;  %3590 = vmatprep.mubr.f32.mxu1 %v6059_v1  ;;  %v3677_v21 = vld [vmem:[#allocation12 + $0x210] sm:$0xff]  ;;  %v3793_v0 = vrot.slane %v3788_v11, %v6842_v17  ;;  %s5963_s7 = scalar_lea.vmem %s5962_s11, 512  ;;  %p5964_p11 = scmp.lt.s32.totalorder %s7728_s10, %s5962_s11 }
 0x90a   : > { %5397 = vmatprep.subr.bf16.mxu1 %v5396_v23  ;;  %v7665_v27 = vsel %vm949_vm2, %v3444_v55, %v3443_v35  ;;  %v7669_v42 = vsel %vm949_vm2, %v3443_v35, %v3444_v55  ;;  %v7673_v43 = vsel %vm958_vm4, %v3449_v31, %v3450_v29  ;;  %v7677_v45 = vsel %vm958_vm4, %v3450_v29, %v3449_v31  ;;  %v3682_v23 = vld [vmem:[#allocation12 + $0x238] sm:$0xff]  ;;  %v3683_v31 = vld [vmem:[#allocation12 + $0x240] sm:$0xff]  ;;  %v3823_v9 = vld [vmem:[%s7888_s14 + $0x78] sm:$0xff]  ;;  %p5965_p12 = scmp.lt.s32.totalorder %s5963_s7, %s5957_s6 }
 0x90b   : > { %v5428_v25 = vpack.c.bf16 %v3682_v23, %v3680_v22  ;;  %v3686_v55 = vld [vmem:[#allocation12 + $0x258] sm:$0xff]  ;;  %v5430_v29 = vpack.c.bf16 %v3681_v33, %v3679_v32 }
 0x90c   : > { %3591 = vmatmul.mubr.f32.gmra.mrb[18].mxu1 %v3442_v24  ;;  %v5426_v24 = vpack.c.bf16 %v3677_v21, %v3675_v14  ;;  %v5432_v35 = vpack.c.bf16 %v3686_v55, %v3684_v34  ;;  %p5966_p0 = por %p5965_p12, %p5964_p11 }
 0x90d   : > { %5399 = vmatpush1.bf16.msra.mxu1 %v5398_v51  ;;  %3661 = vmatprep.mubr.f32.mxu1 %v6059_v1  ;;  %v3685_v51 = vld [vmem:[#allocation12 + $0x250] sm:$0xff] }
 0x90e   : > { %5401 = vmatprep.subr.bf16.mxu1 %v5400_v37  ;;  %v3688_v37 = vld [vmem:[#allocation12 + $0x268] sm:$0xff]  ;;  %v5434_v41 = vpack.c.bf16 %v3685_v51, %v3683_v31  ;;  %p5967_p5 = pnand %p5966_p0, %p5960_p6 }
 0x90f   : > { %v5436_v46 = vpack.c.bf16 %v3690_v38, %v3688_v37  ;;  %v5673_v37 = vld [vmem:[%s6512_s19] sm:$0xff] }
 0x911   : > { %5403 = vmatpush1.bf16.msra.mxu1 %v5402_v30  ;;  %v3694_v30 = vld [vmem:[#allocation12 + $0x298] sm:$0xff] }
 0x912   : > { %5405 = vmatprep.subr.bf16.mxu1 %v5404_v49  ;;  %v5440_v44 = vpack.c.bf16 %v3694_v30, %v3692_v48 }
 0x915   : > { %5407 = vmatpush1.bf16.msra.mxu1 %v5406_v53  ;;  %v3698_v53 = vld [vmem:[#allocation12 + $0x2b8] sm:$0xff] }
 0x916   : > { %5409 = vmatprep.subr.bf16.mxu1 %v5408_v54  ;;  %v5444_v54 = vpack.c.bf16 %v3698_v53, %v3696_v52 }
 0x919   : > { %5411 = vmatpush1.bf16.msra.mxu1 %v5410_v59  ;;  %v5446_v59 = vpack.c.bf16 %v3697_v56, %v3695_v15 }
 0x91a   : > { %5413 = vmatprep.subr.bf16.mxu1 %v5412_v18  ;;  %v5448_v18 = vpack.c.bf16 %v3702_v58, %v3700_v57 }
 0x91d   : > { %5415 = vmatpush1.bf16.msra.mxu1 %v5414_v2  ;;  %v5450_v2 = vpack.c.bf16 %v3701_v20, %v3699_v61 }
 0x91e   : > { %5417 = vmatprep.subr.bf16.mxu1 %v5416_v16  ;;  %v5452_v16 = vpack.c.bf16 %v3706_v63, %v3704_v62 }
 0x921   : > { %5419 = vmatpush1.bf16.msra.mxu1 %v5418_v7  ;;  %v3821_v7 = vld [vmem:[%s7888_s14 + $0x68] sm:$0xff] }
 0x922   : > { %5421 = vmatprep.subr.bf16.mxu1 %v5420_v8  ;;  %v5482_v8 = vpack.c.bf16 %v3821_v7, %v3820_v6 }
 0x924   : > { %5483 = vmatpush3.bf16.msra.mxu0 %v5482_v8 }
 0x925   : > { %5423 = vmatpush1.bf16.msra.mxu1 %v5422_v12  ;;  %v3797_v12 = vrot.slane %v3788_v11, %v6848_v19 }
 0x926   : > { %5425 = vmatprep.subr.bf16.mxu1 %v5424_v13 }
 0x928   : > { %4389 = vmatmul.mubr.msk.f32.vlgmr.msra.gmra.mrb[16].mxu1 %vm6925_vm10, %v7665_v27  ;;  %v3689_v27 = vld [vmem:[#allocation12 + $0x270] sm:$0xff] }
 0x929   : > { %5427 = vmatpush1.bf16.msra.mxu1 %v5426_v24  ;;  %3667 = vmatprep.mubr.f32.mxu1 %v6059_v1  ;;  %v5438_v49 = vpack.c.bf16 %v3689_v27, %v3687_v60 }
 0x92a   : > { %5429 = vmatprep.subr.bf16.mxu1 %v5428_v25 }
 0x92c   : > { %3668 = vmatmul.mubr.f32.gmra.mrb[18].mxu1 %v7669_v42  ;;  %v5442_v42 = vpack.c.bf16 %v3693_v40, %v3691_v50 }
 0x92d   : > { %5431 = vmatpush1.bf16.msra.mxu1 %v5430_v29  ;;  %3771 = vmatprep.mubr.f32.mxu1 %v6059_v1  ;;  %v4392_v29 = vld [vmem:[#allocation14] ss:$0 sm:$0xff] }
 0x92e   : > { %5433 = vmatprep.subr.bf16.mxu1 %v5432_v35 }
 0x931   : > { %5435 = vmatpush1.bf16.msra.mxu1 %v5434_v41 }
 0x932   : > { %5437 = vmatprep.subr.bf16.mxu1 %v5436_v46 }
 0x935   : > { %5439 = vmatpush1.bf16.msra.mxu1 %v5438_v49 }
 0x936   : > { %5441 = vmatprep.subr.bf16.mxu1 %v5440_v44 }
 0x939   : > { %5443 = vmatpush1.bf16.msra.mxu1 %v5442_v42 }
 0x93a   : > { %5445 = vmatprep.subr.bf16.mxu1 %v5444_v54 }
 0x93d   : > { %5447 = vmatpush1.bf16.msra.mxu1 %v5446_v59 }
 0x93e   : > { %5449 = vmatprep.subr.bf16.mxu1 %v5448_v18 }
 0x941   : > { %5451 = vmatpush1.bf16.msra.mxu1 %v5450_v2 }
 0x942   : > { %5453 = vmatprep.subr.bf16.mxu1 %v5452_v16 }
 0x945   : > { %5455 = vmatpush1.bf16.msra.mxu1 %v5454_v5 }
 0x948   : > { %3772 = vmatmul.mubr.f32.vlgmr.msra.gmra.mrb[16].mxu1 %v7673_v43  ;;  %v3838_v43 = vld [vmem:[%s7888_s14 + $0xf0] sm:$0xff] }
 0x949   : > { %3777 = vmatprep.mubr.f32.mxu1 %v6059_v1  ;;  %v3839_v1 = vld [vmem:[%s7888_s14 + $0xf8] sm:$0xff] }
 0x94a   : > { %v5484_v47 = vpack.c.bf16 %v3839_v1, %v3838_v43 }
 0x94c   : > { %4391 = vmatmul.mubr.msk.f32.gmra.mrb[18].mxu1 %vm7013_vm11, %v7677_v45  ;;  %v3822_v45 = vld [vmem:[%s7888_s14 + $0x70] sm:$0xff]  ;;  %5485 = vmatprep.subr.bf16.mxu0 %v5484_v47 }
 0x94d   : > { %v5486_v10 = vpack.c.bf16 %v3823_v9, %v3822_v45 }
 0x94f   : > { %5487 = vmatpush3.bf16.msra.mxu0 %v5486_v10 }
 0xa1b   : > { %v3773_v13 = vpop.f32.mrb[16].mxu1 }
 0xa1c   : > { %v3800_v14 = vadd.f32 %v3793_v0, %v3773_v13  ;;  %v3775_v21 = vpop.f32.mrb[17].mxu1 }
 0xa1d   : > { %v3801_v22 = vadd.f32 %v3797_v12, %v3775_v21 }
 0xa1e   : > { %v3804_v25 = vadd.f32 %v3800_v14, %v6857_v26 }
 0xa1f   : > { %v3805_v23 = vadd.f32 %v3801_v22, %v6859_v28  ;;  %v3779_v24 = vpop.f32.mrb[18].mxu1 }
 0xa20   : > { %v3802_v32 = vadd.f32 %v3793_v0, %v3779_v24  ;;  %v3781_v33 = vpop.f32.mrb[19].mxu1 }
 0xa21   : > { %v3803_v34 = vadd.f32 %v3797_v12, %v3781_v33  ;;  %3911 = vmatprep.mubr.f32.mxu0 %v3805_v23 }
 0xa22   : > { %3912 = vmatmul.mubr.f32.vlgmr.msra.gmra.mrb[16].mxu0 %v3804_v25  ;;  %v3806_v19 = vadd.f32 %v3802_v32, %v6877_v36 }
 0xa23   : > { %v3807_v17 = vadd.f32 %v3803_v34, %v6879_v39  ;;  %v5674_v39 = vld [vmem:[%s6512_s19 + $0x8] sm:$0xff] }
 0xa25   : > { %3916 = vmatprep.mubr.f32.mxu0 %v3807_v17 }
 0xa26   : > { %3917 = vmatmul.mubr.f32.gmra.mrb[18].mxu0 %v3806_v19 }
 0xaf5   : > { %v4706_v55 = vpop.f32.mrb[16].mxu0 }
 0xaf6   : > { %v4707_v28 = vpop.f32.mrb[17].mxu0 }
 0xaf7   : > { %v4708_v35 = vadd.f32 %v4707_v28, %v4706_v55 }
 0xaf9   : > { %v3914_v26 = vadd.f32 %v4708_v35, %v4392_v29  ;;  %v4709_v31 = vpop.f32.mrb[18].mxu0 }
 0xafa   : > { %v4710_v51 = vpop.f32.mrb[19].mxu0 }
 0xafb   : > { %v3922_v38 = vadd.f32 %v5673_v37, %v3914_v26  ;;  %v4711_v41 = vadd.f32 %v4710_v51, %v4709_v31 }
 0xafd   : > { %3926 = vst.msk [vmem:[%s934_s2] sm:$0xff] %vm976_vm1, %v3922_v38  ;;  %v3919_v36 = vadd.f32 %v4711_v41, %v4392_v29 }
 0xaff   : > { %v3923_v46 = vadd.f32 %v5674_v39, %v3919_v36 }
 0xb01   : > { %3927 = vst.msk [vmem:[%s934_s2 + $0x8] sm:$0xff] %vm976_vm1, %v3923_v46 }
 0xb02   : > { %5970 = shalt.err (!%p5967_p5)
}
 0xb03   : > { %s5971_s19 = scalar_lea.hbm %s7726_s16, 256  ;;  %s5975_s3 = scalar_lea.hbm %s7891_s5, 512 }
 0xb04   : > { %p5972_p9 = scmp.ne.s32.totalorder %s7726_s16, %s5971_s19  ;;  %p5976_p4 = scmp.lt.u32.totalorder %s7726_s16, %s7891_s5 }
 0xb05   : > { %p5977_p13 = scmp.lt.u32.totalorder %s5975_s3, %s5971_s19  ;;  %p5979_p3 = scmp.lt.u32.totalorder %s5971_s19, %s7726_s16 }
 0xb06   : > { %p5973_p7 = pnand %p5972_p9, %p7892_p2 }
 0xb07   : > { %p5978_p1 = por %p5977_p13, %p5976_p4 }
 0xb08   : > { %p5974_p10 = pneg %p5973_p7 }
 0xb09   : > { %p5980_p8 = por %p5979_p3, %p5978_p1 }
 0xb0b   : > { %p5981_p6 = pnand %p5980_p8, %p5974_p10 }
 0xb0d   : > { %5984 = shalt.err (!%p5981_p6)
}
 0xb0e   : > { %s6061_s6 = smov 128   ;;  %s6062_s11 = smov 8  }
 0xb0f   : > { %5566 = dma.vmem_to_hbm [thread:$0]  (%p7892_p2), %s7728_s10, 256, %s7726_s16, %s3934_s30, %s6061_s6, %s6061_s6, %s6062_s11  }
 0xb10 PF: > { %s3973_s7 = sand.u32 1, %s6031_s28   ;;  %p7893_p11 = scmp.ne.s32.totalorder %s7857_s18, 0 }
 0xb11   : > { %p7894_p12 = scmp.ge.s32.totalorder %s6043_s29, 2  ;;  %s3974_s19 = scalar_lea.sflag [#allocation5], %s3973_s7 }
 0xb13   : > { %p5601_p0 = pnand %p7894_p12, %p7893_p11 }
 0xb15   : > { %6026 = dma.done.wait (!%p5601_p0), %s3974_s19, 256  }
 0xb16   : > { %6028 = vsyncadd (!%p5601_p0), %s3974_s19, 4294967040  ;;  %p47_p5 = scmp.ge.s32.totalorder %s6433_s27, 4   ;;  %s7895_s28 = smov %s6035_s8 }
 0xb17   : > { %s7896_s8 = smov %s6039_s4  ;;  %s7897_s4 = smov %s6445_s13 }
 0xb18   : > { %s7898_s29 = smov %s6433_s27  ;;  %49 = sbr.rel (!%p47_p5) target bundleno = 33 (0x21), region = 231 }
 0xb1f   :  { %3979 = vsyncpa [#allocation4], 1 }
 0xb20   :  { %3981 = vsyncpa [#allocation4 + $0x1], 1 }
 0xb21   :  { %3982 = vsyncpa [#allocation7], 1 }
 0xb22   :  { %3983 = vsyncpa [#allocation10], 1 }
 0xb23   :  { %3984 = vsyncpa [#allocation13], 1 }
 0xb24   :  { %3985 = vsyncpa [#allocation16], 1 }
 0xb25   :  { %3986 = vsyncpa [#allocation19], 1 }
 0xb26   :  { %3987 = vsyncpa [#allocation5], 1 }
 0xb27   :  { %3989 = vsyncpa [#allocation5 + $0x1], 1 }

</bundles_post_ra>
